<compile_context>
chip_gen: v5e
topology: v5e:2x2
jax: 0.10.0
libtpu: 0.0.40
codegen_flags: <defaults>
</compile_context>

<pallas_src>
import functools

import jax
import jax.numpy as jnp
from jax.experimental import pallas as pl
from jax.experimental.pallas import tpu as pltpu

_H1 = 512   # padded hidden width of l1 / l5 (original 400)
_H2 = 384   # padded hidden width of l2 / l6 (original 300)


def _round_up(n, m):
    return ((n + m - 1) // m) * m


def _critic_kernel(xu_ref, w15_ref, b15_ref, w2_ref, b2_ref,
                   w6_ref, b6_ref, w48t_ref, w48b_ref, b48_ref, q_ref):
    f32 = jnp.float32
    bf16 = jnp.bfloat16

    xu = xu_ref[...]                       # (tb, in_dim) bf16

    # Fused layer 1 of both heads: one MXU pass over 2*_H1 output lanes.
    hg = jnp.dot(xu, w15_ref[...], preferred_element_type=f32) + b15_ref[...]
    hg = jnp.maximum(hg, 0.0)
    h = hg[:, :_H1].astype(bf16)           # Q1 head (lane-aligned split at 512)
    g = hg[:, _H1:].astype(bf16)           # Q2 head

    # Layer 2 of each head (f32 accumulate + bias + ReLU, cast back for MXU).
    h2 = jnp.dot(h, w2_ref[...], preferred_element_type=f32) + b2_ref[...]
    h2 = jnp.maximum(h2, 0.0).astype(bf16)
    g2 = jnp.dot(g, w6_ref[...], preferred_element_type=f32) + b6_ref[...]
    g2 = jnp.maximum(g2, 0.0).astype(bf16)

    # Fused final projections (block-diagonal [[w4,0],[0,w8]]), single store
    # of the whole (tb, 2) output block.
    q_ref[...] = (jnp.dot(h2, w48t_ref[...], preferred_element_type=f32)
                  + jnp.dot(g2, w48b_ref[...], preferred_element_type=f32)
                  + b48_ref[...])


def prep_critic_params(params):
    """One-time prep: pad to MXU-friendly widths, fuse heads, cast weights bf16.

    Call once per parameter update (hoisted out of the per-forward hot path).
    """
    bf16 = jnp.bfloat16

    def pad_to(a, rows, cols):
        return jnp.pad(a, ((0, rows - a.shape[0]), (0, cols - a.shape[1])))

    in_dim = params["w1"].shape[0]

    # Fused + padded layer 1 of both heads: (in_dim, 2*_H1).
    w15 = jnp.concatenate([pad_to(params["w1"], in_dim, _H1),
                           pad_to(params["w5"], in_dim, _H1)], axis=1).astype(bf16)
    b15 = jnp.concatenate([pad_to(params["b1"], 1, _H1),
                           pad_to(params["b5"], 1, _H1)], axis=1)

    w2 = pad_to(params["w2"], _H1, _H2).astype(bf16)
    b2 = pad_to(params["b2"], 1, _H2)
    w6 = pad_to(params["w6"], _H1, _H2).astype(bf16)
    b6 = pad_to(params["b6"], 1, _H2)

    # Block-diagonal fused final projection [[w4, 0], [0, w8]] : (2*_H2, 2),
    # stored pre-split by rows so the kernel does dot(h2, top) + dot(g2, bot)
    # without materializing concat([h2, g2]).
    zeros1 = jnp.zeros((_H2, 1), jnp.float32)
    w48_top = jnp.concatenate([pad_to(params["w4"], _H2, 1), zeros1], axis=1).astype(bf16)
    w48_bot = jnp.concatenate([zeros1, pad_to(params["w8"], _H2, 1)], axis=1).astype(bf16)
    b48 = jnp.concatenate([params["b4"], params["b8"]], axis=1)   # (1, 2) f32

    return (w15, b15, w2, b2, w6, b6, w48_top, w48_bot, b48)


@functools.partial(jax.jit, static_argnames=("tile_b",))
def critic_forward(x, u, prep, *, tile_b=1024):
    """Pallas implementation of Critic.forward(x, u) -> (q1, q2)."""
    B, state_dim = x.shape
    action_dim = u.shape[1]
    in_dim = state_dim + action_dim

    tile_b = max(128, _round_up(tile_b, 128))

    # Batch tiling: >=128-row tiles; when B > 128 produce at least two tiles so
    # dimension_semantics=("parallel",) shards across v7x's 2 TensorCores
    # (harmless on v5e/v6e, which have a single TC per chip).
    if B <= 128:
        tb = 128
    else:
        tb = min(tile_b, _round_up(-(-B // 2), 128))
    b_pad = _round_up(B, tb)
    grid = (b_pad // tb,)

    # Fused (under jit) concat + bf16 cast + pad of the inputs: layer 1 becomes
    # a single MXU pass / single input DMA stream over the (state, action) rows.
    xu = jnp.concatenate([x, u], axis=1).astype(jnp.bfloat16)
    xu = jnp.pad(xu, ((0, b_pad - B), (0, 0)))

    resident = lambda a: pl.BlockSpec(a.shape, lambda i: (0, 0))

    q = pl.pallas_call(
        _critic_kernel,
        out_shape=jax.ShapeDtypeStruct((b_pad, 2), jnp.float32),
        grid=grid,
        in_specs=[pl.BlockSpec((tb, in_dim), lambda i: (i, 0))]
                 + [resident(p) for p in prep],
        out_specs=pl.BlockSpec((tb, 2), lambda i: (i, 0)),
        compiler_params=pltpu.CompilerParams(
            dimension_semantics=("parallel",),
            vmem_limit_bytes=32 * 1024 * 1024),
    )(xu, *prep)

    # Padded batch rows hold bias-driven garbage; slice them off here.
    return q[:B, 0:1], q[:B, 1:2]


def init_critic_params(key, state_dim, action_dim):
    """Deterministic init mimicking PyTorch nn.Linear default U(-1/sqrt(fan_in), +)."""
    in_dim = state_dim + action_dim
    dims = {
        "1": (in_dim, 400), "2": (400, 300), "4": (300, 1),
        "5": (in_dim, 400), "6": (400, 300), "8": (300, 1),
    }
    params = {}
    for name, (fan_in, fan_out) in dims.items():
        key, kw, kb = jax.random.split(key, 3)
        bound = 1.0 / jnp.sqrt(fan_in)
        # Stored directly in (in, out) layout == PyTorch W^T.
        params[f"w{name}"] = jax.random.uniform(
            kw, (fan_in, fan_out), jnp.float32, -bound, bound)
        params[f"b{name}"] = jax.random.uniform(
            kb, (1, fan_out), jnp.float32, -bound, bound)
    return params


def critic_forward_ref(x, u, params):
    """Plain-JAX f32 reference for correctness checking."""
    xu = jnp.concatenate([x, u], axis=1)
    h = jax.nn.relu(xu @ params["w1"] + params["b1"])
    h = jax.nn.relu(h @ params["w2"] + params["b2"])
    q1 = h @ params["w4"] + params["b4"]
    g = jax.nn.relu(xu @ params["w5"] + params["b5"])
    g = jax.nn.relu(g @ params["w6"] + params["b6"])
    q2 = g @ params["w8"] + params["b8"]
    return q1, q2


if __name__ == "__main__":
    key = jax.random.PRNGKey(0)
    state_dim, action_dim, batch = 12, 4, 8

    k_params, kx, ku = jax.random.split(key, 3)
    params = init_critic_params(k_params, state_dim, action_dim)
    prep = prep_critic_params(params)      # hoisted: once per parameter update

    x = jax.random.normal(kx, (batch, state_dim), jnp.float32)
    u = jax.random.normal(ku, (batch, action_dim), jnp.float32)

    # Single-tile path (small batch).
    q1, q2 = critic_forward(x, u, prep)
    jax.block_until_ready((q1, q2))
    q1_ref, q2_ref = critic_forward_ref(x, u, params)
    assert q1.shape == (batch, 1) and q2.shape == (batch, 1)
    # bf16 MXU operands / inter-layer activations -> loosened tolerance vs f32.
    assert jnp.allclose(q1, q1_ref, atol=3e-2, rtol=3e-2)
    assert jnp.allclose(q2, q2_ref, atol=3e-2, rtol=3e-2)

    # Multi-tile grid path (B > 128 -> at least two parallel batch tiles).
    batch2 = 200
    kx2, ku2 = jax.random.split(jax.random.PRNGKey(1))
    x2 = jax.random.normal(kx2, (batch2, state_dim), jnp.float32)
    u2 = jax.random.normal(ku2, (batch2, action_dim), jnp.float32)
    q1b, q2b = critic_forward(x2, u2, prep)
    jax.block_until_ready((q1b, q2b))
    q1b_ref, q2b_ref = critic_forward_ref(x2, u2, params)
    assert q1b.shape == (batch2, 1) and q2b.shape == (batch2, 1)
    assert jnp.allclose(q1b, q1b_ref, atol=3e-2, rtol=3e-2)
    assert jnp.allclose(q2b, q2b_ref, atol=3e-2, rtol=3e-2)

    print("KERNEL_OK")
</pallas_src>

<mosaic_0001>
module attributes {stable_mosaic.version = 11 : i64} {
  func.func @_critic_kernel(%arg0: i32, %arg1: memref<128x16xbf16, #tpu.memory_space<vmem>>, %arg2: memref<16x1024xbf16, #tpu.memory_space<vmem>>, %arg3: memref<1x1024xf32, #tpu.memory_space<vmem>>, %arg4: memref<512x384xbf16, #tpu.memory_space<vmem>>, %arg5: memref<1x384xf32, #tpu.memory_space<vmem>>, %arg6: memref<512x384xbf16, #tpu.memory_space<vmem>>, %arg7: memref<1x384xf32, #tpu.memory_space<vmem>>, %arg8: memref<384x2xbf16, #tpu.memory_space<vmem>>, %arg9: memref<384x2xbf16, #tpu.memory_space<vmem>>, %arg10: memref<1x2xf32, #tpu.memory_space<vmem>>, %arg11: memref<128x2xf32, #tpu.memory_space<vmem>>) attributes {dimension_semantics = [#tpu.dimension_semantics<parallel>], iteration_bounds = array<i64: 1>, scalar_prefetch = 0 : i64, scratch_operands = 0 : i64, tpu.core_type = #tpu.core_type<tc>, window_params = [{transform_indices = @transform_0, window_bounds = array<i64: 128, 16>}, {pipeline_mode = #tpu.pipeline_mode<synchronous>, transform_indices = @transform_1, window_bounds = array<i64: 16, 1024>}, {pipeline_mode = #tpu.pipeline_mode<synchronous>, transform_indices = @transform_2, window_bounds = array<i64: 1, 1024>}, {pipeline_mode = #tpu.pipeline_mode<synchronous>, transform_indices = @transform_3, window_bounds = array<i64: 512, 384>}, {pipeline_mode = #tpu.pipeline_mode<synchronous>, transform_indices = @transform_4, window_bounds = array<i64: 1, 384>}, {pipeline_mode = #tpu.pipeline_mode<synchronous>, transform_indices = @transform_5, window_bounds = array<i64: 512, 384>}, {pipeline_mode = #tpu.pipeline_mode<synchronous>, transform_indices = @transform_6, window_bounds = array<i64: 1, 384>}, {pipeline_mode = #tpu.pipeline_mode<synchronous>, transform_indices = @transform_7, window_bounds = array<i64: 384, 2>}, {pipeline_mode = #tpu.pipeline_mode<synchronous>, transform_indices = @transform_8, window_bounds = array<i64: 384, 2>}, {pipeline_mode = #tpu.pipeline_mode<synchronous>, transform_indices = @transform_9, window_bounds = array<i64: 1, 2>}, {transform_indices = @transform_10, window_bounds = array<i64: 128, 2>}]} {
    %c0 = arith.constant 0 : index
    %c0_0 = arith.constant 0 : index
    %0 = vector.load %arg1[%c0, %c0_0] : memref<128x16xbf16, #tpu.memory_space<vmem>>, vector<128x16xbf16>
    %c0_1 = arith.constant 0 : index
    %c0_2 = arith.constant 0 : index
    %1 = vector.load %arg2[%c0_1, %c0_2] : memref<16x1024xbf16, #tpu.memory_space<vmem>>, vector<16x1024xbf16>
    %cst = arith.constant dense<0.000000e+00> : vector<128x1024xf32>
    %2 = tpu.matmul %0, %1, %cst {dimension_numbers = #tpu.dot_dimension_numbers<[1], [0], [0], [1], [0, 0, 1, 1], [], []>} : vector<128x16xbf16>, vector<16x1024xbf16>, vector<128x1024xf32> -> vector<128x1024xf32>
    %c0_3 = arith.constant 0 : index
    %c0_4 = arith.constant 0 : index
    %3 = vector.load %arg3[%c0_3, %c0_4] : memref<1x1024xf32, #tpu.memory_space<vmem>>, vector<1x1024xf32>
    %4 = vector.broadcast %3 : vector<1x1024xf32> to vector<128x1024xf32>
    %5 = arith.addf %2, %4 : vector<128x1024xf32>
    %cst_5 = arith.constant 0.000000e+00 : f32
    %6 = vector.broadcast %cst_5 : f32 to vector<128x1024xf32>
    %7 = arith.maximumf %5, %6 : vector<128x1024xf32>
    %8 = vector.extract_strided_slice %7 {offsets = [0, 0], sizes = [128, 512], strides = [1, 1]} : vector<128x1024xf32> to vector<128x512xf32>
    %9 = arith.truncf %8 : vector<128x512xf32> to vector<128x512xbf16>
    %10 = vector.extract_strided_slice %7 {offsets = [0, 512], sizes = [128, 512], strides = [1, 1]} : vector<128x1024xf32> to vector<128x512xf32>
    %11 = arith.truncf %10 : vector<128x512xf32> to vector<128x512xbf16>
    %c0_6 = arith.constant 0 : index
    %c0_7 = arith.constant 0 : index
    %12 = vector.load %arg4[%c0_6, %c0_7] : memref<512x384xbf16, #tpu.memory_space<vmem>>, vector<512x384xbf16>
    %cst_8 = arith.constant dense<0.000000e+00> : vector<128x384xf32>
    %13 = tpu.matmul %9, %12, %cst_8 {dimension_numbers = #tpu.dot_dimension_numbers<[1], [0], [0], [1], [0, 0, 1, 1], [], []>} : vector<128x512xbf16>, vector<512x384xbf16>, vector<128x384xf32> -> vector<128x384xf32>
    %c0_9 = arith.constant 0 : index
    %c0_10 = arith.constant 0 : index
    %14 = vector.load %arg5[%c0_9, %c0_10] : memref<1x384xf32, #tpu.memory_space<vmem>>, vector<1x384xf32>
    %15 = vector.broadcast %14 : vector<1x384xf32> to vector<128x384xf32>
    %16 = arith.addf %13, %15 : vector<128x384xf32>
    %cst_11 = arith.constant 0.000000e+00 : f32
    %17 = vector.broadcast %cst_11 : f32 to vector<128x384xf32>
    %18 = arith.maximumf %16, %17 : vector<128x384xf32>
    %19 = arith.truncf %18 : vector<128x384xf32> to vector<128x384xbf16>
    %c0_12 = arith.constant 0 : index
    %c0_13 = arith.constant 0 : index
    %20 = vector.load %arg6[%c0_12, %c0_13] : memref<512x384xbf16, #tpu.memory_space<vmem>>, vector<512x384xbf16>
    %cst_14 = arith.constant dense<0.000000e+00> : vector<128x384xf32>
    %21 = tpu.matmul %11, %20, %cst_14 {dimension_numbers = #tpu.dot_dimension_numbers<[1], [0], [0], [1], [0, 0, 1, 1], [], []>} : vector<128x512xbf16>, vector<512x384xbf16>, vector<128x384xf32> -> vector<128x384xf32>
    %c0_15 = arith.constant 0 : index
    %c0_16 = arith.constant 0 : index
    %22 = vector.load %arg7[%c0_15, %c0_16] : memref<1x384xf32, #tpu.memory_space<vmem>>, vector<1x384xf32>
    %23 = vector.broadcast %22 : vector<1x384xf32> to vector<128x384xf32>
    %24 = arith.addf %21, %23 : vector<128x384xf32>
    %cst_17 = arith.constant 0.000000e+00 : f32
    %25 = vector.broadcast %cst_17 : f32 to vector<128x384xf32>
    %26 = arith.maximumf %24, %25 : vector<128x384xf32>
    %27 = arith.truncf %26 : vector<128x384xf32> to vector<128x384xbf16>
    %c0_18 = arith.constant 0 : index
    %c0_19 = arith.constant 0 : index
    %28 = vector.load %arg8[%c0_18, %c0_19] : memref<384x2xbf16, #tpu.memory_space<vmem>>, vector<384x2xbf16>
    %cst_20 = arith.constant dense<0.000000e+00> : vector<128x2xf32>
    %29 = tpu.matmul %19, %28, %cst_20 {dimension_numbers = #tpu.dot_dimension_numbers<[1], [0], [0], [1], [0, 0, 1, 1], [], []>} : vector<128x384xbf16>, vector<384x2xbf16>, vector<128x2xf32> -> vector<128x2xf32>
    %c0_21 = arith.constant 0 : index
    %c0_22 = arith.constant 0 : index
    %30 = vector.load %arg9[%c0_21, %c0_22] : memref<384x2xbf16, #tpu.memory_space<vmem>>, vector<384x2xbf16>
    %cst_23 = arith.constant dense<0.000000e+00> : vector<128x2xf32>
    %31 = tpu.matmul %27, %30, %cst_23 {dimension_numbers = #tpu.dot_dimension_numbers<[1], [0], [0], [1], [0, 0, 1, 1], [], []>} : vector<128x384xbf16>, vector<384x2xbf16>, vector<128x2xf32> -> vector<128x2xf32>
    %32 = arith.addf %29, %31 : vector<128x2xf32>
    %c0_24 = arith.constant 0 : index
    %c0_25 = arith.constant 0 : index
    %33 = vector.load %arg10[%c0_24, %c0_25] : memref<1x2xf32, #tpu.memory_space<vmem>>, vector<1x2xf32>
    %34 = vector.broadcast %33 : vector<1x2xf32> to vector<128x2xf32>
    %35 = arith.addf %32, %34 : vector<128x2xf32>
    %c0_26 = arith.constant 0 : index
    %c0_27 = arith.constant 0 : index
    %36 = vector.load %arg11[%c0_26, %c0_27] : memref<128x2xf32, #tpu.memory_space<vmem>>, vector<128x2xf32>
    tpu.vector_store %arg11[%c0_26, %c0_27], %35 {strides = array<i32>} : memref<128x2xf32, #tpu.memory_space<vmem>>, vector<128x2xf32>,
    return
  }
  func.func @transform_0(%arg0: i32) -> (i32, i32) {
    %c0_i32 = arith.constant 0 : i32
    %c0_i32_0 = arith.constant 0 : i32
    return %arg0, %c0_i32 : i32, i32
  }
  func.func @transform_1(%arg0: i32) -> (i32, i32) {
    %c0_i32 = arith.constant 0 : i32
    %c0_i32_0 = arith.constant 0 : i32
    %c0_i32_1 = arith.constant 0 : i32
    return %c0_i32, %c0_i32_0 : i32, i32
  }
  func.func @transform_2(%arg0: i32) -> (i32, i32) {
    %c0_i32 = arith.constant 0 : i32
    %c0_i32_0 = arith.constant 0 : i32
    %c0_i32_1 = arith.constant 0 : i32
    return %c0_i32, %c0_i32_0 : i32, i32
  }
  func.func @transform_3(%arg0: i32) -> (i32, i32) {
    %c0_i32 = arith.constant 0 : i32
    %c0_i32_0 = arith.constant 0 : i32
    %c0_i32_1 = arith.constant 0 : i32
    return %c0_i32, %c0_i32_0 : i32, i32
  }
  func.func @transform_4(%arg0: i32) -> (i32, i32) {
    %c0_i32 = arith.constant 0 : i32
    %c0_i32_0 = arith.constant 0 : i32
    %c0_i32_1 = arith.constant 0 : i32
    return %c0_i32, %c0_i32_0 : i32, i32
  }
  func.func @transform_5(%arg0: i32) -> (i32, i32) {
    %c0_i32 = arith.constant 0 : i32
    %c0_i32_0 = arith.constant 0 : i32
    %c0_i32_1 = arith.constant 0 : i32
    return %c0_i32, %c0_i32_0 : i32, i32
  }
  func.func @transform_6(%arg0: i32) -> (i32, i32) {
    %c0_i32 = arith.constant 0 : i32
    %c0_i32_0 = arith.constant 0 : i32
    %c0_i32_1 = arith.constant 0 : i32
    return %c0_i32, %c0_i32_0 : i32, i32
  }
  func.func @transform_7(%arg0: i32) -> (i32, i32) {
    %c0_i32 = arith.constant 0 : i32
    %c0_i32_0 = arith.constant 0 : i32
    %c0_i32_1 = arith.constant 0 : i32
    return %c0_i32, %c0_i32_0 : i32, i32
  }
  func.func @transform_8(%arg0: i32) -> (i32, i32) {
    %c0_i32 = arith.constant 0 : i32
    %c0_i32_0 = arith.constant 0 : i32
    %c0_i32_1 = arith.constant 0 : i32
    return %c0_i32, %c0_i32_0 : i32, i32
  }
  func.func @transform_9(%arg0: i32) -> (i32, i32) {
    %c0_i32 = arith.constant 0 : i32
    %c0_i32_0 = arith.constant 0 : i32
    %c0_i32_1 = arith.constant 0 : i32
    return %c0_i32, %c0_i32_0 : i32, i32
  }
  func.func @transform_10(%arg0: i32) -> (i32, i32) {
    %c0_i32 = arith.constant 0 : i32
    %c0_i32_0 = arith.constant 0 : i32
    return %arg0, %c0_i32 : i32, i32
  }
}

</mosaic_0001>

<bundles_post_ra>
// kernel: critic_forward.1
= control target key start
LH: loop header
LB: loop body
LE: loop exit
PB: predicated region body
PF: predicated region fallthrough
CT: control target
= control target key end

     0   :  { %15 = vsyncpa [#allocation3], 0  ;;  %s7178_s0 = inlined_call_operand.vmem [shape: bf16[128,16], index: 0, kind: input, shape index: {}]   ;;  %s7179_s1 = inlined_call_operand.vmem [shape: bf16[16,1024], index: 1, kind: input, shape index: {}]   ;;  %s7180_s2 = inlined_call_operand.vmem [shape: f32[1,1024], index: 2, kind: input, shape index: {}]   ;;  %s7181_s3 = inlined_call_operand.hbm [shape: bf16[512,384], index: 3, kind: input, shape index: {}]   ;;  %s7182_s4 = inlined_call_operand.vmem [shape: f32[1,384], index: 4, kind: input, shape index: {}]   ;;  %s7183_s5 = inlined_call_operand.hbm [shape: bf16[512,384], index: 5, kind: input, shape index: {}]   ;;  %s7184_s6 = inlined_call_operand.vmem [shape: f32[1,384], index: 6, kind: input, shape index: {}]   ;;  %s7185_s7 = inlined_call_operand.vmem [shape: bf16[384,2], index: 7, kind: input, shape index: {}]   ;;  %s7186_s8 = inlined_call_operand.vmem [shape: bf16[384,2], index: 8, kind: input, shape index: {}]   ;;  %s7187_s9 = inlined_call_operand.vmem [shape: f32[1,2], index: 9, kind: input, shape index: {}]   ;;  %s7188_s10 = inlined_call_operand.vmem [shape: f32[128,2], index: 10, kind: output, shape index: {}]  }
   0x1   :  { %s27_s15 = sshll.u32 %s7181_s3, 4  ;;  %s28_s15 = int_to_ptr.hbm [resolvable:$true] %s27_s15 }
   0x2   :  { %16 = vsyncpa [#allocation5], 0  ;;  %s5544_s16 = smov [#allocation2]   ;;  %s42_s20 = sshll.u32 %s7183_s5, 4  ;;  %s43_s20 = int_to_ptr.hbm [resolvable:$true] %s42_s20 }
   0x3   :  { %s29_s17 = sshll.u32 %s5544_s16, 4  ;;  %s5545_s21 = smov 192   ;;  %s30_s17 = int_to_ptr.vmem [resolvable:$true] %s29_s17 }
   0x4   :  { %s5546_s22 = smov 12   ;;  %s5547_s23 = smov [#allocation4]  }
   0x5   :  { %35 = dma.hbm_to_vmem [thread:$0]  %s28_s15, 12288, %s30_s17, [#allocation3], %s5545_s21, %s5545_s21, %s5546_s22  }
   0x6   :  { %s44_s24 = sshll.u32 %s5547_s23, 4  ;;  %s45_s24 = int_to_ptr.vmem [resolvable:$true] %s44_s24 }
   0x7   :  { %50 = dma.hbm_to_vmem [thread:$0]  %s43_s20, 12288, %s45_s24, [#allocation5], %s5545_s21, %s5545_s21, %s5546_s22  }
   0x8   :  { %5540 = dma.done.wait [#allocation3], 12288  }
   0x9   :  { %5541 = vsyncadd [#allocation3], 4294955008 }
   0xa   :  { %5542 = dma.done.wait [#allocation5], 12288  }
   0xb   :  { %5543 = vsyncadd [#allocation5], 4294955008  ;;  %v4170_v0 = vld [vmem:[%s7179_s1] sm:$0xf]  ;;  %v5232_v2 = vld [vmem:[%s7179_s1 + $0x4] sm:$0xf] }
   0xc   :  { %v5236_v1 = vld [vmem:[%s7179_s1 + $0x1c] sm:$0xf0]  ;;  %v4172_v4 = vld [vmem:[%s7179_s1 + $0x20] sm:$0xf0]  ;;  %v4178_v8 = vld [vmem:[%s7179_s1 + $0x8] sm:$0xf] }
   0xd   :  { %v4171_v3 = vor.u32 %v5236_v1, %v4170_v0  ;;  %v5624_v5 = vld [vmem:[%s7178_s0] sm:$0xff]  ;;  %v4175_v7 = vor.u32 %v5232_v2, %v4172_v4  ;;  %v5237_v9 = vld [vmem:[%s7179_s1 + $0x24] sm:$0xf0]  ;;  %v5233_v10 = vld [vmem:[%s7179_s1 + $0xc] sm:$0xf]  ;;  %vm190_vm0 = vcmask 130048  }
   0xe   :  { %v5629_v6 = vld [vmem:[%s7178_s0 + $0x20] sm:$0xff]  ;;  %v4179_v11 = vor.u32 %v5237_v9, %v4178_v8  ;;  %v4180_v12 = vld [vmem:[%s7179_s1 + $0x28] sm:$0xf0]  ;;  %v4186_v14 = vld [vmem:[%s7179_s1 + $0x10] sm:$0xf]  ;;  %vm4113_vm1 = vcmask 15360  }
   0xf   :  { %222 = vmatpush.bf16.msra.mxu0 %v4171_v3  ;;  %5480 = vmatpush.bf16.msra.mxu2 %v4171_v3  ;;  %v4183_v13 = vor.u32 %v5233_v10, %v4180_v12  ;;  %v5238_v15 = vld [vmem:[%s7179_s1 + $0x2c] sm:$0xf0]  ;;  %v5234_v17 = vld [vmem:[%s7179_s1 + $0x14] sm:$0xf]  ;;  %v5666_v20 = vld [vmem:[%s7178_s0 + $0x8] sm:$0xff] }
  0x10   :  { %271 = vmatpush.bf16.msra.mxu1 %v4175_v7  ;;  %5481 = vmatpush.bf16.msra.mxu3 %v4175_v7  ;;  %v4187_v16 = vor.u32 %v5238_v15, %v4186_v14  ;;  %v4188_v18 = vld [vmem:[%s7179_s1 + $0x30] sm:$0xf0]  ;;  %v5671_v21 = vld [vmem:[%s7178_s0 + $0x28] sm:$0xff]  ;;  %v4194_v24 = vld [vmem:[%s7179_s1 + $0x18] sm:$0xf] }
  0x11   :  { %v4191_v19 = vor.u32 %v5234_v17, %v4188_v18  ;;  %v5684_v22 = vld [vmem:[%s7178_s0 + $0x10] sm:$0xff]  ;;  %v5239_v25 = vld [vmem:[%s7179_s1 + $0x34] sm:$0xf0]  ;;  %v5235_v26 = vld [vmem:[%s7179_s1 + $0x1c] sm:$0xf] }
  0x12   :  { %4200 = vmatmul.msk.bf16.vlgmr.msra.gmra.mxu0 %vm190_vm0, %v5624_v5  ;;  %4204 = vmatmul.msk.bf16.vlgmr.msra.gmra.mxu2 %vm190_vm0, %v5629_v6  ;;  %v5689_v23 = vld [vmem:[%s7178_s0 + $0x30] sm:$0xff]  ;;  %v4195_v27 = vor.u32 %v5239_v25, %v4194_v24  ;;  %v4196_v28 = vld [vmem:[%s7179_s1 + $0x38] sm:$0xf0]  ;;  %v4350_v32 = vld [vmem:[#allocation2 + $0xa8] sm:$0xf] }
  0x13   :  { %320 = vmatpush.bf16.msrb.mxu2 %v4179_v11  ;;  %4208 = vmatmul.msk.bf16.vlgmr.msra.gmra.mxu1 %vm190_vm0, %v5624_v5  ;;  %v4199_v29 = vor.u32 %v5235_v26, %v4196_v28  ;;  %v5714_v30 = vld [vmem:[%s7178_s0 + $0x18] sm:$0xff]  ;;  %v5262_v33 = vld [vmem:[#allocation2 + $0xb0] sm:$0xf0]  ;;  %v4446_v35 = vld [vmem:[#allocation2 + $0x168] sm:$0xf] }
  0x14   :  { %4212 = vmatmul.msk.bf16.vlgmr.msra.gmra.mxu3 %vm190_vm0, %v5629_v6  ;;  %418 = vmatpush.bf16.msrb.mxu0 %v4187_v16  ;;  %v5719_v31 = vld [vmem:[%s7178_s0 + $0x38] sm:$0xff]  ;;  %v4351_v34 = vor.u32 %v5262_v33, %v4350_v32  ;;  %v5286_v36 = vld [vmem:[#allocation2 + $0x170] sm:$0xf0]  ;;  %v4338_v37 = vld [vmem:[#allocation2 + $0x90] sm:$0xf] }
  0x15   :  { %369 = vmatpush.bf16.msrb.mxu3 %v4183_v13  ;;  %467 = vmatpush.bf16.msrb.mxu1 %v4191_v19  ;;  %v4447_v38 = vor.u32 %v5286_v36, %v4446_v35  ;;  %v5259_v39 = vld [vmem:[#allocation2 + $0x98] sm:$0xf0]  ;;  %v4434_v41 = vld [vmem:[#allocation2 + $0x150] sm:$0xf]  ;;  %v4326_v44 = vld [vmem:[#allocation2 + $0x78] sm:$0xf] }
  0x16   :  { %v4339_v40 = vor.u32 %v5259_v39, %v4338_v37  ;;  %v5283_v42 = vld [vmem:[#allocation2 + $0x158] sm:$0xf0]  ;;  %v5256_v45 = vld [vmem:[#allocation2 + $0x80] sm:$0xf0]  ;;  %v4422_v46 = vld [vmem:[#allocation2 + $0x138] sm:$0xf] }
  0x17   :  { %516 = vmatpush.bf16.msra.mxu2 %v4195_v27  ;;  %v4435_v43 = vor.u32 %v5283_v42, %v4434_v41  ;;  %v4327_v47 = vor.u32 %v5256_v45, %v4326_v44  ;;  %v5280_v48 = vld [vmem:[#allocation2 + $0x140] sm:$0xf0]  ;;  %v4314_v50 = vld [vmem:[#allocation2 + $0x60] sm:$0xf]  ;;  %v5253_v51 = vld [vmem:[#allocation2 + $0x68] sm:$0xf0] }
  0x18   :  { %1447 = vmatpush.bf16.msra.mxu0 %v4351_v34  ;;  %v4423_v49 = vor.u32 %v5280_v48, %v4422_v46  ;;  %v4410_v52 = vld [vmem:[#allocation2 + $0x120] sm:$0xf]  ;;  %v4315_v53 = vor.u32 %v5253_v51, %v4314_v50  ;;  %v5277_v54 = vld [vmem:[#allocation2 + $0x128] sm:$0xf0]  ;;  %v4302_v61 = vld [vmem:[#allocation2 + $0x48] sm:$0xf] }
  0x19   :  { %565 = vmatpush.bf16.msra.mxu3 %v4199_v29  ;;  %1496 = vmatpush.bf16.msra.mxu1 %v4447_v38  ;;  %v4411_v55 = vor.u32 %v5277_v54, %v4410_v52  ;;  %v5764_v56 = vld [vmem:[%s7180_s2] sm:$0xff]  ;;  %v5250_v62 = vld [vmem:[#allocation2 + $0x50] sm:$0xf0]  ;;  %v4398_v0 = vld [vmem:[#allocation2 + $0x108] sm:$0xf] }
  0x1a   :  { %v5771_v59 = vperm.slane %v5764_v56, 0  ;;  %v5778_v60 = vperm.slane %v5764_v56, 1  ;;  %v4303_v63 = vor.u32 %v5250_v62, %v4302_v61  ;;  %v5274_v1 = vld [vmem:[#allocation2 + $0x110] sm:$0xf0]  ;;  %v4290_v26 = vld [vmem:[#allocation2 + $0x30] sm:$0xf] }
  0x1b   :  { %v4399_v3 = vor.u32 %v5274_v1, %v4398_v0  ;;  %v5247_v27 = vld [vmem:[#allocation2 + $0x38] sm:$0xf0]  ;;  %v4386_v32 = vld [vmem:[#allocation2 + $0xf0] sm:$0xf]  ;;  %v4278_v41 = vld [vmem:[#allocation2 + $0x18] sm:$0xf] }
  0x1c   :  { %1448 = vmatpush.bf16.msra.mxu0 %v4339_v40  ;;  %v4291_v29 = vor.u32 %v5247_v27, %v4290_v26  ;;  %v5271_v33 = vld [vmem:[#allocation2 + $0xf8] sm:$0xf0]  ;;  %v5244_v42 = vld [vmem:[#allocation2 + $0x20] sm:$0xf0]  ;;  %v4374_v44 = vld [vmem:[#allocation2 + $0xd8] sm:$0xf] }
  0x1d   :  { %1497 = vmatpush.bf16.msra.mxu1 %v4435_v43  ;;  %v4387_v35 = vor.u32 %v5271_v33, %v4386_v32  ;;  %v4279_v43 = vor.u32 %v5244_v42, %v4278_v41  ;;  %v5268_v45 = vld [vmem:[#allocation2 + $0xe0] sm:$0xf0]  ;;  %v4266_v48 = vld [vmem:[#allocation2] sm:$0xf]  ;;  %v5265_v54 = vld [vmem:[#allocation2 + $0xc8] sm:$0xf0] }
  0x1e   :  { %v4375_v46 = vor.u32 %v5268_v45, %v4374_v44  ;;  %v4362_v50 = vld [vmem:[#allocation2 + $0xc0] sm:$0xf]  ;;  %v4530_v44 = vld [vmem:[#allocation2 + $0x210] sm:$0xf]  ;;  %v5307_v45 = vld [vmem:[#allocation2 + $0x218] sm:$0xf0] }
  0x1f   :  { %v4363_v62 = vor.u32 %v5265_v54, %v4362_v50 }
  0x20   :  { %1449 = vmatpush.bf16.msra.mxu0 %v4327_v47 }
  0x21   :  { %1498 = vmatpush.bf16.msra.mxu1 %v4423_v49  ;;  %v5241_v49 = vld [vmem:[#allocation2 + $0x8] sm:$0xf0] }
  0x22   :  { %4201 = vmatmul.msk.bf16.gmra.mxu0 %vm190_vm0, %v5666_v20  ;;  %4205 = vmatmul.msk.bf16.gmra.mxu2 %vm190_vm0, %v5671_v21 }
  0x23   :  { %4209 = vmatmul.msk.bf16.gmra.mxu1 %vm190_vm0, %v5666_v20 }
  0x24   :  { %4213 = vmatmul.msk.bf16.gmra.mxu3 %vm190_vm0, %v5671_v21  ;;  %1450 = vmatpush.bf16.msra.mxu0 %v4315_v53  ;;  %v4267_v53 = vor.u32 %v5241_v49, %v4266_v48  ;;  %v4626_v48 = vld [vmem:[#allocation2 + $0x2d0] sm:$0xf]  ;;  %v5331_v49 = vld [vmem:[#allocation2 + $0x2d8] sm:$0xf0] }
  0x25   :  { %1499 = vmatpush.bf16.msra.mxu1 %v4411_v55 }
  0x28   :  { %1451 = vmatpush.bf16.msra.mxu0 %v4303_v63 }
  0x29   :  { %1500 = vmatpush.bf16.msra.mxu1 %v4399_v3 }
  0x2c   :  { %1452 = vmatpush.bf16.msra.mxu0 %v4291_v29 }
  0x2d   :  { %1501 = vmatpush.bf16.msra.mxu1 %v4387_v35 }
  0x30   :  { %1453 = vmatpush.bf16.msra.mxu0 %v4279_v43 }
  0x31   :  { %1502 = vmatpush.bf16.msra.mxu1 %v4375_v46 }
  0x32   :  { %4202 = vmatmul.msk.bf16.gmra.mxu0 %vm190_vm0, %v5684_v22  ;;  %4206 = vmatmul.msk.bf16.gmra.mxu2 %vm190_vm0, %v5689_v23 }
  0x33   :  { %4210 = vmatmul.msk.bf16.gmra.mxu1 %vm190_vm0, %v5684_v22 }
  0x34   :  { %4214 = vmatmul.msk.bf16.gmra.mxu3 %vm190_vm0, %v5689_v23  ;;  %1454 = vmatpush.bf16.msra.mxu0 %v4267_v53 }
  0x35   :  { %1503 = vmatpush.bf16.msra.mxu1 %v4363_v62 }
  0x42   :  { %4203 = vmatmul.msk.bf16.gmra.mxu0 %vm190_vm0, %v5714_v30  ;;  %4207 = vmatmul.msk.bf16.gmra.mxu2 %vm190_vm0, %v5719_v31 }
  0x43   :  { %4211 = vmatmul.msk.bf16.gmra.mxu1 %vm190_vm0, %v5714_v30 }
  0x44   :  { %4215 = vmatmul.msk.bf16.gmra.mxu3 %vm190_vm0, %v5719_v31 }
  0x52   :  { %4216 = vmatmul.msk.bf16.vlgmr.msrb.gmra.mxu2 %vm190_vm0, %v5624_v5  ;;  %4232 = vmatmul.msk.bf16.vlgmr.msrb.gmra.mxu0 %vm190_vm0, %v5624_v5 }
  0x53   :  { %4240 = vmatmul.msk.bf16.vlgmr.msrb.gmra.mxu1 %vm190_vm0, %v5624_v5 }
  0x54   :  { %4224 = vmatmul.msk.bf16.vlgmr.msrb.gmra.mxu3 %vm190_vm0, %v5624_v5 }
  0x62   :  { %4217 = vmatmul.msk.bf16.gmra.mxu2 %vm190_vm0, %v5666_v20  ;;  %4233 = vmatmul.msk.bf16.gmra.mxu0 %vm190_vm0, %v5666_v20 }
  0x63   :  { %4241 = vmatmul.msk.bf16.gmra.mxu1 %vm190_vm0, %v5666_v20 }
  0x64   :  { %4225 = vmatmul.msk.bf16.gmra.mxu3 %vm190_vm0, %v5666_v20 }
  0x72   :  { %4218 = vmatmul.msk.bf16.gmra.mxu2 %vm190_vm0, %v5684_v22  ;;  %4234 = vmatmul.msk.bf16.gmra.mxu0 %vm190_vm0, %v5684_v22 }
  0x73   :  { %4242 = vmatmul.msk.bf16.gmra.mxu1 %vm190_vm0, %v5684_v22 }
  0x74   :  { %4226 = vmatmul.msk.bf16.gmra.mxu3 %vm190_vm0, %v5684_v22 }
  0x82   :  { %4219 = vmatmul.msk.bf16.gmra.mxu2 %vm190_vm0, %v5714_v30  ;;  %4235 = vmatmul.msk.bf16.gmra.mxu0 %vm190_vm0, %v5714_v30 }
  0x83   :  { %4243 = vmatmul.msk.bf16.gmra.mxu1 %vm190_vm0, %v5714_v30 }
  0x84   :  { %4227 = vmatmul.msk.bf16.gmra.mxu3 %vm190_vm0, %v5714_v30 }
  0x8f   :  { %v5766_v57 = vpop.f32.mrf.mxu0 }
  0x90   :  { %v5768_v58 = vpop.f32.mrf.mxu1 }
  0x92   :  { %4220 = vmatmul.msk.bf16.gmra.mxu2 %vm190_vm0, %v5629_v6  ;;  %4236 = vmatmul.msk.bf16.gmra.mxu0 %vm190_vm0, %v5629_v6 }
  0x93   :  { %4244 = vmatmul.msk.bf16.gmra.mxu1 %vm190_vm0, %v5629_v6 }
  0x94   :  { %4228 = vmatmul.msk.bf16.gmra.mxu3 %vm190_vm0, %v5629_v6 }
  0x95   :  { %v244_v2 = vpop.f32.mrf.mxu2 }
  0x96   :  { %v245_v4 = vadd.f32 %v244_v2, %v5771_v59 }
  0x97   :  { %v293_v7 = vpop.f32.mrf.mxu3  ;;  %v5786_v9 = vpop.f32.mrf.mxu0 }
  0x98   :  { %v294_v8 = vadd.f32 %v293_v7, %v5778_v60  ;;  %v5788_v10 = vpop.f32.mrf.mxu1  ;;  %v671_v16 = vmax.f32 %v245_v4, 0.0  ;;  %v4542_v7 = vld [vmem:[#allocation2 + $0x228] sm:$0xf]  ;;  %v227_v62 = vadd.f32 %v5786_v9, %v5771_v59 }
  0x9a   :  { %v672_v19 = vmax.f32 %v294_v8, 0.0  ;;  %v5310_v8 = vld [vmem:[#allocation2 + $0x230] sm:$0xf0] }
  0x9d   :  { %v246_v11 = vpop.f32.mrf.mxu2 }
  0x9e   :  { %v247_v12 = vadd.f32 %v246_v11, %v5771_v59 }
  0x9f   :  { %v295_v13 = vpop.f32.mrf.mxu3  ;;  %v5792_v15 = vpop.f32.mrf.mxu0 }
  0xa0   :  { %v296_v14 = vadd.f32 %v295_v13, %v5778_v60  ;;  %v679_v17 = vmax.f32 %v247_v12, 0.0  ;;  %v5794_v18 = vpop.f32.mrf.mxu1  ;;  %v4543_v12 = vor.u32 %v5310_v8, %v4542_v7  ;;  %v4638_v13 = vld [vmem:[#allocation2 + $0x2e8] sm:$0xf]  ;;  %v615_v7 = vmax.f32 %v227_v62, 0.0 }
  0xa2   :  { %v680_v24 = vmax.f32 %v296_v14, 0.0  ;;  %4221 = vmatmul.msk.bf16.gmra.mxu2 %vm190_vm0, %v5671_v21  ;;  %4237 = vmatmul.msk.bf16.gmra.mxu0 %vm190_vm0, %v5671_v21  ;;  %v5800_v25 = vpack.c.bf16 %v679_v17, %v671_v16  ;;  %v5334_v14 = vld [vmem:[#allocation2 + $0x2f0] sm:$0xf0] }
  0xa3   :  { %4245 = vmatmul.msk.bf16.gmra.mxu1 %vm190_vm0, %v5671_v21  ;;  %v4639_v17 = vor.u32 %v5334_v14, %v4638_v13  ;;  %1545 = vmatpush.bf16.msrb.mxu2 %v4543_v12 }
  0xa4   :  { %4229 = vmatmul.msk.bf16.gmra.mxu3 %vm190_vm0, %v5671_v21  ;;  %v5806_v28 = vpack.c.bf16 %v680_v24, %v672_v19 }
  0xa5   :  { %v249_v34 = vpop.f32.mrf.mxu2  ;;  %1594 = vmatpush.bf16.msrb.mxu3 %v4639_v17 }
  0xa6   :  { %v250_v36 = vadd.f32 %v249_v34, %v5771_v59 }
  0xa7   :  { %v298_v37 = vpop.f32.mrf.mxu3  ;;  %v5810_v39 = vpop.f32.mrf.mxu0 }
  0xa8   :  { %v299_v38 = vadd.f32 %v298_v37, %v5778_v60  ;;  %v5812_v40 = vpop.f32.mrf.mxu1  ;;  %v687_v63 = vmax.f32 %v250_v36, 0.0 }
  0xaa   :  { %v688_v2 = vmax.f32 %v299_v38, 0.0 }
  0xad   :  { %v251_v47 = vpop.f32.mrf.mxu2 }
  0xae   :  { %v252_v51 = vadd.f32 %v251_v47, %v5771_v59  ;;  %v4531_v47 = vor.u32 %v5307_v45, %v4530_v44  ;;  %v4518_v45 = vld [vmem:[#allocation2 + $0x1f8] sm:$0xf] }
  0xaf   :  { %v300_v52 = vpop.f32.mrf.mxu3  ;;  %v5816_v61 = vpop.f32.mrf.mxu0 }
  0xb0   :  { %v301_v55 = vadd.f32 %v300_v52, %v5778_v60  ;;  %v695_v0 = vmax.f32 %v252_v51, 0.0  ;;  %v5818_v1 = vpop.f32.mrf.mxu1  ;;  %v4627_v51 = vor.u32 %v5331_v49, %v4626_v48  ;;  %1546 = vmatpush.bf16.msrb.mxu2 %v4531_v47  ;;  %v5304_v47 = vld [vmem:[#allocation2 + $0x200] sm:$0xf0]  ;;  %v5285_v48 = vld [vmem:[#allocation2 + $0x16c] sm:$0xf] }
  0xb2   :  { %v696_v3 = vmax.f32 %v301_v55, 0.0  ;;  %4222 = vmatmul.msk.bf16.gmra.mxu2 %vm190_vm0, %v5689_v23  ;;  %4238 = vmatmul.msk.bf16.gmra.mxu0 %vm190_vm0, %v5689_v23  ;;  %v5824_v4 = vpack.c.bf16 %v695_v0, %v687_v63  ;;  %v274_v0 = vadd.f32 %v5768_v58, %v5778_v60  ;;  %v5875_v58 = vperm.slane %v5764_v56, 4 }
  0xb3   :  { %4246 = vmatmul.msk.bf16.gmra.mxu1 %vm190_vm0, %v5689_v23  ;;  %1595 = vmatpush.bf16.msrb.mxu3 %v4627_v51  ;;  %v4519_v51 = vor.u32 %v5304_v47, %v4518_v45 }
  0xb4   :  { %7224 = vst [vmem:[#allocation8_spill] sm:$0xff] %v5824_v4  ;;  %4230 = vmatmul.msk.bf16.gmra.mxu3 %vm190_vm0, %v5689_v23  ;;  %v5830_v11 = vpack.c.bf16 %v696_v3, %v688_v2  ;;  %v276_v2 = vadd.f32 %v5788_v10, %v5778_v60  ;;  %v608_v8 = vmax.f32 %v274_v0, 0.0  ;;  %v230_v0 = vadd.f32 %v5792_v15, %v5771_v59 }
  0xb5   :  { %v254_v16 = vpop.f32.mrf.mxu2  ;;  %1547 = vmatpush.bf16.msrb.mxu2 %v4519_v51  ;;  %v281_v15 = vadd.f32 %v5812_v40, %v5778_v60 }
  0xb6   :  { %7225 = vst [vmem:[#allocation9_spill] sm:$0xff] %v5830_v11  ;;  %v255_v19 = vadd.f32 %v254_v16, %v5771_v59  ;;  %v616_v12 = vmax.f32 %v276_v2, 0.0  ;;  %v279_v2 = vadd.f32 %v5794_v18, %v5778_v60  ;;  %v5907_v18 = vperm.slane %v5764_v56, 3 }
  0xb7   :  { %v303_v24 = vpop.f32.mrf.mxu3  ;;  %v5834_v27 = vpop.f32.mrf.mxu0 }
  0xb8   :  { %v304_v26 = vadd.f32 %v303_v24, %v5778_v60  ;;  %v5836_v29 = vpop.f32.mrf.mxu1  ;;  %v703_v36 = vmax.f32 %v255_v19, 0.0  ;;  %v5877_v10 = vpack.c.bf16 %v616_v12, %v608_v8  ;;  %v5901_v12 = vperm.slane %v5764_v56, 2 }
  0xba   :  { %v704_v41 = vmax.f32 %v304_v26, 0.0 }
  0xbd   :  { %v256_v23 = vpop.f32.mrf.mxu2 }
  0xbe   :  { %v257_v32 = vadd.f32 %v256_v23, %v5771_v59 }
  0xbf   :  { %v305_v33 = vpop.f32.mrf.mxu3  ;;  %v5840_v35 = vpop.f32.mrf.mxu0 }
  0xc0   :  { %v306_v34 = vadd.f32 %v305_v33, %v5778_v60  ;;  %v711_v37 = vmax.f32 %v257_v32, 0.0  ;;  %v5842_v38 = vpop.f32.mrf.mxu1  ;;  %v5880_v33 = vperm.slane %v5764_v56, 5 }
  0xc2   :  { %v712_v42 = vmax.f32 %v306_v34, 0.0  ;;  %4223 = vmatmul.msk.bf16.gmra.mxu2 %vm190_vm0, %v5719_v31  ;;  %4239 = vmatmul.msk.bf16.gmra.mxu0 %vm190_vm0, %v5719_v31  ;;  %v5848_v43 = vpack.c.bf16 %v711_v37, %v703_v36  ;;  %v5261_v36 = vld [vmem:[#allocation2 + $0xac] sm:$0xf]  ;;  %v4352_v37 = vld [vmem:[#allocation2 + $0xb4] sm:$0xf0] }
  0xc3   :  { %4247 = vmatmul.msk.bf16.gmra.mxu1 %vm190_vm0, %v5719_v31  ;;  %v4355_v44 = vor.u32 %v5261_v36, %v4352_v37  ;;  %v632_v36 = vmax.f32 %v281_v15, 0.0 }
  0xc4   :  { %4231 = vmatmul.msk.bf16.gmra.mxu3 %vm190_vm0, %v5719_v31  ;;  %v5854_v46 = vpack.c.bf16 %v712_v42, %v704_v41  ;;  %v225_v31 = vadd.f32 %v5766_v57, %v5771_v59 }
  0xc5   :  { %v259_v50 = vpop.f32.mrf.mxu2  ;;  %1643 = vmatpush.bf16.msrb.mxu0 %v4355_v44 }
  0xc6   :  { %v260_v52 = vadd.f32 %v259_v50, %v5771_v59  ;;  %v607_v3 = vmax.f32 %v225_v31, 0.0 }
  0xc7   :  { %v308_v53 = vpop.f32.mrf.mxu3  ;;  %v5858_v55 = vpop.f32.mrf.mxu0 }
  0xc8   :  { %v309_v54 = vadd.f32 %v308_v53, %v5778_v60  ;;  %v5864_v63 = vpop.f32.mrf.mxu1  ;;  %v5872_v9 = vpack.c.bf16 %v615_v7, %v607_v3  ;;  %v719_v19 = vmax.f32 %v260_v52, 0.0  ;;  %v4448_v52 = vld [vmem:[#allocation2 + $0x174] sm:$0xf0]  ;;  %v232_v7 = vadd.f32 %v5810_v39, %v5771_v59 }
  0xc9   :  { %v4614_v53 = vld [vmem:[#allocation2 + $0x2b8] sm:$0xf]  ;;  %v4451_v31 = vor.u32 %v5285_v48, %v4448_v52 }
  0xca   :  { %v720_v23 = vmax.f32 %v309_v54, 0.0  ;;  %v5328_v54 = vld [vmem:[#allocation2 + $0x2c0] sm:$0xf0] }
  0xcb   :  { %v4615_v62 = vor.u32 %v5328_v54, %v4614_v53  ;;  %1692 = vmatpush.bf16.msrb.mxu1 %v4451_v31 }
  0xcd   :  { %v261_v13 = vpop.f32.mrf.mxu2  ;;  %1596 = vmatpush.bf16.msrb.mxu3 %v4615_v62  ;;  %v5258_v62 = vld [vmem:[#allocation2 + $0x94] sm:$0xf] }
  0xce   :  { %v262_v14 = vadd.f32 %v261_v13, %v5771_v59 }
  0xcf   :  { %v310_v16 = vpop.f32.mrf.mxu3  ;;  %v420_v17 = vpop.f32.mrf.mxu0 }
  0xd0   :  { %v311_v57 = vadd.f32 %v310_v16, %v5778_v60  ;;  %v727_v24 = vmax.f32 %v262_v14, 0.0  ;;  %v469_v26 = vpop.f32.mrf.mxu1  ;;  %v421_v42 = vadd.f32 %v420_v17, %v5875_v58 }
  0xd1   :  { %v470_v49 = vadd.f32 %v469_v26, %v5880_v33 }
  0xd2   :  { %v728_v32 = vmax.f32 %v311_v57, 0.0  ;;  %4248 = vmatmul.msk.bf16.vlgmr.msra.gmra.mxu2 %vm190_vm0, %v5624_v5  ;;  %1455 = vmatmul.bf16.vlgmr.msra.gmra.mxu0 %v5872_v9  ;;  %v5885_v34 = vpack.c.bf16 %v727_v24, %v719_v19  ;;  %v611_v8 = vmax.f32 %v421_v42, 0.0  ;;  %v623_v19 = vmax.f32 %v230_v0, 0.0  ;;  %v4340_v0 = vld [vmem:[#allocation2 + $0x9c] sm:$0xf0] }
  0xd3   :  { %1504 = vmatmul.bf16.vlgmr.msra.gmra.mxu1 %v5877_v10  ;;  %v612_v16 = vmax.f32 %v470_v49, 0.0  ;;  %v631_v24 = vmax.f32 %v232_v7, 0.0  ;;  %v4506_v7 = vld [vmem:[#allocation2 + $0x1e0] sm:$0xf] }
  0xd4   :  { %4256 = vmatmul.msk.bf16.vlgmr.msra.gmra.mxu3 %vm190_vm0, %v5624_v5  ;;  %v5890_v41 = vpack.c.bf16 %v728_v32, %v720_v23  ;;  %v624_v32 = vmax.f32 %v279_v2, 0.0 }
  0xd5   :  { %v322_v50 = vpop.f32.mrf.mxu2  ;;  %v5918_v52 = vpack.c.bf16 %v631_v24, %v623_v19 }
  0xd6   :  { %v323_v26 = vadd.f32 %v322_v50, %v5901_v12  ;;  %v5920_v54 = vpack.c.bf16 %v632_v36, %v624_v32  ;;  %v235_v32 = vadd.f32 %v5816_v61, %v5771_v59  ;;  %v237_v36 = vadd.f32 %v5834_v27, %v5771_v59 }
  0xd7   :  { %v371_v5 = vpop.f32.mrf.mxu3  ;;  %v422_v3 = vpop.f32.mrf.mxu0 }
  0xd8   :  { %v423_v13 = vadd.f32 %v422_v3, %v5875_v58  ;;  %v471_v14 = vpop.f32.mrf.mxu1  ;;  %v372_v37 = vadd.f32 %v371_v5, %v5907_v18  ;;  %v609_v48 = vmax.f32 %v323_v26, 0.0  ;;  %v4343_v3 = vor.u32 %v5258_v62, %v4340_v0 }
  0xd9   :  { %v472_v57 = vadd.f32 %v471_v14, %v5880_v33 }
  0xda   :  { %v619_v17 = vmax.f32 %v423_v13, 0.0  ;;  %v610_v50 = vmax.f32 %v372_v37, 0.0  ;;  %v5282_v13 = vld [vmem:[#allocation2 + $0x154] sm:$0xf]  ;;  %1644 = vmatpush.bf16.msrb.mxu0 %v4343_v3 }
  0xdb   :  { %v620_v39 = vmax.f32 %v472_v57, 0.0  ;;  %v4436_v57 = vld [vmem:[#allocation2 + $0x15c] sm:$0xf0] }
  0xdc   :  { %v5911_v23 = vpack.c.bf16 %v619_v17, %v611_v8  ;;  %v5301_v8 = vld [vmem:[#allocation2 + $0x1e8] sm:$0xf0]  ;;  %v4602_v17 = vld [vmem:[#allocation2 + $0x2a0] sm:$0xf] }
  0xdd   :  { %v5914_v42 = vpack.c.bf16 %v620_v39, %v612_v16  ;;  %v324_v40 = vpop.f32.mrf.mxu2  ;;  %v4507_v16 = vor.u32 %v5301_v8, %v4506_v7  ;;  %v5325_v39 = vld [vmem:[#allocation2 + $0x2a8] sm:$0xf0] }
  0xde   :  { %7226 = vst [vmem:[#allocation10_spill] sm:$0xff] %v5911_v23  ;;  %v325_v56 = vadd.f32 %v324_v40, %v5901_v12  ;;  %v4603_v24 = vor.u32 %v5325_v39, %v4602_v17 }
  0xdf   :  { %7227 = vst [vmem:[#allocation11_spill] sm:$0xff] %v5914_v42  ;;  %v373_v44 = vpop.f32.mrf.mxu3  ;;  %v425_v47 = vpop.f32.mrf.mxu0  ;;  %1548 = vmatpush.bf16.msrb.mxu2 %v4507_v16 }
  0xe0   :  { %v374_v45 = vadd.f32 %v373_v44, %v5907_v18  ;;  %v617_v49 = vmax.f32 %v325_v56, 0.0  ;;  %v474_v51 = vpop.f32.mrf.mxu1  ;;  %v426_v2 = vadd.f32 %v425_v47, %v5875_v58  ;;  %1597 = vmatpush.bf16.msrb.mxu3 %v4603_v24  ;;  %v284_v44 = vadd.f32 %v5818_v1, %v5778_v60  ;;  %v5255_v24 = vld [vmem:[#allocation2 + $0x7c] sm:$0xf] }
  0xe1   :  { %v475_v14 = vadd.f32 %v474_v51, %v5880_v33  ;;  %v639_v51 = vmax.f32 %v235_v32, 0.0 }
  0xe2   :  { %v618_v53 = vmax.f32 %v374_v45, 0.0  ;;  %v5922_v31 = vpack.c.bf16 %v617_v49, %v609_v48  ;;  %4249 = vmatmul.msk.bf16.gmra.mxu2 %vm190_vm0, %v5666_v20  ;;  %1460 = vmatmul.bf16.gmra.mxu0 %v5918_v52  ;;  %v627_v37 = vmax.f32 %v426_v2, 0.0  ;;  %v286_v45 = vadd.f32 %v5836_v29, %v5778_v60 }
  0xe3   :  { %1509 = vmatmul.bf16.gmra.mxu1 %v5920_v54  ;;  %v628_v47 = vmax.f32 %v475_v14, 0.0  ;;  %v640_v62 = vmax.f32 %v284_v44, 0.0  ;;  %v5279_v44 = vld [vmem:[#allocation2 + $0x13c] sm:$0xf] }
  0xe4   :  { %v5927_v5 = vpack.c.bf16 %v618_v53, %v610_v50  ;;  %4257 = vmatmul.msk.bf16.gmra.mxu3 %vm190_vm0, %v5666_v20  ;;  %v4439_v20 = vor.u32 %v5282_v13, %v4436_v57  ;;  %v647_v50 = vmax.f32 %v237_v36, 0.0  ;;  %v648_v0 = vmax.f32 %v286_v45, 0.0 }
  0xe5   :  { %v327_v15 = vpop.f32.mrf.mxu2 }
  0xe6   :  { %1693 = vmatpush.bf16.msrb.mxu1 %v4439_v20  ;;  %v328_v27 = vadd.f32 %v327_v15, %v5901_v12  ;;  %v5952_v17 = vpack.c.bf16 %v647_v50, %v639_v51  ;;  %v5954_v20 = vpack.c.bf16 %v648_v0, %v640_v62  ;;  %v5322_v51 = vld [vmem:[#allocation2 + $0x290] sm:$0xf0]  ;;  %v240_v0 = vadd.f32 %v5840_v35, %v5771_v59 }
  0xe7   :  { %v376_v19 = vpop.f32.mrf.mxu3  ;;  %v427_v26 = vpop.f32.mrf.mxu0 }
  0xe8   :  { %v428_v40 = vadd.f32 %v427_v26, %v5875_v58  ;;  %v476_v56 = vpop.f32.mrf.mxu1  ;;  %v377_v2 = vadd.f32 %v376_v19, %v5907_v18  ;;  %v625_v14 = vmax.f32 %v328_v27, 0.0  ;;  %v4328_v26 = vld [vmem:[#allocation2 + $0x84] sm:$0xf0] }
  0xe9   :  { %v477_v48 = vadd.f32 %v476_v56, %v5880_v33  ;;  %v5298_v56 = vld [vmem:[#allocation2 + $0x1d0] sm:$0xf0] }
  0xea   :  { %v635_v49 = vmax.f32 %v428_v40, 0.0  ;;  %v626_v15 = vmax.f32 %v377_v2, 0.0  ;;  %v4494_v40 = vld [vmem:[#allocation2 + $0x1c8] sm:$0xf]  ;;  %v242_v2 = vadd.f32 %v5858_v55, %v5771_v59 }
  0xeb   :  { %v636_v61 = vmax.f32 %v477_v48, 0.0  ;;  %v4495_v48 = vor.u32 %v5298_v56, %v4494_v40 }
  0xec   :  { %v5945_v53 = vpack.c.bf16 %v635_v49, %v627_v37  ;;  %v4331_v37 = vor.u32 %v5255_v24, %v4328_v26  ;;  %v4424_v49 = vld [vmem:[#allocation2 + $0x144] sm:$0xf0] }
  0xed   :  { %v329_v3 = vpop.f32.mrf.mxu2  ;;  %v5948_v1 = vpack.c.bf16 %v636_v61, %v628_v47  ;;  %v4590_v61 = vld [vmem:[#allocation2 + $0x288] sm:$0xf]  ;;  %v4427_v50 = vor.u32 %v5279_v44, %v4424_v49  ;;  %1549 = vmatpush.bf16.msrb.mxu2 %v4495_v48 }
  0xee   :  { %7228 = vst [vmem:[#allocation12_spill] sm:$0xff] %v5945_v53  ;;  %v330_v29 = vadd.f32 %v329_v3, %v5901_v12  ;;  %1645 = vmatpush.bf16.msrb.mxu0 %v4331_v37  ;;  %v4591_v27 = vor.u32 %v5322_v51, %v4590_v61 }
  0xef   :  { %7229 = vst [vmem:[#allocation13_spill] sm:$0xff] %v5948_v1  ;;  %v378_v7 = vpop.f32.mrf.mxu3  ;;  %v430_v13 = vpop.f32.mrf.mxu0  ;;  %1694 = vmatpush.bf16.msrb.mxu1 %v4427_v50  ;;  %v5252_v50 = vld [vmem:[#allocation2 + $0x64] sm:$0xf] }
  0xf0   :  { %v379_v8 = vadd.f32 %v378_v7, %v5907_v18  ;;  %v633_v16 = vmax.f32 %v330_v29, 0.0  ;;  %v479_v57 = vpop.f32.mrf.mxu1  ;;  %v431_v36 = vadd.f32 %v430_v13, %v5875_v58  ;;  %1598 = vmatpush.bf16.msrb.mxu3 %v4591_v27  ;;  %v291_v13 = vadd.f32 %v5864_v63, %v5778_v60  ;;  %v4316_v27 = vld [vmem:[#allocation2 + $0x6c] sm:$0xf0] }
  0xf1   :  { %v480_v45 = vadd.f32 %v479_v57, %v5880_v33 }
  0xf2   :  { %v634_v39 = vmax.f32 %v379_v8, 0.0  ;;  %4250 = vmatmul.msk.bf16.gmra.mxu2 %vm190_vm0, %v5684_v22  ;;  %1465 = vmatmul.bf16.gmra.mxu0 %v5952_v17  ;;  %v5959_v19 = vpack.c.bf16 %v633_v16, %v625_v14  ;;  %v643_v3 = vmax.f32 %v431_v36, 0.0  ;;  %v289_v8 = vadd.f32 %v5842_v38, %v5778_v60 }
  0xf3   :  { %1514 = vmatmul.bf16.gmra.mxu1 %v5954_v20  ;;  %v644_v14 = vmax.f32 %v480_v45, 0.0  ;;  %v664_v26 = vmax.f32 %v291_v13, 0.0 }
  0xf4   :  { %4258 = vmatmul.msk.bf16.gmra.mxu3 %vm190_vm0, %v5684_v22  ;;  %v5964_v32 = vpack.c.bf16 %v634_v39, %v626_v15  ;;  %v655_v15 = vmax.f32 %v240_v0, 0.0  ;;  %v663_v39 = vmax.f32 %v242_v2, 0.0  ;;  %v656_v24 = vmax.f32 %v289_v8, 0.0 }
  0xf5   :  { %v332_v47 = vpop.f32.mrf.mxu2  ;;  %v4319_v2 = vor.u32 %v5252_v50, %v4316_v27 }
  0xf6   :  { %v333_v59 = vadd.f32 %v332_v47, %v5901_v12  ;;  %v5986_v49 = vpack.c.bf16 %v663_v39, %v655_v15  ;;  %v5988_v51 = vpack.c.bf16 %v664_v26, %v656_v24 }
  0xf7   :  { %v381_v22 = vpop.f32.mrf.mxu3  ;;  %v432_v62 = vpop.f32.mrf.mxu0  ;;  %1646 = vmatpush.bf16.msrb.mxu0 %v4319_v2 }
  0xf8   :  { %v433_v29 = vadd.f32 %v432_v62, %v5875_v58  ;;  %v481_v7 = vpop.f32.mrf.mxu1  ;;  %v382_v36 = vadd.f32 %v381_v22, %v5907_v18  ;;  %v641_v44 = vmax.f32 %v333_v59, 0.0 }
  0xf9   :  { %v482_v16 = vadd.f32 %v481_v7, %v5880_v33  ;;  %v5276_v7 = vld [vmem:[#allocation2 + $0x124] sm:$0xf] }
  0xfa   :  { %v651_v57 = vmax.f32 %v433_v29, 0.0  ;;  %v642_v47 = vmax.f32 %v382_v36, 0.0  ;;  %v5295_v29 = vld [vmem:[#allocation2 + $0x1b8] sm:$0xf0] }
  0xfb   :  { %v652_v35 = vmax.f32 %v482_v16, 0.0  ;;  %v4412_v16 = vld [vmem:[#allocation2 + $0x12c] sm:$0xf0] }
  0xfc   :  { %v5979_v55 = vpack.c.bf16 %v651_v57, %v643_v3  ;;  %v4482_v3 = vld [vmem:[#allocation2 + $0x1b0] sm:$0xf]  ;;  %v4415_v15 = vor.u32 %v5276_v7, %v4412_v16  ;;  %v4304_v16 = vld [vmem:[#allocation2 + $0x54] sm:$0xf0] }
  0xfd   :  { %v334_v37 = vpop.f32.mrf.mxu2  ;;  %v5982_v38 = vpack.c.bf16 %v652_v35, %v644_v14  ;;  %v4483_v14 = vor.u32 %v5295_v29, %v4482_v3  ;;  %v4578_v57 = vld [vmem:[#allocation2 + $0x270] sm:$0xf]  ;;  %v5319_v35 = vld [vmem:[#allocation2 + $0x278] sm:$0xf0] }
  0xfe   :  { %7230 = vst [vmem:[#allocation14_spill] sm:$0xff] %v5979_v55  ;;  %v335_v60 = vadd.f32 %v334_v37, %v5901_v12  ;;  %v4579_v39 = vor.u32 %v5319_v35, %v4578_v57  ;;  %1695 = vmatpush.bf16.msrb.mxu1 %v4415_v15  ;;  %v4470_v15 = vld [vmem:[#allocation2 + $0x198] sm:$0xf] }
  0xff   :  { %7231 = vst [vmem:[#allocation15_spill] sm:$0xff] %v5982_v38  ;;  %v383_v63 = vpop.f32.mrf.mxu3  ;;  %v435_v56 = vpop.f32.mrf.mxu0  ;;  %1550 = vmatpush.bf16.msrb.mxu2 %v4483_v14  ;;  %v5249_v14 = vld [vmem:[#allocation2 + $0x4c] sm:$0xf] }
 0x100   :  { %v384_v40 = vadd.f32 %v383_v63, %v5907_v18  ;;  %v649_v45 = vmax.f32 %v335_v60, 0.0  ;;  %v484_v48 = vpop.f32.mrf.mxu1  ;;  %v436_v0 = vadd.f32 %v435_v56, %v5875_v58  ;;  %1599 = vmatpush.bf16.msrb.mxu3 %v4579_v39  ;;  %v5292_v39 = vld [vmem:[#allocation2 + $0x1a0] sm:$0xf0] }
 0x101   :  { %v485_v8 = vadd.f32 %v484_v48, %v5880_v33 }
 0x102   :  { %v650_v61 = vmax.f32 %v384_v40, 0.0  ;;  %4251 = vmatmul.msk.bf16.gmra.mxu2 %vm190_vm0, %v5714_v30  ;;  %1470 = vmatmul.bf16.gmra.mxu0 %v5986_v49  ;;  %v5993_v22 = vpack.c.bf16 %v649_v45, %v641_v44  ;;  %v659_v24 = vmax.f32 %v436_v0, 0.0 }
 0x103   :  { %1519 = vmatmul.bf16.gmra.mxu1 %v5988_v51  ;;  %v660_v37 = vmax.f32 %v485_v8, 0.0 }
 0x104   :  { %4259 = vmatmul.msk.bf16.gmra.mxu3 %vm190_vm0, %v5714_v30  ;;  %v5998_v62 = vpack.c.bf16 %v650_v61, %v642_v47 }
 0x105   :  { %v337_v13 = vpop.f32.mrf.mxu2 }
 0x106   :  { %v338_v56 = vadd.f32 %v337_v13, %v5901_v12 }
 0x107   :  { %v386_v30 = vpop.f32.mrf.mxu3  ;;  %v437_v59 = vpop.f32.mrf.mxu0 }
 0x108   :  { %v438_v26 = vadd.f32 %v437_v59, %v5875_v58  ;;  %v486_v36 = vpop.f32.mrf.mxu1  ;;  %v387_v45 = vadd.f32 %v386_v30, %v5907_v18  ;;  %v657_v2 = vmax.f32 %v338_v56, 0.0  ;;  %v4307_v30 = vor.u32 %v5249_v14, %v4304_v16  ;;  %v5273_v59 = vld [vmem:[#allocation2 + $0x10c] sm:$0xf] }
 0x109   :  { %v487_v60 = vadd.f32 %v486_v36, %v5880_v33  ;;  %v4471_v36 = vor.u32 %v5292_v39, %v4470_v15 }
 0x10a   :  { %v667_v63 = vmax.f32 %v438_v26, 0.0  ;;  %v658_v7 = vmax.f32 %v387_v45, 0.0  ;;  %1647 = vmatpush.bf16.msrb.mxu0 %v4307_v30 }
 0x10b   :  { %v668_v40 = vmax.f32 %v487_v60, 0.0  ;;  %v4566_v60 = vld [vmem:[#allocation2 + $0x258] sm:$0xf]  ;;  %1551 = vmatpush.bf16.msrb.mxu2 %v4471_v36 }
 0x10c   :  { %v6005_v44 = vpack.c.bf16 %v667_v63, %v659_v24  ;;  %v5316_v63 = vld [vmem:[#allocation2 + $0x260] sm:$0xf0] }
 0x10d   :  { %v339_v48 = vpop.f32.mrf.mxu2  ;;  %v6008_v47 = vpack.c.bf16 %v668_v40, %v660_v37  ;;  %v4400_v37 = vld [vmem:[#allocation2 + $0x114] sm:$0xf0]  ;;  %v4567_v56 = vor.u32 %v5316_v63, %v4566_v60  ;;  %v5246_v63 = vld [vmem:[#allocation2 + $0x34] sm:$0xf] }
 0x10e   :  { %7232 = vst [vmem:[#allocation16_spill] sm:$0xff] %v6005_v44  ;;  %v340_v61 = vadd.f32 %v339_v48, %v5901_v12  ;;  %v4403_v40 = vor.u32 %v5273_v59, %v4400_v37 }
 0x10f   :  { %7233 = vst [vmem:[#allocation17_spill] sm:$0xff] %v6008_v47  ;;  %v388_v50 = vpop.f32.mrf.mxu3  ;;  %v440_v0 = vpop.f32.mrf.mxu0  ;;  %1600 = vmatpush.bf16.msrb.mxu3 %v4567_v56 }
 0x110   :  { %v389_v27 = vadd.f32 %v388_v50, %v5907_v18  ;;  %v665_v3 = vmax.f32 %v340_v61, 0.0  ;;  %v489_v29 = vpop.f32.mrf.mxu1  ;;  %v441_v35 = vadd.f32 %v440_v0, %v5875_v58  ;;  %1696 = vmatpush.bf16.msrb.mxu1 %v4403_v40 }
 0x111   :  { %v490_v24 = vadd.f32 %v489_v29, %v5880_v33 }
 0x112   :  { %v666_v8 = vmax.f32 %v389_v27, 0.0  ;;  %4252 = vmatmul.msk.bf16.gmra.mxu2 %vm190_vm0, %v5629_v6  ;;  %1475 = vmatmul.bf16.gmra.mxu0 %v5800_v25  ;;  %v6015_v13 = vpack.c.bf16 %v665_v3, %v657_v2  ;;  %v675_v48 = vmax.f32 %v441_v35, 0.0 }
 0x113   :  { %1524 = vmatmul.bf16.gmra.mxu1 %v5806_v28  ;;  %v676_v27 = vmax.f32 %v490_v24, 0.0 }
 0x114   :  { %4260 = vmatmul.msk.bf16.gmra.mxu3 %vm190_vm0, %v5629_v6  ;;  %v6020_v57 = vpack.c.bf16 %v666_v8, %v658_v7 }
 0x115   :  { %v342_v26 = vpop.f32.mrf.mxu2 }
 0x116   :  { %v343_v29 = vadd.f32 %v342_v26, %v5901_v12 }
 0x117   :  { %v391_v6 = vpop.f32.mrf.mxu3  ;;  %v442_v45 = vpop.f32.mrf.mxu0 }
 0x118   :  { %v443_v61 = vadd.f32 %v442_v45, %v5875_v58  ;;  %v491_v50 = vpop.f32.mrf.mxu1  ;;  %v392_v8 = vadd.f32 %v391_v6, %v5907_v18  ;;  %v673_v59 = vmax.f32 %v343_v29, 0.0  ;;  %v4292_v6 = vld [vmem:[#allocation2 + $0x3c] sm:$0xf0] }
 0x119   :  { %v492_v0 = vadd.f32 %v491_v50, %v5880_v33  ;;  %v4295_v45 = vor.u32 %v5246_v63, %v4292_v6  ;;  %v5270_v50 = vld [vmem:[#allocation2 + $0xf4] sm:$0xf]  ;;  %v4554_v29 = vld [vmem:[#allocation2 + $0x240] sm:$0xf] }
 0x11a   :  { %v683_v2 = vmax.f32 %v443_v61, 0.0  ;;  %v674_v37 = vmax.f32 %v392_v8, 0.0  ;;  %v5289_v61 = vld [vmem:[#allocation2 + $0x188] sm:$0xf0] }
 0x11b   :  { %v684_v3 = vmax.f32 %v492_v0, 0.0  ;;  %v5313_v8 = vld [vmem:[#allocation2 + $0x248] sm:$0xf0]  ;;  %1648 = vmatpush.bf16.msrb.mxu0 %v4295_v45 }
 0x11c   :  { %v6027_v7 = vpack.c.bf16 %v683_v2, %v675_v48  ;;  %v4458_v48 = vld [vmem:[#allocation2 + $0x180] sm:$0xf] }
 0x11d   :  { %v344_v14 = vpop.f32.mrf.mxu2  ;;  %v6030_v16 = vpack.c.bf16 %v684_v3, %v676_v27  ;;  %v4459_v2 = vor.u32 %v5289_v61, %v4458_v48  ;;  %v4388_v3 = vld [vmem:[#allocation2 + $0xfc] sm:$0xf0]  ;;  %v5267_v48 = vld [vmem:[#allocation2 + $0xdc] sm:$0xf]  ;;  %v4376_v61 = vld [vmem:[#allocation2 + $0xe4] sm:$0xf0] }
 0x11e   :  { %7234 = vst [vmem:[#allocation18_spill] sm:$0xff] %v6027_v7  ;;  %v345_v35 = vadd.f32 %v344_v14, %v5901_v12  ;;  %v4391_v14 = vor.u32 %v5270_v50, %v4388_v3  ;;  %v4379_v50 = vor.u32 %v5267_v48, %v4376_v61 }
 0x11f   :  { %7235 = vst [vmem:[#allocation19_spill] sm:$0xff] %v6030_v16  ;;  %v393_v30 = vpop.f32.mrf.mxu3  ;;  %v445_v39 = vpop.f32.mrf.mxu0  ;;  %1552 = vmatpush.bf16.msrb.mxu2 %v4459_v2 }
 0x120   :  { %v394_v15 = vadd.f32 %v393_v30, %v5907_v18  ;;  %v681_v24 = vmax.f32 %v345_v35, 0.0  ;;  %v494_v36 = vpop.f32.mrf.mxu1  ;;  %v446_v56 = vadd.f32 %v445_v39, %v5875_v58  ;;  %v4555_v35 = vor.u32 %v5313_v8, %v4554_v29  ;;  %1697 = vmatpush.bf16.msrb.mxu1 %v4391_v14  ;;  %v4268_v8 = vld [vmem:[#allocation2 + $0xc] sm:$0xf0]  ;;  %v5264_v14 = vld [vmem:[#allocation2 + $0xc4] sm:$0xf] }
 0x121   :  { %v495_v27 = vadd.f32 %v494_v36, %v5880_v33 }
 0x122   :  { %v682_v60 = vmax.f32 %v394_v15, 0.0  ;;  %4253 = vmatmul.msk.bf16.gmra.mxu2 %vm190_vm0, %v5671_v21  ;;  %1480 = vmatmul.bf16.gmra.mxu0 %v5824_v4  ;;  %v6037_v26 = vpack.c.bf16 %v681_v24, %v673_v59  ;;  %v691_v15 = vmax.f32 %v446_v56, 0.0 }
 0x123   :  { %1529 = vmatmul.bf16.gmra.mxu1 %v5830_v11  ;;  %1601 = vmatpush.bf16.msrb.mxu3 %v4555_v35  ;;  %v692_v24 = vmax.f32 %v495_v27, 0.0  ;;  %v5240_v27 = vld [vmem:[#allocation2 + $0x4] sm:$0xf] }
 0x124   :  { %4261 = vmatmul.msk.bf16.gmra.mxu3 %vm190_vm0, %v5671_v21  ;;  %v6042_v40 = vpack.c.bf16 %v682_v60, %v674_v37  ;;  %v5243_v37 = vld [vmem:[#allocation2 + $0x1c] sm:$0xf]  ;;  %v4280_v60 = vld [vmem:[#allocation2 + $0x24] sm:$0xf0]  ;;  %1698 = vmatpush.bf16.msrb.mxu1 %v4379_v50  ;;  %v4544_v50 = vld [vmem:[#allocation2 + $0x234] sm:$0xf0] }
 0x125   :  { %v347_v0 = vpop.f32.mrf.mxu2  ;;  %v4283_v6 = vor.u32 %v5243_v37, %v4280_v60 }
 0x126   :  { %v348_v3 = vadd.f32 %v347_v0, %v5901_v12 }
 0x127   :  { %v396_v21 = vpop.f32.mrf.mxu3  ;;  %v447_v30 = vpop.f32.mrf.mxu0  ;;  %1649 = vmatpush.bf16.msrb.mxu0 %v4283_v6 }
 0x128   :  { %v448_v39 = vadd.f32 %v447_v30, %v5875_v58  ;;  %v496_v59 = vpop.f32.mrf.mxu1  ;;  %v397_v2 = vadd.f32 %v396_v21, %v5907_v18 }
 0x129   :  { %v497_v36 = vadd.f32 %v496_v59, %v5880_v33  ;;  %v4271_v59 = vor.u32 %v5240_v27, %v4268_v8  ;;  %v5333_v27 = vld [vmem:[#allocation2 + $0x2ec] sm:$0xf]  ;;  %v4640_v8 = vld [vmem:[#allocation2 + $0x2f4] sm:$0xf0] }
 0x12a   :  { %v699_v63 = vmax.f32 %v448_v39, 0.0  ;;  %v690_v21 = vmax.f32 %v397_v2, 0.0 }
 0x12b   :  { %v700_v45 = vmax.f32 %v497_v36, 0.0  ;;  %v4364_v36 = vld [vmem:[#allocation2 + $0xcc] sm:$0xf0]  ;;  %1650 = vmatpush.bf16.msrb.mxu0 %v4271_v59 }
 0x12c   :  { %v6049_v56 = vpack.c.bf16 %v699_v63, %v691_v15  ;;  %v4367_v60 = vor.u32 %v5264_v14, %v4364_v36  ;;  %v689_v15 = vmax.f32 %v348_v3, 0.0 }
 0x12d   :  { %v349_v29 = vpop.f32.mrf.mxu2  ;;  %v6052_v35 = vpack.c.bf16 %v700_v45, %v692_v24  ;;  %v5487_v24 = vld [vmem:[%s7178_s0 + $0x30] sm:$0xff]  ;;  %v5309_v45 = vld [vmem:[#allocation2 + $0x22c] sm:$0xf] }
 0x12e   :  { %7236 = vst [vmem:[#allocation20_spill] sm:$0xff] %v6049_v56  ;;  %v350_v30 = vadd.f32 %v349_v29, %v5901_v12  ;;  %1699 = vmatpush.bf16.msrb.mxu1 %v4367_v60  ;;  %v4547_v29 = vor.u32 %v5309_v45, %v4544_v50 }
 0x12f   :  { %7237 = vst [vmem:[#allocation21_spill] sm:$0xff] %v6052_v35  ;;  %v398_v39 = vpop.f32.mrf.mxu3  ;;  %v450_v0 = vpop.f32.mrf.mxu0 }
 0x130   :  { %v399_v37 = vadd.f32 %v398_v39, %v5907_v18  ;;  %v697_v63 = vmax.f32 %v350_v30, 0.0  ;;  %v499_v6 = vpop.f32.mrf.mxu1  ;;  %v451_v2 = vadd.f32 %v450_v0, %v5875_v58  ;;  %v4643_v39 = vor.u32 %v5333_v27, %v4640_v8  ;;  %1741 = vmatpush.bf16.msra.mxu2 %v4547_v29 }
 0x131   :  { %v500_v14 = vadd.f32 %v499_v6, %v5880_v33 }
 0x132   :  { %v698_v48 = vmax.f32 %v399_v37, 0.0  ;;  %4254 = vmatmul.msk.bf16.gmra.mxu2 %vm190_vm0, %v5487_v24  ;;  %1485 = vmatmul.bf16.gmra.mxu0 %v5848_v43  ;;  %v6061_v61 = vpack.c.bf16 %v697_v63, %v689_v15  ;;  %v707_v37 = vmax.f32 %v451_v2, 0.0 }
 0x133   :  { %1534 = vmatmul.bf16.gmra.mxu1 %v5854_v46  ;;  %1790 = vmatpush.bf16.msra.mxu3 %v4643_v39  ;;  %v708_v63 = vmax.f32 %v500_v14, 0.0 }
 0x134   :  { %4262 = vmatmul.msk.bf16.gmra.mxu3 %vm190_vm0, %v5487_v24  ;;  %v6065_v3 = vpack.c.bf16 %v698_v48, %v690_v21 }
 0x135   :  { %v352_v30 = vpop.f32.mrf.mxu2 }
 0x136   :  { %v353_v24 = vadd.f32 %v352_v30, %v5901_v12  ;;  %v5488_v30 = vld [vmem:[%s7178_s0 + $0x38] sm:$0xff] }
 0x137   :  { %v401_v59 = vpop.f32.mrf.mxu3  ;;  %v452_v36 = vpop.f32.mrf.mxu0 }
 0x138   :  { %v453_v60 = vadd.f32 %v452_v36, %v5875_v58  ;;  %v501_v15 = vpop.f32.mrf.mxu1  ;;  %v402_v6 = vadd.f32 %v401_v59, %v5907_v18  ;;  %v705_v14 = vmax.f32 %v353_v24, 0.0 }
 0x139   :  { %v502_v21 = vadd.f32 %v501_v15, %v5880_v33 }
 0x13a   :  { %v715_v48 = vmax.f32 %v453_v60, 0.0  ;;  %v706_v60 = vmax.f32 %v402_v6, 0.0  ;;  %v5330_v6 = vld [vmem:[#allocation2 + $0x2d4] sm:$0xf] }
 0x13b   :  { %v716_v0 = vmax.f32 %v502_v21, 0.0 }
 0x13c   :  { %v6072_v45 = vpack.c.bf16 %v715_v48, %v707_v37  ;;  %v5306_v37 = vld [vmem:[#allocation2 + $0x214] sm:$0xf] }
 0x13d   :  { %v354_v50 = vpop.f32.mrf.mxu2  ;;  %v6075_v27 = vpack.c.bf16 %v716_v0, %v708_v63  ;;  %v4532_v63 = vld [vmem:[#allocation2 + $0x21c] sm:$0xf0] }
 0x13e   :  { %7238 = vst [vmem:[#allocation22_spill] sm:$0xff] %v6072_v45  ;;  %v355_v29 = vadd.f32 %v354_v50, %v5901_v12  ;;  %v4535_v24 = vor.u32 %v5306_v37, %v4532_v63  ;;  %v4628_v50 = vld [vmem:[#allocation2 + $0x2dc] sm:$0xf0] }
 0x13f   :  { %7239 = vst [vmem:[#allocation23_spill] sm:$0xff] %v6075_v27  ;;  %v403_v2 = vpop.f32.mrf.mxu3  ;;  %v455_v39 = vpop.f32.mrf.mxu0 }
 0x140   :  { %v404_v8 = vadd.f32 %v403_v2, %v5907_v18  ;;  %v713_v36 = vmax.f32 %v355_v29, 0.0  ;;  %v504_v15 = vpop.f32.mrf.mxu1  ;;  %v456_v0 = vadd.f32 %v455_v39, %v5875_v58  ;;  %1742 = vmatpush.bf16.msra.mxu2 %v4535_v24  ;;  %v6097_v39 = vld [vmem:[%s7182_s4] sm:$0x7] }
 0x141   :  { %v505_v29 = vadd.f32 %v504_v15, %v5880_v33  ;;  %v6101_v63 = vperm.slane %v6097_v39, 0 }
 0x142   :  { %v714_v21 = vmax.f32 %v404_v8, 0.0  ;;  %4255 = vmatmul.msk.bf16.gmra.mxu2 %vm190_vm0, %v5488_v30  ;;  %1490 = vmatmul.bf16.gmra.mxu0 %v5885_v34  ;;  %v6084_v59 = vpack.c.bf16 %v713_v36, %v705_v14  ;;  %v4631_v8 = vor.u32 %v5330_v6, %v4628_v50  ;;  %v723_v36 = vmax.f32 %v456_v0, 0.0 }
 0x143   :  { %1539 = vmatmul.bf16.gmra.mxu1 %v5890_v41  ;;  %v724_v35 = vmax.f32 %v505_v29, 0.0 }
 0x144   :  { %4263 = vmatmul.msk.bf16.gmra.mxu3 %vm190_vm0, %v5488_v30  ;;  %v6088_v48 = vpack.c.bf16 %v714_v21, %v706_v60 }
 0x145   :  { %v357_v2 = vpop.f32.mrf.mxu2  ;;  %1791 = vmatpush.bf16.msra.mxu3 %v4631_v8 }
 0x146   :  { %v358_v37 = vadd.f32 %v357_v2, %v5901_v12 }
 0x147   :  { %v406_v27 = vpop.f32.mrf.mxu3  ;;  %v457_v14 = vpop.f32.mrf.mxu0 }
 0x148   :  { %v458_v30 = vadd.f32 %v457_v14, %v5875_v58  ;;  %v506_v45 = vpop.f32.mrf.mxu1  ;;  %v407_v58 = vadd.f32 %v406_v27, %v5907_v18  ;;  %v721_v8 = vmax.f32 %v358_v37, 0.0  ;;  %v5263_v27 = vld [vmem:[#allocation2 + $0xb8] sm:$0xf0]  ;;  %v4454_v37 = vld [vmem:[#allocation2 + $0x170] sm:$0xf] }
 0x149   :  { %v507_v60 = vadd.f32 %v506_v45, %v5880_v33 }
 0x14a   :  { %v731_v21 = vmax.f32 %v458_v30, 0.0 }
 0x14b   :  { %v732_v15 = vmax.f32 %v507_v60, 0.0  ;;  %v722_v60 = vmax.f32 %v407_v58, 0.0 }
 0x14c   :  { %v6103_v24 = vpack.c.bf16 %v731_v21, %v723_v36  ;;  %v5303_v21 = vld [vmem:[#allocation2 + $0x1fc] sm:$0xf] }
 0x14d   :  { %v359_v0 = vpop.f32.mrf.mxu2  ;;  %v6106_v6 = vpack.c.bf16 %v732_v15, %v724_v35  ;;  %v4358_v35 = vld [vmem:[#allocation2 + $0xb0] sm:$0xf]  ;;  %v4520_v15 = vld [vmem:[#allocation2 + $0x204] sm:$0xf0] }
 0x14e   :  { %7240 = vst [vmem:[#allocation24_spill] sm:$0xff] %v6103_v24  ;;  %v360_v33 = vadd.f32 %v359_v0, %v5901_v12  ;;  %v4523_v0 = vor.u32 %v5303_v21, %v4520_v15 }
 0x14f   :  { %7241 = vst [vmem:[#allocation25_spill] sm:$0xff] %v6106_v6  ;;  %v408_v45 = vpop.f32.mrf.mxu3  ;;  %v1456_v29 = vpop.f32.mrf.mxu0 }
 0x150   :  { %v409_v50 = vadd.f32 %v408_v45, %v5907_v18  ;;  %v729_v14 = vmax.f32 %v360_v33, 0.0  ;;  %v1457_v2 = vadd.f32 %v1456_v29, %v6101_v63  ;;  %v1505_v30 = vpop.f32.mrf.mxu1  ;;  %v4359_v18 = vor.u32 %v5263_v27, %v4358_v35  ;;  %v5287_v33 = vld [vmem:[#allocation2 + $0x178] sm:$0xf0]  ;;  %1743 = vmatpush.bf16.msra.mxu2 %v4523_v0  ;;  %v5489_v35 = vld [vmem:[%s7180_s2] sm:$0xff] }
 0x151   :  { %v5327_v45 = vld [vmem:[#allocation2 + $0x2bc] sm:$0xf]  ;;  %v6124_v27 = vperm.slane %v5489_v35, 6  ;;  %v6127_v21 = vperm.slane %v5489_v35, 7 }
 0x152   :  { %v730_v56 = vmax.f32 %v409_v50, 0.0  ;;  %v6111_v36 = vadd.f32 %v1505_v30, %v1457_v2  ;;  %1553 = vmatmul.bf16.vlgmr.msrb.gmra.mxu2 %v5922_v31  ;;  %1651 = vmatmul.bf16.vlgmr.msrb.gmra.mxu0 %v5872_v9  ;;  %v6115_v12 = vpack.c.bf16 %v729_v14, %v721_v8  ;;  %v4616_v50 = vld [vmem:[#allocation2 + $0x2c4] sm:$0xf0]  ;;  %v4455_v2 = vor.u32 %v5287_v33, %v4454_v37 }
 0x153   :  { %1700 = vmatmul.bf16.vlgmr.msrb.gmra.mxu1 %v5877_v10  ;;  %1839 = vmatpush.bf16.msra.mxu0 %v4359_v18  ;;  %v4619_v30 = vor.u32 %v5327_v45, %v4616_v50 }
 0x154   :  { %1602 = vmatmul.bf16.vlgmr.msrb.gmra.mxu3 %v5927_v5  ;;  %v6119_v58 = vpack.c.bf16 %v730_v56, %v722_v60  ;;  %1888 = vmatpush.bf16.msra.mxu1 %v4455_v2 }
 0x155   :  { %v518_v29 = vpop.f32.mrf.mxu2  ;;  %1792 = vmatpush.bf16.msra.mxu3 %v4619_v30 }
 0x156   :  { %v519_v18 = vadd.f32 %v518_v29, %v6124_v27  ;;  %v4346_v29 = vld [vmem:[#allocation2 + $0x98] sm:$0xf] }
 0x157   :  { %v567_v8 = vpop.f32.mrf.mxu3  ;;  %v1458_v14 = vpop.f32.mrf.mxu0 }
 0x158   :  { %v1459_v56 = vadd.f32 %v1458_v14, %v6101_v63  ;;  %v1507_v60 = vpop.f32.mrf.mxu1  ;;  %v568_v37 = vadd.f32 %v567_v8, %v6127_v21  ;;  %v613_v30 = vmax.f32 %v519_v18, 0.0  ;;  %v5260_v8 = vld [vmem:[#allocation2 + $0xa0] sm:$0xf0] }
 0x159   :  { %v4347_v18 = vor.u32 %v5260_v8, %v4346_v29 }
 0x15a   :  { %v6129_v15 = vadd.f32 %v1507_v60, %v1459_v56  ;;  %v614_v35 = vmax.f32 %v568_v37, 0.0  ;;  %v4508_v37 = vld [vmem:[#allocation2 + $0x1ec] sm:$0xf0] }
 0x15b   :  { %1840 = vmatpush.bf16.msra.mxu0 %v4347_v18 }
 0x15d   :  { %v520_v0 = vpop.f32.mrf.mxu2 }
 0x15e   :  { %v521_v33 = vadd.f32 %v520_v0, %v6124_v27 }
 0x15f   :  { %v569_v45 = vpop.f32.mrf.mxu3  ;;  %v1461_v2 = vpop.f32.mrf.mxu0 }
 0x160   :  { %v570_v50 = vadd.f32 %v569_v45, %v6127_v21  ;;  %v621_v6 = vmax.f32 %v521_v33, 0.0  ;;  %v1462_v14 = vadd.f32 %v1461_v2, %v6101_v63  ;;  %v1510_v24 = vpop.f32.mrf.mxu1  ;;  %v5300_v33 = vld [vmem:[#allocation2 + $0x1e4] sm:$0xf]  ;;  %v4442_v45 = vld [vmem:[#allocation2 + $0x158] sm:$0xf] }
 0x161   :  { %v4604_v2 = vld [vmem:[#allocation2 + $0x2ac] sm:$0xf0] }
 0x162   :  { %v622_v16 = vmax.f32 %v570_v50, 0.0  ;;  %v6136_v56 = vpack.c.bf16 %v621_v6, %v613_v30  ;;  %v6138_v60 = vadd.f32 %v1510_v24, %v1462_v14  ;;  %1558 = vmatmul.bf16.gmra.mxu2 %v5959_v19  ;;  %1656 = vmatmul.bf16.gmra.mxu0 %v5918_v52  ;;  %v4511_v6 = vor.u32 %v5300_v33, %v4508_v37  ;;  %v5284_v50 = vld [vmem:[#allocation2 + $0x160] sm:$0xf0] }
 0x163   :  { %1705 = vmatmul.bf16.gmra.mxu1 %v5920_v54  ;;  %v5324_v24 = vld [vmem:[#allocation2 + $0x2a4] sm:$0xf]  ;;  %v4443_v14 = vor.u32 %v5284_v50, %v4442_v45 }
 0x164   :  { %7242 = vst [vmem:[#allocation26_spill] sm:$0xff] %v6136_v56  ;;  %v6142_v0 = vpack.c.bf16 %v622_v16, %v614_v35  ;;  %1607 = vmatmul.bf16.gmra.mxu3 %v5964_v32  ;;  %v4607_v56 = vor.u32 %v5324_v24, %v4604_v2  ;;  %1744 = vmatpush.bf16.msra.mxu2 %v4511_v6 }
 0x165   :  { %v523_v30 = vpop.f32.mrf.mxu2  ;;  %1889 = vmatpush.bf16.msra.mxu1 %v4443_v14 }
 0x166   :  { %7243 = vst [vmem:[#allocation27_spill] sm:$0xff] %v6142_v0  ;;  %1793 = vmatpush.bf16.msra.mxu3 %v4607_v56  ;;  %v524_v8 = vadd.f32 %v523_v30, %v6124_v27  ;;  %v5257_v30 = vld [vmem:[#allocation2 + $0x88] sm:$0xf0] }
 0x167   :  { %v572_v7 = vpop.f32.mrf.mxu3  ;;  %v1463_v16 = vpop.f32.mrf.mxu0 }
 0x168   :  { %v1464_v35 = vadd.f32 %v1463_v16, %v6101_v63  ;;  %v1512_v0 = vpop.f32.mrf.mxu1  ;;  %v573_v33 = vadd.f32 %v572_v7, %v6127_v21  ;;  %v629_v6 = vmax.f32 %v524_v8, 0.0  ;;  %v4334_v7 = vld [vmem:[#allocation2 + $0x80] sm:$0xf]  ;;  %v5297_v8 = vld [vmem:[#allocation2 + $0x1cc] sm:$0xf] }
 0x16a   :  { %v6147_v29 = vadd.f32 %v1512_v0, %v1464_v35  ;;  %v630_v14 = vmax.f32 %v573_v33, 0.0 }
 0x16d   :  { %v525_v37 = vpop.f32.mrf.mxu2 }
 0x16e   :  { %v526_v47 = vadd.f32 %v525_v37, %v6124_v27  ;;  %v4496_v37 = vld [vmem:[#allocation2 + $0x1d4] sm:$0xf0] }
 0x16f   :  { %v574_v18 = vpop.f32.mrf.mxu3  ;;  %v1466_v50 = vpop.f32.mrf.mxu0 }
 0x170   :  { %v575_v45 = vadd.f32 %v574_v18, %v6127_v21  ;;  %v637_v24 = vmax.f32 %v526_v47, 0.0  ;;  %v1467_v56 = vadd.f32 %v1466_v50, %v6101_v63  ;;  %v1515_v2 = vpop.f32.mrf.mxu1  ;;  %v4335_v47 = vor.u32 %v5257_v30, %v4334_v7  ;;  %v4430_v18 = vld [vmem:[#allocation2 + $0x140] sm:$0xf]  ;;  %v5281_v50 = vld [vmem:[#allocation2 + $0x148] sm:$0xf0] }
 0x171   :  { %v4431_v38 = vor.u32 %v5281_v50, %v4430_v18 }
 0x172   :  { %v638_v16 = vmax.f32 %v575_v45, 0.0  ;;  %v6154_v0 = vadd.f32 %v1515_v2, %v1467_v56  ;;  %1563 = vmatmul.bf16.gmra.mxu2 %v5993_v22  ;;  %1661 = vmatmul.bf16.gmra.mxu0 %v5952_v17  ;;  %v6158_v35 = vpack.c.bf16 %v637_v24, %v629_v6  ;;  %v4499_v45 = vor.u32 %v5297_v8, %v4496_v37  ;;  %v5321_v56 = vld [vmem:[#allocation2 + $0x28c] sm:$0xf]  ;;  %v4592_v2 = vld [vmem:[#allocation2 + $0x294] sm:$0xf0] }
 0x173   :  { %1710 = vmatmul.bf16.gmra.mxu1 %v5954_v20  ;;  %1841 = vmatpush.bf16.msra.mxu0 %v4335_v47  ;;  %v4595_v55 = vor.u32 %v5321_v56, %v4592_v2 }
 0x174   :  { %7244 = vst [vmem:[#allocation28_spill] sm:$0xff] %v6158_v35  ;;  %1612 = vmatmul.bf16.gmra.mxu3 %v5998_v62  ;;  %v6162_v33 = vpack.c.bf16 %v638_v16, %v630_v14  ;;  %1745 = vmatpush.bf16.msra.mxu2 %v4499_v45 }
 0x175   :  { %v528_v44 = vpop.f32.mrf.mxu2  ;;  %1890 = vmatpush.bf16.msra.mxu1 %v4431_v38  ;;  %1794 = vmatpush.bf16.msra.mxu3 %v4595_v55 }
 0x176   :  { %7245 = vst [vmem:[#allocation29_spill] sm:$0xff] %v6162_v33  ;;  %v529_v14 = vadd.f32 %v528_v44, %v6124_v27  ;;  %v4322_v44 = vld [vmem:[#allocation2 + $0x68] sm:$0xf] }
 0x177   :  { %v577_v6 = vpop.f32.mrf.mxu3  ;;  %v1468_v24 = vpop.f32.mrf.mxu0 }
 0x178   :  { %v1469_v7 = vadd.f32 %v1468_v24, %v6101_v63  ;;  %v1517_v30 = vpop.f32.mrf.mxu1  ;;  %v578_v16 = vadd.f32 %v577_v6, %v6127_v21  ;;  %v645_v45 = vmax.f32 %v529_v14, 0.0  ;;  %v5254_v6 = vld [vmem:[#allocation2 + $0x70] sm:$0xf0] }
 0x179   :  { %v4323_v14 = vor.u32 %v5254_v6, %v4322_v44 }
 0x17a   :  { %v6165_v35 = vadd.f32 %v1517_v30, %v1469_v7  ;;  %v646_v2 = vmax.f32 %v578_v16, 0.0 }
 0x17b   :  { %1842 = vmatpush.bf16.msra.mxu0 %v4323_v14 }
 0x17d   :  { %v530_v8 = vpop.f32.mrf.mxu2 }
 0x17e   :  { %v531_v37 = vadd.f32 %v530_v8, %v6124_v27  ;;  %v5294_v8 = vld [vmem:[#allocation2 + $0x1b4] sm:$0xf] }
 0x17f   :  { %v579_v47 = vpop.f32.mrf.mxu3  ;;  %v1471_v50 = vpop.f32.mrf.mxu0 }
 0x180   :  { %v580_v18 = vadd.f32 %v579_v47, %v6127_v21  ;;  %v653_v56 = vmax.f32 %v531_v37, 0.0  ;;  %v1472_v55 = vadd.f32 %v1471_v50, %v6101_v63  ;;  %v1520_v38 = vpop.f32.mrf.mxu1  ;;  %v4484_v37 = vld [vmem:[#allocation2 + $0x1bc] sm:$0xf0]  ;;  %v4418_v47 = vld [vmem:[#allocation2 + $0x128] sm:$0xf] }
 0x181   :  { %v5278_v50 = vld [vmem:[#allocation2 + $0x130] sm:$0xf0] }
 0x182   :  { %v654_v24 = vmax.f32 %v580_v18, 0.0  ;;  %v6172_v7 = vadd.f32 %v1520_v38, %v1472_v55  ;;  %1568 = vmatmul.bf16.gmra.mxu2 %v6015_v13  ;;  %1666 = vmatmul.bf16.gmra.mxu0 %v5986_v49  ;;  %v6176_v30 = vpack.c.bf16 %v653_v56, %v645_v45  ;;  %v4487_v18 = vor.u32 %v5294_v8, %v4484_v37  ;;  %v5318_v55 = vld [vmem:[#allocation2 + $0x274] sm:$0xf]  ;;  %v4580_v38 = vld [vmem:[#allocation2 + $0x27c] sm:$0xf0] }
 0x183   :  { %1715 = vmatmul.bf16.gmra.mxu1 %v5988_v51  ;;  %v4419_v1 = vor.u32 %v5278_v50, %v4418_v47  ;;  %v4583_v53 = vor.u32 %v5318_v55, %v4580_v38 }
 0x184   :  { %7246 = vst [vmem:[#allocation30_spill] sm:$0xff] %v6176_v30  ;;  %1617 = vmatmul.bf16.gmra.mxu3 %v6020_v57  ;;  %v6180_v16 = vpack.c.bf16 %v654_v24, %v646_v2  ;;  %1746 = vmatpush.bf16.msra.mxu2 %v4487_v18 }
 0x185   :  { %v533_v33 = vpop.f32.mrf.mxu2  ;;  %1891 = vmatpush.bf16.msra.mxu1 %v4419_v1  ;;  %1795 = vmatpush.bf16.msra.mxu3 %v4583_v53 }
 0x186   :  { %7247 = vst [vmem:[#allocation31_spill] sm:$0xff] %v6180_v16  ;;  %v534_v2 = vadd.f32 %v533_v33, %v6124_v27  ;;  %v4310_v33 = vld [vmem:[#allocation2 + $0x50] sm:$0xf] }
 0x187   :  { %v582_v45 = vpop.f32.mrf.mxu3  ;;  %v1473_v56 = vpop.f32.mrf.mxu0 }
 0x188   :  { %v1474_v44 = vadd.f32 %v1473_v56, %v6101_v63  ;;  %v1522_v6 = vpop.f32.mrf.mxu1  ;;  %v583_v24 = vadd.f32 %v582_v45, %v6127_v21  ;;  %v661_v18 = vmax.f32 %v534_v2, 0.0  ;;  %v5251_v45 = vld [vmem:[#allocation2 + $0x58] sm:$0xf0] }
 0x189   :  { %v4311_v2 = vor.u32 %v5251_v45, %v4310_v33 }
 0x18a   :  { %v6183_v30 = vadd.f32 %v1522_v6, %v1474_v44  ;;  %v662_v38 = vmax.f32 %v583_v24, 0.0 }
 0x18b   :  { %1843 = vmatpush.bf16.msra.mxu0 %v4311_v2 }
 0x18d   :  { %v535_v8 = vpop.f32.mrf.mxu2 }
 0x18e   :  { %v536_v37 = vadd.f32 %v535_v8, %v6124_v27  ;;  %v5291_v8 = vld [vmem:[#allocation2 + $0x19c] sm:$0xf] }
 0x18f   :  { %v584_v14 = vpop.f32.mrf.mxu3  ;;  %v1476_v50 = vpop.f32.mrf.mxu0 }
 0x190   :  { %v585_v47 = vadd.f32 %v584_v14, %v6127_v21  ;;  %v669_v55 = vmax.f32 %v536_v37, 0.0  ;;  %v1477_v53 = vadd.f32 %v1476_v50, %v6101_v63  ;;  %v1525_v1 = vpop.f32.mrf.mxu1  ;;  %v4472_v37 = vld [vmem:[#allocation2 + $0x1a4] sm:$0xf0]  ;;  %v4406_v14 = vld [vmem:[#allocation2 + $0x110] sm:$0xf] }
 0x191   :  { %v5275_v50 = vld [vmem:[#allocation2 + $0x118] sm:$0xf0] }
 0x192   :  { %v670_v56 = vmax.f32 %v585_v47, 0.0  ;;  %v6190_v44 = vadd.f32 %v1525_v1, %v1477_v53  ;;  %1573 = vmatmul.bf16.gmra.mxu2 %v6037_v26  ;;  %1671 = vmatmul.bf16.gmra.mxu0 %v5800_v25  ;;  %v6194_v6 = vpack.c.bf16 %v669_v55, %v661_v18  ;;  %v4475_v47 = vor.u32 %v5291_v8, %v4472_v37  ;;  %v5315_v53 = vld [vmem:[#allocation2 + $0x25c] sm:$0xf]  ;;  %v4568_v1 = vld [vmem:[#allocation2 + $0x264] sm:$0xf0] }
 0x193   :  { %1720 = vmatmul.bf16.gmra.mxu1 %v5806_v28  ;;  %v4407_v42 = vor.u32 %v5275_v50, %v4406_v14  ;;  %v4571_v23 = vor.u32 %v5315_v53, %v4568_v1 }
 0x194   :  { %7248 = vst [vmem:[#allocation32_spill] sm:$0xff] %v6194_v6  ;;  %1622 = vmatmul.bf16.gmra.mxu3 %v6042_v40  ;;  %v6198_v24 = vpack.c.bf16 %v670_v56, %v662_v38  ;;  %1747 = vmatpush.bf16.msra.mxu2 %v4475_v47 }
 0x195   :  { %v538_v16 = vpop.f32.mrf.mxu2  ;;  %1892 = vmatpush.bf16.msra.mxu1 %v4407_v42  ;;  %1796 = vmatpush.bf16.msra.mxu3 %v4571_v23 }
 0x196   :  { %7249 = vst [vmem:[#allocation33_spill] sm:$0xff] %v6198_v24  ;;  %v539_v38 = vadd.f32 %v538_v16, %v6124_v27  ;;  %v4298_v16 = vld [vmem:[#allocation2 + $0x38] sm:$0xf] }
 0x197   :  { %v587_v18 = vpop.f32.mrf.mxu3  ;;  %v1478_v55 = vpop.f32.mrf.mxu0 }
 0x198   :  { %v1479_v33 = vadd.f32 %v1478_v55, %v6101_v63  ;;  %v1527_v45 = vpop.f32.mrf.mxu1  ;;  %v588_v56 = vadd.f32 %v587_v18, %v6127_v21  ;;  %v677_v47 = vmax.f32 %v539_v38, 0.0  ;;  %v5248_v18 = vld [vmem:[#allocation2 + $0x40] sm:$0xf0] }
 0x199   :  { %v4299_v38 = vor.u32 %v5248_v18, %v4298_v16 }
 0x19a   :  { %v6201_v6 = vadd.f32 %v1527_v45, %v1479_v33  ;;  %v678_v1 = vmax.f32 %v588_v56, 0.0 }
 0x19b   :  { %1844 = vmatpush.bf16.msra.mxu0 %v4299_v38 }
 0x19d   :  { %v540_v8 = vpop.f32.mrf.mxu2 }
 0x19e   :  { %v541_v37 = vadd.f32 %v540_v8, %v6124_v27  ;;  %v5288_v8 = vld [vmem:[#allocation2 + $0x184] sm:$0xf] }
 0x19f   :  { %v589_v2 = vpop.f32.mrf.mxu3  ;;  %v1481_v50 = vpop.f32.mrf.mxu0 }
 0x1a0   :  { %v590_v14 = vadd.f32 %v589_v2, %v6127_v21  ;;  %v685_v53 = vmax.f32 %v541_v37, 0.0  ;;  %v1482_v23 = vadd.f32 %v1481_v50, %v6101_v63  ;;  %v1530_v42 = vpop.f32.mrf.mxu1  ;;  %v4460_v37 = vld [vmem:[#allocation2 + $0x18c] sm:$0xf0]  ;;  %v4394_v2 = vld [vmem:[#allocation2 + $0xf8] sm:$0xf] }
 0x1a1   :  { %v5272_v50 = vld [vmem:[#allocation2 + $0x100] sm:$0xf0] }
 0x1a2   :  { %v686_v55 = vmax.f32 %v590_v14, 0.0  ;;  %v6208_v33 = vadd.f32 %v1530_v42, %v1482_v23  ;;  %1578 = vmatmul.bf16.gmra.mxu2 %v6061_v61  ;;  %1676 = vmatmul.bf16.gmra.mxu0 %v5824_v4  ;;  %v6212_v45 = vpack.c.bf16 %v685_v53, %v677_v47  ;;  %v4463_v14 = vor.u32 %v5288_v8, %v4460_v37  ;;  %v5312_v23 = vld [vmem:[#allocation2 + $0x244] sm:$0xf]  ;;  %v4556_v42 = vld [vmem:[#allocation2 + $0x24c] sm:$0xf0] }
 0x1a3   :  { %1725 = vmatmul.bf16.gmra.mxu1 %v5830_v11  ;;  %v4559_v4 = vor.u32 %v5312_v23, %v4556_v42  ;;  %v5245_v11 = vld [vmem:[#allocation2 + $0x28] sm:$0xf0]  ;;  %v4382_v8 = vld [vmem:[#allocation2 + $0xe0] sm:$0xf] }
 0x1a4   :  { %7250 = vst [vmem:[#allocation34_spill] sm:$0xff] %v6208_v33  ;;  %1627 = vmatmul.bf16.gmra.mxu3 %v6065_v3  ;;  %v6216_v56 = vpack.c.bf16 %v686_v55, %v678_v1  ;;  %v4395_v33 = vor.u32 %v5272_v50, %v4394_v2  ;;  %1748 = vmatpush.bf16.msra.mxu2 %v4463_v14  ;;  %v5269_v37 = vld [vmem:[#allocation2 + $0xe8] sm:$0xf0]  ;;  %v4370_v50 = vld [vmem:[#allocation2 + $0xc8] sm:$0xf] }
 0x1a5   :  { %7251 = vst [vmem:[#allocation35_spill] sm:$0xff] %v6212_v45  ;;  %v543_v24 = vpop.f32.mrf.mxu2  ;;  %1797 = vmatpush.bf16.msra.mxu3 %v4559_v4  ;;  %v4286_v45 = vld [vmem:[#allocation2 + $0x20] sm:$0xf]  ;;  %v5242_v4 = vld [vmem:[#allocation2 + $0x10] sm:$0xf0] }
 0x1a6   :  { %7252 = vst [vmem:[#allocation36_spill] sm:$0xff] %v6216_v56  ;;  %1893 = vmatpush.bf16.msra.mxu1 %v4395_v33  ;;  %v4287_v55 = vor.u32 %v5245_v11, %v4286_v45  ;;  %v4383_v56 = vor.u32 %v5269_v37, %v4382_v8  ;;  %v544_v38 = vadd.f32 %v543_v24, %v6124_v27  ;;  %v4274_v33 = vld [vmem:[#allocation2 + $0x8] sm:$0xf] }
 0x1a7   :  { %v592_v47 = vpop.f32.mrf.mxu3  ;;  %v1483_v53 = vpop.f32.mrf.mxu0 }
 0x1a8   :  { %v1484_v16 = vadd.f32 %v1483_v53, %v6101_v63  ;;  %v1532_v18 = vpop.f32.mrf.mxu1  ;;  %1845 = vmatpush.bf16.msra.mxu0 %v4287_v55  ;;  %v593_v2 = vadd.f32 %v592_v47, %v6127_v21  ;;  %v4275_v53 = vor.u32 %v5242_v4, %v4274_v33  ;;  %v693_v8 = vmax.f32 %v544_v38, 0.0  ;;  %v4550_v38 = vld [vmem:[#allocation2 + $0x230] sm:$0xf]  ;;  %v5311_v33 = vld [vmem:[#allocation2 + $0x238] sm:$0xf0] }
 0x1a9   :  { %v4646_v4 = vld [vmem:[#allocation2 + $0x2f0] sm:$0xf] }
 0x1aa   :  { %v6219_v1 = vadd.f32 %v1532_v18, %v1484_v16  ;;  %1894 = vmatpush.bf16.msra.mxu1 %v4383_v56  ;;  %v5266_v16 = vld [vmem:[#allocation2 + $0xd0] sm:$0xf0]  ;;  %v694_v47 = vmax.f32 %v593_v2, 0.0  ;;  %v4551_v2 = vor.u32 %v5311_v33, %v4550_v38 }
 0x1ab   :  { %v4371_v18 = vor.u32 %v5266_v16, %v4370_v50 }
 0x1ac   :  { %7253 = vst [vmem:[#allocation37_spill] sm:$0xff] %v6219_v1  ;;  %1846 = vmatpush.bf16.msra.mxu0 %v4275_v53  ;;  %1937 = vmatpush.bf16.msrb.mxu2 %v4551_v2 }
 0x1ad   :  { %v545_v14 = vpop.f32.mrf.mxu2 }
 0x1ae   :  { %v546_v23 = vadd.f32 %v545_v14, %v6124_v27  ;;  %1895 = vmatpush.bf16.msra.mxu1 %v4371_v18 }
 0x1af   :  { %v594_v42 = vpop.f32.mrf.mxu3  ;;  %v1486_v45 = vpop.f32.mrf.mxu0 }
 0x1b0   :  { %v595_v11 = vadd.f32 %v594_v42, %v6127_v21  ;;  %v701_v37 = vmax.f32 %v546_v23, 0.0  ;;  %v1487_v24 = vadd.f32 %v1486_v45, %v6101_v63  ;;  %v1535_v55 = vpop.f32.mrf.mxu1  ;;  %v5335_v23 = vld [vmem:[#allocation2 + $0x2f8] sm:$0xf0] }
 0x1b1   :  { %v4647_v53 = vor.u32 %v5335_v23, %v4646_v4 }
 0x1b2   :  { %v702_v56 = vmax.f32 %v595_v11, 0.0  ;;  %v6226_v1 = vadd.f32 %v1535_v55, %v1487_v24  ;;  %1583 = vmatmul.bf16.gmra.mxu2 %v6084_v59  ;;  %1681 = vmatmul.bf16.gmra.mxu0 %v5848_v43  ;;  %v6230_v14 = vpack.c.bf16 %v701_v37, %v693_v8 }
 0x1b3   :  { %1730 = vmatmul.bf16.gmra.mxu1 %v5854_v46  ;;  %1986 = vmatpush.bf16.msrb.mxu3 %v4647_v53 }
 0x1b4   :  { %7254 = vst [vmem:[#allocation38_spill] sm:$0xff] %v6230_v14  ;;  %1632 = vmatmul.bf16.gmra.mxu3 %v6088_v48  ;;  %v6234_v50 = vpack.c.bf16 %v702_v56, %v694_v47 }
 0x1b5   :  { %v548_v42 = vpop.f32.mrf.mxu2 }
 0x1b6   :  { %7255 = vst [vmem:[#allocation39_spill] sm:$0xff] %v6234_v50  ;;  %v549_v37 = vadd.f32 %v548_v42, %v6124_v27 }
 0x1b7   :  { %v597_v16 = vpop.f32.mrf.mxu3  ;;  %v1488_v11 = vpop.f32.mrf.mxu0 }
 0x1b8   :  { %v1489_v45 = vadd.f32 %v1488_v11, %v6101_v63  ;;  %v1537_v18 = vpop.f32.mrf.mxu1  ;;  %v598_v24 = vadd.f32 %v597_v16, %v6127_v21  ;;  %v709_v4 = vmax.f32 %v549_v37, 0.0  ;;  %v5308_v37 = vld [vmem:[#allocation2 + $0x220] sm:$0xf0] }
 0x1ba   :  { %v6237_v8 = vadd.f32 %v1537_v18, %v1489_v45  ;;  %v710_v11 = vmax.f32 %v598_v24, 0.0  ;;  %v4538_v18 = vld [vmem:[#allocation2 + $0x218] sm:$0xf] }
 0x1bb   :  { %v4539_v24 = vor.u32 %v5308_v37, %v4538_v18 }
 0x1bd   :  { %v550_v55 = vpop.f32.mrf.mxu2  ;;  %1938 = vmatpush.bf16.msrb.mxu2 %v4539_v24 }
 0x1be   :  { %v551_v47 = vadd.f32 %v550_v55, %v6124_v27  ;;  %v4634_v55 = vld [vmem:[#allocation2 + $0x2d8] sm:$0xf] }
 0x1bf   :  { %v599_v56 = vpop.f32.mrf.mxu3  ;;  %v1491_v33 = vpop.f32.mrf.mxu0 }
 0x1c0   :  { %v600_v38 = vadd.f32 %v599_v56, %v6127_v21  ;;  %v717_v2 = vmax.f32 %v551_v47, 0.0  ;;  %v1492_v23 = vadd.f32 %v1491_v33, %v6101_v63  ;;  %v1540_v53 = vpop.f32.mrf.mxu1  ;;  %v5332_v56 = vld [vmem:[#allocation2 + $0x2e0] sm:$0xf0] }
 0x1c1   :  { %v4635_v33 = vor.u32 %v5332_v56, %v4634_v55 }
 0x1c2   :  { %v718_v50 = vmax.f32 %v600_v38, 0.0  ;;  %v6244_v45 = vadd.f32 %v1540_v53, %v1492_v23  ;;  %1588 = vmatmul.bf16.gmra.mxu2 %v6115_v12  ;;  %1686 = vmatmul.bf16.gmra.mxu0 %v5885_v34  ;;  %v6248_v42 = vpack.c.bf16 %v717_v2, %v709_v4 }
 0x1c3   :  { %1735 = vmatmul.bf16.gmra.mxu1 %v5890_v41  ;;  %1987 = vmatpush.bf16.msrb.mxu3 %v4635_v33 }
 0x1c4   :  { %7256 = vst [vmem:[#allocation40_spill] sm:$0xff] %v6248_v42  ;;  %1637 = vmatmul.bf16.gmra.mxu3 %v6119_v58  ;;  %v6252_v16 = vpack.c.bf16 %v718_v50, %v710_v11  ;;  %v6259_v50 = vperm.slane %v6097_v39, 1  ;;  %v4734_v39 = vld [vmem:[#allocation4 + $0xa8] sm:$0xf] }
 0x1c5   :  { %v553_v47 = vpop.f32.mrf.mxu2 }
 0x1c6   :  { %7257 = vst [vmem:[#allocation41_spill] sm:$0xff] %v6252_v16  ;;  %v554_v42 = vadd.f32 %v553_v47, %v6124_v27 }
 0x1c7   :  { %v602_v38 = vpop.f32.mrf.mxu3  ;;  %v1493_v23 = vpop.f32.mrf.mxu0 }
 0x1c8   :  { %v1494_v53 = vadd.f32 %v1493_v23, %v6101_v63  ;;  %v1542_v4 = vpop.f32.mrf.mxu1  ;;  %v603_v11 = vadd.f32 %v602_v38, %v6127_v21  ;;  %v725_v56 = vmax.f32 %v554_v42, 0.0  ;;  %v5358_v38 = vld [vmem:[#allocation4 + $0xb0] sm:$0xf0]  ;;  %v4526_v42 = vld [vmem:[#allocation2 + $0x200] sm:$0xf] }
 0x1ca   :  { %v6255_v2 = vadd.f32 %v1542_v4, %v1494_v53  ;;  %v726_v53 = vmax.f32 %v603_v11, 0.0 }
 0x1cd   :  { %v555_v16 = vpop.f32.mrf.mxu2 }
 0x1ce   :  { %v556_v18 = vadd.f32 %v555_v16, %v6124_v27  ;;  %v5305_v16 = vld [vmem:[#allocation2 + $0x208] sm:$0xf0] }
 0x1cf   :  { %v604_v37 = vpop.f32.mrf.mxu3  ;;  %v1652_v24 = vpop.f32.mrf.mxu0 }
 0x1d0   :  { %v605_v55 = vadd.f32 %v604_v37, %v6127_v21  ;;  %v733_v63 = vmax.f32 %v556_v18, 0.0  ;;  %v1653_v33 = vadd.f32 %v1652_v24, %v6259_v50  ;;  %v1701_v23 = vpop.f32.mrf.mxu1  ;;  %v4735_v21 = vor.u32 %v5358_v38, %v4734_v39  ;;  %v4830_v18 = vld [vmem:[#allocation4 + $0x168] sm:$0xf]  ;;  %v4622_v24 = vld [vmem:[#allocation2 + $0x2c0] sm:$0xf] }
 0x1d1   :  { %v4527_v37 = vor.u32 %v5305_v16, %v4526_v42 }
 0x1d2   :  { %v734_v4 = vmax.f32 %v605_v55, 0.0  ;;  %v6265_v47 = vadd.f32 %v1701_v23, %v1653_v33  ;;  %1749 = vmatmul.bf16.vlgmr.msra.gmra.mxu2 %v5922_v31  ;;  %1847 = vmatmul.bf16.vlgmr.msra.gmra.mxu0 %v5872_v9  ;;  %v6269_v27 = vpack.c.bf16 %v733_v63, %v725_v56  ;;  %v5382_v55 = vld [vmem:[#allocation4 + $0x170] sm:$0xf0]  ;;  %v5329_v33 = vld [vmem:[#allocation2 + $0x2c8] sm:$0xf0] }
 0x1d3   :  { %1896 = vmatmul.bf16.vlgmr.msra.gmra.mxu1 %v5877_v10  ;;  %2755 = vmatpush.bf16.msrb.mxu0 %v4735_v21  ;;  %v4831_v9 = vor.u32 %v5382_v55, %v4830_v18  ;;  %v4623_v14 = vor.u32 %v5329_v33, %v4622_v24 }
 0x1d4   :  { %7258 = vst [vmem:[#allocation42_spill] sm:$0xff] %v6269_v27  ;;  %1798 = vmatmul.bf16.vlgmr.msra.gmra.mxu3 %v5927_v5  ;;  %v6273_v11 = vpack.c.bf16 %v734_v4, %v726_v53  ;;  %1939 = vmatpush.bf16.msrb.mxu2 %v4527_v37 }
 0x1d5   :  { %v1554_v23 = vpop.f32.mrf.mxu2  ;;  %2804 = vmatpush.bf16.msrb.mxu1 %v4831_v9  ;;  %1988 = vmatpush.bf16.msrb.mxu3 %v4623_v14  ;;  %v4722_v14 = vld [vmem:[#allocation4 + $0x90] sm:$0xf]  ;;  %v5302_v9 = vld [vmem:[#allocation2 + $0x1f0] sm:$0xf0] }
 0x1d6   :  { %v1555_v56 = vadd.f32 %v1554_v23, %v6111_v36  ;;  %v4514_v23 = vld [vmem:[#allocation2 + $0x1e8] sm:$0xf] }
 0x1d7   :  { %v1603_v63 = vpop.f32.mrf.mxu3  ;;  %v1654_v27 = vpop.f32.mrf.mxu0 }
 0x1d8   :  { %v1604_v10 = vadd.f32 %v1603_v63, %v1555_v56  ;;  %v1655_v39 = vadd.f32 %v1654_v27, %v6259_v50  ;;  %v1703_v53 = vpop.f32.mrf.mxu1  ;;  %v5355_v27 = vld [vmem:[#allocation4 + $0x98] sm:$0xf0]  ;;  %v4818_v56 = vld [vmem:[#allocation4 + $0x150] sm:$0xf] }
 0x1da   :  { %v6277_v4 = vadd.f32 %v1703_v53, %v1655_v39  ;;  %v2035_v24 = vmax.f32 %v1604_v10, 0.0  ;;  %v4515_v10 = vor.u32 %v5302_v9, %v4514_v23  ;;  %v5379_v39 = vld [vmem:[#allocation4 + $0x158] sm:$0xf0]  ;;  %v4610_v53 = vld [vmem:[#allocation2 + $0x2a8] sm:$0xf] }
 0x1dc   :  { %1940 = vmatpush.bf16.msrb.mxu2 %v4515_v10 }
 0x1dd   :  { %v1556_v38 = vpop.f32.mrf.mxu2 }
 0x1de   :  { %v1557_v42 = vadd.f32 %v1556_v38, %v6129_v15  ;;  %v4723_v15 = vor.u32 %v5355_v27, %v4722_v14  ;;  %v5326_v38 = vld [vmem:[#allocation2 + $0x2b0] sm:$0xf0] }
 0x1df   :  { %v1605_v16 = vpop.f32.mrf.mxu3  ;;  %v1657_v21 = vpop.f32.mrf.mxu0 }
 0x1e0   :  { %v1606_v18 = vadd.f32 %v1605_v16, %v1557_v42  ;;  %v1658_v55 = vadd.f32 %v1657_v21, %v6259_v50  ;;  %v1706_v36 = vpop.f32.mrf.mxu1  ;;  %2756 = vmatpush.bf16.msrb.mxu0 %v4723_v15  ;;  %v4819_v16 = vor.u32 %v5379_v39, %v4818_v56 }
 0x1e2   :  { %v2038_v37 = vmax.f32 %v1606_v18, 0.0  ;;  %v6281_v33 = vadd.f32 %v1706_v36, %v1658_v55  ;;  %1754 = vmatmul.bf16.gmra.mxu2 %v5959_v19  ;;  %1852 = vmatmul.bf16.gmra.mxu0 %v5918_v52  ;;  %v4611_v52 = vor.u32 %v5326_v38, %v4610_v53  ;;  %v4710_v38 = vld [vmem:[#allocation4 + $0x78] sm:$0xf] }
 0x1e3   :  { %1901 = vmatmul.bf16.gmra.mxu1 %v5920_v54 }
 0x1e4   :  { %1803 = vmatmul.bf16.gmra.mxu3 %v5964_v32  ;;  %v6287_v63 = vpack.c.bf16 %v2038_v37, %v2035_v24  ;;  %2805 = vmatpush.bf16.msrb.mxu1 %v4819_v16  ;;  %v4502_v16 = vld [vmem:[#allocation2 + $0x1d0] sm:$0xf] }
 0x1e5   :  { %v1559_v42 = vpop.f32.mrf.mxu2  ;;  %1989 = vmatpush.bf16.msrb.mxu3 %v4611_v52  ;;  %v5299_v52 = vld [vmem:[#allocation2 + $0x1d8] sm:$0xf0] }
 0x1e6   :  { %7259 = vst [vmem:[#allocation43_spill] sm:$0xff] %v6287_v63  ;;  %v1560_v21 = vadd.f32 %v1559_v42, %v6138_v60  ;;  %v5352_v42 = vld [vmem:[#allocation4 + $0x80] sm:$0xf0] }
 0x1e7   :  { %v1608_v18 = vpop.f32.mrf.mxu3  ;;  %v1659_v55 = vpop.f32.mrf.mxu0 }
 0x1e8   :  { %v1609_v54 = vadd.f32 %v1608_v18, %v1560_v21  ;;  %v1660_v36 = vadd.f32 %v1659_v55, %v6259_v50  ;;  %v1708_v24 = vpop.f32.mrf.mxu1  ;;  %v4806_v21 = vld [vmem:[#allocation4 + $0x138] sm:$0xf]  ;;  %v4503_v18 = vor.u32 %v5299_v52, %v4502_v16  ;;  %v5376_v55 = vld [vmem:[#allocation4 + $0x140] sm:$0xf0] }
 0x1ea   :  { %v6291_v37 = vadd.f32 %v1708_v24, %v1660_v36  ;;  %v2041_v39 = vmax.f32 %v1609_v54, 0.0  ;;  %v4598_v54 = vld [vmem:[#allocation2 + $0x290] sm:$0xf]  ;;  %v5323_v36 = vld [vmem:[#allocation2 + $0x298] sm:$0xf0]  ;;  %1941 = vmatpush.bf16.msrb.mxu2 %v4503_v18 }
 0x1ed   :  { %v1561_v14 = vpop.f32.mrf.mxu2 }
 0x1ee   :  { %v1562_v27 = vadd.f32 %v1561_v14, %v6147_v29  ;;  %v4711_v29 = vor.u32 %v5352_v42, %v4710_v38 }
 0x1ef   :  { %v1610_v23 = vpop.f32.mrf.mxu3  ;;  %v1662_v15 = vpop.f32.mrf.mxu0 }
 0x1f0   :  { %v1611_v9 = vadd.f32 %v1610_v23, %v1562_v27  ;;  %v1663_v56 = vadd.f32 %v1662_v15, %v6259_v50  ;;  %v1711_v60 = vpop.f32.mrf.mxu1  ;;  %2757 = vmatpush.bf16.msrb.mxu0 %v4711_v29  ;;  %v4807_v27 = vor.u32 %v5376_v55, %v4806_v21 }
 0x1f2   :  { %v2044_v10 = vmax.f32 %v1611_v9, 0.0  ;;  %v6295_v53 = vadd.f32 %v1711_v60, %v1663_v56  ;;  %1759 = vmatmul.bf16.gmra.mxu2 %v5993_v22  ;;  %1857 = vmatmul.bf16.gmra.mxu0 %v5952_v17  ;;  %v4599_v17 = vor.u32 %v5323_v36, %v4598_v54  ;;  %v4698_v54 = vld [vmem:[#allocation4 + $0x60] sm:$0xf]  ;;  %v5349_v36 = vld [vmem:[#allocation4 + $0x68] sm:$0xf0] }
 0x1f3   :  { %1906 = vmatmul.bf16.gmra.mxu1 %v5954_v20 }
 0x1f4   :  { %1808 = vmatmul.bf16.gmra.mxu3 %v5998_v62  ;;  %v6301_v24 = vpack.c.bf16 %v2044_v10, %v2041_v39  ;;  %2806 = vmatpush.bf16.msrb.mxu1 %v4807_v27  ;;  %v5296_v27 = vld [vmem:[#allocation2 + $0x1c0] sm:$0xf0] }
 0x1f5   :  { %v1564_v14 = vpop.f32.mrf.mxu2  ;;  %1990 = vmatpush.bf16.msrb.mxu3 %v4599_v17  ;;  %v4794_v17 = vld [vmem:[#allocation4 + $0x120] sm:$0xf] }
 0x1f6   :  { %7260 = vst [vmem:[#allocation44_spill] sm:$0xff] %v6301_v24  ;;  %v1565_v23 = vadd.f32 %v1564_v14, %v6154_v0  ;;  %v4490_v14 = vld [vmem:[#allocation2 + $0x1b8] sm:$0xf] }
 0x1f7   :  { %v1613_v15 = vpop.f32.mrf.mxu3  ;;  %v1664_v9 = vpop.f32.mrf.mxu0 }
 0x1f8   :  { %v1614_v20 = vadd.f32 %v1613_v15, %v1565_v23  ;;  %v1665_v56 = vadd.f32 %v1664_v9, %v6259_v50  ;;  %v1713_v60 = vpop.f32.mrf.mxu1  ;;  %v4491_v23 = vor.u32 %v5296_v27, %v4490_v14  ;;  %v5373_v15 = vld [vmem:[#allocation4 + $0x128] sm:$0xf0]  ;;  %v4586_v9 = vld [vmem:[#allocation2 + $0x278] sm:$0xf] }
 0x1fa   :  { %v6305_v38 = vadd.f32 %v1713_v60, %v1665_v56  ;;  %v2047_v21 = vmax.f32 %v1614_v20, 0.0  ;;  %v5320_v20 = vld [vmem:[#allocation2 + $0x280] sm:$0xf0]  ;;  %1942 = vmatpush.bf16.msrb.mxu2 %v4491_v23 }
 0x1fd   :  { %v1566_v42 = vpop.f32.mrf.mxu2 }
 0x1fe   :  { %v1567_v39 = vadd.f32 %v1566_v42, %v6165_v35  ;;  %v4699_v35 = vor.u32 %v5349_v36, %v4698_v54  ;;  %v4795_v42 = vor.u32 %v5373_v15, %v4794_v17  ;;  %v4686_v15 = vld [vmem:[#allocation4 + $0x48] sm:$0xf] }
 0x1ff   :  { %v1615_v10 = vpop.f32.mrf.mxu3  ;;  %v1667_v29 = vpop.f32.mrf.mxu0 }
 0x200   :  { %v1616_v16 = vadd.f32 %v1615_v10, %v1567_v39  ;;  %v1668_v52 = vadd.f32 %v1667_v29, %v6259_v50  ;;  %v1716_v0 = vpop.f32.mrf.mxu1  ;;  %2758 = vmatpush.bf16.msrb.mxu0 %v4699_v35  ;;  %2807 = vmatpush.bf16.msrb.mxu1 %v4795_v42  ;;  %v4782_v42 = vld [vmem:[#allocation4 + $0x108] sm:$0xf] }
 0x202   :  { %v2050_v18 = vmax.f32 %v1616_v16, 0.0  ;;  %v6309_v55 = vadd.f32 %v1716_v0, %v1668_v52  ;;  %1764 = vmatmul.bf16.gmra.mxu2 %v6015_v13  ;;  %1862 = vmatmul.bf16.gmra.mxu0 %v5986_v49  ;;  %v4587_v49 = vor.u32 %v5320_v20, %v4586_v9  ;;  %v5346_v9 = vld [vmem:[#allocation4 + $0x50] sm:$0xf0]  ;;  %v4478_v20 = vld [vmem:[#allocation2 + $0x1a0] sm:$0xf] }
 0x203   :  { %1911 = vmatmul.bf16.gmra.mxu1 %v5988_v51 }
 0x204   :  { %1813 = vmatmul.bf16.gmra.mxu3 %v6020_v57  ;;  %v6315_v56 = vpack.c.bf16 %v2050_v18, %v2047_v21 }
 0x205   :  { %v1569_v60 = vpop.f32.mrf.mxu2  ;;  %1991 = vmatpush.bf16.msrb.mxu3 %v4587_v49 }
 0x206   :  { %7261 = vst [vmem:[#allocation45_spill] sm:$0xff] %v6315_v56  ;;  %v1570_v39 = vadd.f32 %v1569_v60, %v6172_v7  ;;  %v5293_v60 = vld [vmem:[#allocation2 + $0x1a8] sm:$0xf0] }
 0x207   :  { %v1618_v10 = vpop.f32.mrf.mxu3  ;;  %v1669_v29 = vpop.f32.mrf.mxu0  ;;  %v4479_v49 = vor.u32 %v5293_v60, %v4478_v20 }
 0x208   :  { %v1619_v51 = vadd.f32 %v1618_v10, %v1570_v39  ;;  %v1670_v16 = vadd.f32 %v1669_v29, %v6259_v50  ;;  %v1718_v52 = vpop.f32.mrf.mxu1  ;;  %v5370_v39 = vld [vmem:[#allocation4 + $0x110] sm:$0xf0]  ;;  %v4574_v10 = vld [vmem:[#allocation2 + $0x260] sm:$0xf]  ;;  %v5317_v29 = vld [vmem:[#allocation2 + $0x268] sm:$0xf0] }
 0x209   :  { %1943 = vmatpush.bf16.msrb.mxu2 %v4479_v49  ;;  %v7263_v49 = vld [vmem:[#allocation8_spill] sm:$0xff] }
 0x20a   :  { %v6319_v0 = vadd.f32 %v1718_v52, %v1670_v16  ;;  %v2053_v27 = vmax.f32 %v1619_v51, 0.0  ;;  %v4783_v52 = vor.u32 %v5370_v39, %v4782_v42  ;;  %v4674_v39 = vld [vmem:[#allocation4 + $0x30] sm:$0xf] }
 0x20c   :  { %2808 = vmatpush.bf16.msrb.mxu1 %v4783_v52  ;;  %v5290_v52 = vld [vmem:[#allocation2 + $0x190] sm:$0xf0] }
 0x20d   :  { %v1571_v54 = vpop.f32.mrf.mxu2 }
 0x20e   :  { %v1572_v21 = vadd.f32 %v1571_v54, %v6183_v30  ;;  %v4687_v30 = vor.u32 %v5346_v9, %v4686_v15 }
 0x20f   :  { %v1620_v18 = vpop.f32.mrf.mxu3  ;;  %v1672_v36 = vpop.f32.mrf.mxu0 }
 0x210   :  { %v1621_v35 = vadd.f32 %v1620_v18, %v1572_v21  ;;  %v1673_v14 = vadd.f32 %v1672_v36, %v6259_v50  ;;  %v1721_v7 = vpop.f32.mrf.mxu1  ;;  %2759 = vmatpush.bf16.msrb.mxu0 %v4687_v30 }
 0x212   :  { %v2056_v17 = vmax.f32 %v1621_v35, 0.0  ;;  %v6323_v23 = vadd.f32 %v1721_v7, %v1673_v14  ;;  %1769 = vmatmul.bf16.gmra.mxu2 %v6037_v26  ;;  %1867 = vmatmul.bf16.gmra.mxu0 %v5800_v25  ;;  %v4575_v25 = vor.u32 %v5317_v29, %v4574_v10  ;;  %v5343_v10 = vld [vmem:[#allocation4 + $0x38] sm:$0xf0]  ;;  %v7264_v29 = vld [vmem:[#allocation9_spill] sm:$0xff] }
 0x213   :  { %1916 = vmatmul.bf16.gmra.mxu1 %v5806_v28 }
 0x214   :  { %1818 = vmatmul.bf16.gmra.mxu3 %v6042_v40  ;;  %v6329_v51 = vpack.c.bf16 %v2056_v17, %v2053_v27 }
 0x215   :  { %v1574_v16 = vpop.f32.mrf.mxu2  ;;  %1992 = vmatpush.bf16.msrb.mxu3 %v4575_v25  ;;  %v4770_v25 = vld [vmem:[#allocation4 + $0xf0] sm:$0xf] }
 0x216   :  { %7262 = vst [vmem:[#allocation46_spill] sm:$0xff] %v6329_v51  ;;  %v1575_v54 = vadd.f32 %v1574_v16, %v6190_v44  ;;  %v4466_v16 = vld [vmem:[#allocation2 + $0x188] sm:$0xf] }
 0x217   :  { %v1623_v21 = vpop.f32.mrf.mxu3  ;;  %v1674_v18 = vpop.f32.mrf.mxu0 }
 0x218   :  { %v1624_v28 = vadd.f32 %v1623_v21, %v1575_v54  ;;  %v1675_v36 = vadd.f32 %v1674_v18, %v6259_v50  ;;  %v1723_v35 = vpop.f32.mrf.mxu1  ;;  %v4467_v54 = vor.u32 %v5290_v52, %v4466_v16  ;;  %v5367_v21 = vld [vmem:[#allocation4 + $0xf8] sm:$0xf0]  ;;  %v4562_v18 = vld [vmem:[#allocation2 + $0x248] sm:$0xf]  ;;  %v4758_v16 = vld [vmem:[#allocation4 + $0xd8] sm:$0xf] }
 0x21a   :  { %v6333_v14 = vadd.f32 %v1723_v35, %v1675_v36  ;;  %v2059_v20 = vmax.f32 %v1624_v28, 0.0  ;;  %v5314_v28 = vld [vmem:[#allocation2 + $0x250] sm:$0xf0]  ;;  %1944 = vmatpush.bf16.msrb.mxu2 %v4467_v54  ;;  %v5337_v54 = vld [vmem:[#allocation4 + $0x8] sm:$0xf0] }
 0x21d   :  { %v1576_v7 = vpop.f32.mrf.mxu2 }
 0x21e   :  { %v1577_v27 = vadd.f32 %v1576_v7, %v6201_v6  ;;  %v4675_v6 = vor.u32 %v5343_v10, %v4674_v39  ;;  %v4771_v7 = vor.u32 %v5367_v21, %v4770_v25  ;;  %v4662_v10 = vld [vmem:[#allocation4 + $0x18] sm:$0xf]  ;;  %v4650_v21 = vld [vmem:[#allocation4] sm:$0xf] }
 0x21f   :  { %v1625_v17 = vpop.f32.mrf.mxu3  ;;  %v1677_v15 = vpop.f32.mrf.mxu0 }
 0x220   :  { %v1626_v9 = vadd.f32 %v1625_v17, %v1577_v27  ;;  %v1678_v30 = vadd.f32 %v1677_v15, %v6259_v50  ;;  %v1726_v44 = vpop.f32.mrf.mxu1  ;;  %2760 = vmatpush.bf16.msrb.mxu0 %v4675_v6  ;;  %v4563_v27 = vor.u32 %v5314_v28, %v4562_v18  ;;  %v7266_v17 = vld [vmem:[#allocation34_spill] sm:$0xff]  ;;  %2809 = vmatpush.bf16.msrb.mxu1 %v4771_v7  ;;  %v5364_v6 = vld [vmem:[#allocation4 + $0xe0] sm:$0xf0]  ;;  %v4746_v18 = vld [vmem:[#allocation4 + $0xc0] sm:$0xf] }
 0x221   :  { %v4759_v52 = vor.u32 %v5364_v6, %v4758_v16  ;;  %v7267_v28 = vld [vmem:[#allocation37_spill] sm:$0xff]  ;;  %v5406_v6 = vld [vmem:[#allocation4 + $0x230] sm:$0xf0] }
 0x222   :  { %v2062_v60 = vmax.f32 %v1626_v9, 0.0  ;;  %v6337_v42 = vadd.f32 %v1726_v44, %v1678_v30  ;;  %1774 = vmatmul.bf16.gmra.mxu2 %v6061_v61  ;;  %1872 = vmatmul.bf16.gmra.mxu0 %v7263_v49 }
 0x223   :  { %1921 = vmatmul.bf16.gmra.mxu1 %v7264_v29  ;;  %1993 = vmatpush.bf16.msrb.mxu3 %v4563_v27  ;;  %v5340_v29 = vld [vmem:[#allocation4 + $0x20] sm:$0xf0]  ;;  %v4651_v27 = vor.u32 %v5337_v54, %v4650_v21  ;;  %v5430_v21 = vld [vmem:[#allocation4 + $0x2f0] sm:$0xf0] }
 0x224   :  { %1823 = vmatmul.bf16.gmra.mxu3 %v6065_v3  ;;  %v6343_v36 = vpack.c.bf16 %v2062_v60, %v2059_v20  ;;  %v4663_v60 = vor.u32 %v5340_v29, %v4662_v10  ;;  %2810 = vmatpush.bf16.msrb.mxu1 %v4759_v52  ;;  %v5022_v52 = vld [vmem:[#allocation4 + $0x2e8] sm:$0xf] }
 0x225   :  { %v1579_v35 = vpop.f32.mrf.mxu2 }
 0x226   :  { %7265 = vst [vmem:[#allocation8_spill] sm:$0xff] %v6343_v36  ;;  %v1580_v15 = vadd.f32 %v1579_v35, %v7266_v17  ;;  %2761 = vmatpush.bf16.msrb.mxu0 %v4663_v60  ;;  %v5361_v17 = vld [vmem:[#allocation4 + $0xc8] sm:$0xf0]  ;;  %v4926_v60 = vld [vmem:[#allocation4 + $0x228] sm:$0xf] }
 0x227   :  { %v1628_v9 = vpop.f32.mrf.mxu3  ;;  %v1679_v30 = vpop.f32.mrf.mxu0  ;;  %v5363_v36 = vld [vmem:[#allocation4 + $0xdc] sm:$0xf] }
 0x228   :  { %v1629_v44 = vadd.f32 %v1628_v9, %v1580_v15  ;;  %v1680_v49 = vadd.f32 %v1679_v30, %v6259_v50  ;;  %v1728_v39 = vpop.f32.mrf.mxu1  ;;  %v4747_v9 = vor.u32 %v5361_v17, %v4746_v18 }
 0x22a   :  { %v6347_v20 = vadd.f32 %v1728_v39, %v1680_v49  ;;  %2762 = vmatpush.bf16.msrb.mxu0 %v4651_v27  ;;  %2811 = vmatpush.bf16.msrb.mxu1 %v4747_v9  ;;  %v2065_v10 = vmax.f32 %v1629_v44, 0.0  ;;  %v5023_v44 = vor.u32 %v5430_v21, %v5022_v52  ;;  %v4914_v52 = vld [vmem:[#allocation4 + $0x210] sm:$0xf] }
 0x22c   :  { %2902 = vmatpush.bf16.msra.mxu3 %v5023_v44 }
 0x22d   :  { %v1581_v25 = vpop.f32.mrf.mxu2 }
 0x22e   :  { %v1582_v35 = vadd.f32 %v1581_v25, %v7267_v28  ;;  %v4927_v25 = vor.u32 %v5406_v6, %v4926_v60 }
 0x22f   :  { %v1630_v7 = vpop.f32.mrf.mxu3  ;;  %v1682_v15 = vpop.f32.mrf.mxu0 }
 0x230   :  { %v1631_v30 = vadd.f32 %v1630_v7, %v1582_v35  ;;  %v1683_v49 = vadd.f32 %v1682_v15, %v6259_v50  ;;  %v1731_v39 = vpop.f32.mrf.mxu1  ;;  %2853 = vmatpush.bf16.msra.mxu2 %v4927_v25  ;;  %v5010_v25 = vld [vmem:[#allocation4 + $0x2d0] sm:$0xf] }
 0x232   :  { %v2068_v29 = vmax.f32 %v1631_v30, 0.0  ;;  %v6351_v16 = vadd.f32 %v1731_v39, %v1683_v49  ;;  %1779 = vmatmul.bf16.gmra.mxu2 %v6084_v59  ;;  %1877 = vmatmul.bf16.gmra.mxu0 %v5848_v43 }
 0x233   :  { %1926 = vmatmul.bf16.gmra.mxu1 %v5854_v46 }
 0x234   :  { %1828 = vmatmul.bf16.gmra.mxu3 %v6088_v48  ;;  %v6357_v54 = vpack.c.bf16 %v2068_v29, %v2065_v10 }
 0x235   :  { %v1584_v18 = vpop.f32.mrf.mxu2 }
 0x236   :  { %7268 = vst [vmem:[#allocation9_spill] sm:$0xff] %v6357_v54  ;;  %v1585_v28 = vadd.f32 %v1584_v18, %v6226_v1  ;;  %v4664_v54 = vld [vmem:[#allocation4 + $0x24] sm:$0xf0] }
 0x237   :  { %v1633_v35 = vpop.f32.mrf.mxu3  ;;  %v1684_v7 = vpop.f32.mrf.mxu0 }
 0x238   :  { %v1634_v43 = vadd.f32 %v1633_v35, %v1585_v28  ;;  %v1685_v27 = vadd.f32 %v1684_v7, %v6259_v50  ;;  %v1733_v17 = vpop.f32.mrf.mxu1  ;;  %v5427_v28 = vld [vmem:[#allocation4 + $0x2d8] sm:$0xf0] }
 0x23a   :  { %v6361_v46 = vadd.f32 %v1733_v17, %v1685_v27  ;;  %v2071_v1 = vmax.f32 %v1634_v43, 0.0  ;;  %v5011_v43 = vor.u32 %v5427_v28, %v5010_v25  ;;  %v7270_v25 = vld [vmem:[#allocation10_spill] sm:$0xff]  ;;  %v7271_v28 = vld [vmem:[#allocation11_spill] sm:$0xff] }
 0x23c   :  { %2903 = vmatpush.bf16.msra.mxu3 %v5011_v43  ;;  %v5381_v43 = vld [vmem:[#allocation4 + $0x16c] sm:$0xf] }
 0x23d   :  { %v1586_v15 = vpop.f32.mrf.mxu2 }
 0x23e   :  { %v1587_v9 = vadd.f32 %v1586_v15, %v6237_v8  ;;  %v5403_v8 = vld [vmem:[#allocation4 + $0x218] sm:$0xf0] }
 0x23f   :  { %v1635_v30 = vpop.f32.mrf.mxu3  ;;  %v1687_v49 = vpop.f32.mrf.mxu0  ;;  %v4915_v44 = vor.u32 %v5403_v8, %v4914_v52 }
 0x240   :  { %v1636_v39 = vadd.f32 %v1635_v30, %v1587_v9  ;;  %v1688_v10 = vadd.f32 %v1687_v49, %v6259_v50  ;;  %v1736_v29 = vpop.f32.mrf.mxu1  ;;  %v5490_v9 = vld [vmem:[%s7182_s4] sm:$0x7] }
 0x241   :  { %2854 = vmatpush.bf16.msra.mxu2 %v4915_v44  ;;  %v6380_v30 = vperm.slane %v5490_v9, 2  ;;  %v4736_v44 = vld [vmem:[#allocation4 + $0xb4] sm:$0xf0] }
 0x242   :  { %v2074_v60 = vmax.f32 %v1636_v39, 0.0  ;;  %v6365_v6 = vadd.f32 %v1736_v29, %v1688_v10  ;;  %1784 = vmatmul.bf16.gmra.mxu2 %v6115_v12  ;;  %1882 = vmatmul.bf16.gmra.mxu0 %v5885_v34 }
 0x243   :  { %1931 = vmatmul.bf16.gmra.mxu1 %v5890_v41 }
 0x244   :  { %1833 = vmatmul.bf16.gmra.mxu3 %v6119_v58  ;;  %v6371_v21 = vpack.c.bf16 %v2074_v60, %v2071_v1 }
 0x245   :  { %v1589_v18 = vpop.f32.mrf.mxu2 }
 0x246   :  { %7269 = vst [vmem:[#allocation34_spill] sm:$0xff] %v6371_v21  ;;  %v1590_v35 = vadd.f32 %v1589_v18, %v6244_v45  ;;  %v5357_v18 = vld [vmem:[#allocation4 + $0xac] sm:$0xf] }
 0x247   :  { %v1638_v7 = vpop.f32.mrf.mxu3  ;;  %v1689_v27 = vpop.f32.mrf.mxu0 }
 0x248   :  { %v1639_v17 = vadd.f32 %v1638_v7, %v1590_v35  ;;  %v1690_v34 = vadd.f32 %v1689_v27, %v6259_v50  ;;  %v1738_v15 = vpop.f32.mrf.mxu1  ;;  %v4902_v35 = vld [vmem:[#allocation4 + $0x1f8] sm:$0xf]  ;;  %v5400_v7 = vld [vmem:[#allocation4 + $0x200] sm:$0xf0] }
 0x249   :  { %v4903_v27 = vor.u32 %v5400_v7, %v4902_v35 }
 0x24a   :  { %v6375_v41 = vadd.f32 %v1738_v15, %v1690_v34  ;;  %v2077_v50 = vmax.f32 %v1639_v17, 0.0  ;;  %v4832_v34 = vld [vmem:[#allocation4 + $0x174] sm:$0xf0]  ;;  %v5424_v15 = vld [vmem:[#allocation4 + $0x2c0] sm:$0xf0] }
 0x24b   :  { %v4998_v17 = vld [vmem:[#allocation4 + $0x2b8] sm:$0xf]  ;;  %2855 = vmatpush.bf16.msra.mxu2 %v4903_v27 }
 0x24d   :  { %v1591_v49 = vpop.f32.mrf.mxu2 }
 0x24e   :  { %v1592_v45 = vadd.f32 %v1591_v49, %v6255_v2  ;;  %v4739_v2 = vor.u32 %v5357_v18, %v4736_v44 }
 0x24f   :  { %v1640_v39 = vpop.f32.mrf.mxu3  ;;  %v1848_v10 = vpop.f32.mrf.mxu0 }
 0x250   :  { %v1641_v29 = vadd.f32 %v1640_v39, %v1592_v45  ;;  %v1849_v1 = vadd.f32 %v1848_v10, %v6380_v30  ;;  %v1897_v60 = vpop.f32.mrf.mxu1  ;;  %2951 = vmatpush.bf16.msra.mxu0 %v4739_v2  ;;  %v4999_v45 = vor.u32 %v5424_v15, %v4998_v17  ;;  %v7273_v17 = vld [vmem:[#allocation12_spill] sm:$0xff]  ;;  %v5354_v15 = vld [vmem:[#allocation4 + $0x94] sm:$0xf] }
 0x252   :  { %v2080_v52 = vmax.f32 %v1641_v29, 0.0  ;;  %v6384_v8 = vadd.f32 %v1897_v60, %v1849_v1  ;;  %1945 = vmatmul.bf16.vlgmr.msrb.gmra.mxu2 %v5922_v31  ;;  %2763 = vmatmul.bf16.vlgmr.msrb.gmra.mxu0 %v7270_v25  ;;  %v4835_v31 = vor.u32 %v5381_v43, %v4832_v34 }
 0x253   :  { %2812 = vmatmul.bf16.vlgmr.msrb.gmra.mxu1 %v7271_v28  ;;  %2904 = vmatpush.bf16.msra.mxu3 %v4999_v45  ;;  %v4890_v45 = vld [vmem:[#allocation4 + $0x1e0] sm:$0xf] }
 0x254   :  { %1994 = vmatmul.bf16.vlgmr.msrb.gmra.mxu3 %v5927_v5  ;;  %v6390_v9 = vpack.c.bf16 %v2080_v52, %v2077_v50  ;;  %3000 = vmatpush.bf16.msra.mxu1 %v4835_v31  ;;  %v7274_v31 = vld [vmem:[#allocation13_spill] sm:$0xff] }
 0x255   :  { %v1750_v49 = vpop.f32.mrf.mxu2 }
 0x256   :  { %7272 = vst [vmem:[#allocation37_spill] sm:$0xff] %v6390_v9  ;;  %v1751_v39 = vadd.f32 %v1750_v49, %v6265_v47  ;;  %v4724_v49 = vld [vmem:[#allocation4 + $0x9c] sm:$0xf0] }
 0x257   :  { %v1799_v10 = vpop.f32.mrf.mxu3  ;;  %v1850_v5 = vpop.f32.mrf.mxu0 }
 0x258   :  { %v1800_v29 = vadd.f32 %v1799_v10, %v1751_v39  ;;  %v1851_v1 = vadd.f32 %v1850_v5, %v6380_v30  ;;  %v1899_v60 = vpop.f32.mrf.mxu1  ;;  %v5397_v39 = vld [vmem:[#allocation4 + $0x1e8] sm:$0xf0]  ;;  %v5378_v10 = vld [vmem:[#allocation4 + $0x154] sm:$0xf] }
 0x25a   :  { %v6394_v18 = vadd.f32 %v1899_v60, %v1851_v1  ;;  %v2036_v43 = vmax.f32 %v1800_v29, 0.0  ;;  %v4891_v29 = vor.u32 %v5397_v39, %v4890_v45  ;;  %v4820_v1 = vld [vmem:[#allocation4 + $0x15c] sm:$0xf0] }
 0x25b   :  { %v4986_v60 = vld [vmem:[#allocation4 + $0x2a0] sm:$0xf] }
 0x25c   :  { %2856 = vmatpush.bf16.msra.mxu2 %v4891_v29 }
 0x25d   :  { %v1752_v44 = vpop.f32.mrf.mxu2 }
 0x25e   :  { %v1753_v50 = vadd.f32 %v1752_v44, %v6277_v4  ;;  %v4727_v4 = vor.u32 %v5354_v15, %v4724_v49  ;;  %v5421_v44 = vld [vmem:[#allocation4 + $0x2a8] sm:$0xf0] }
 0x25f   :  { %v1801_v52 = vpop.f32.mrf.mxu3  ;;  %v1853_v2 = vpop.f32.mrf.mxu0 }
 0x260   :  { %v1802_v35 = vadd.f32 %v1801_v52, %v1753_v50  ;;  %v1854_v7 = vadd.f32 %v1853_v2, %v6380_v30  ;;  %v1902_v47 = vpop.f32.mrf.mxu1  ;;  %2952 = vmatpush.bf16.msra.mxu0 %v4727_v4  ;;  %v4987_v52 = vor.u32 %v5421_v44, %v4986_v60  ;;  %v7276_v44 = vld [vmem:[#allocation14_spill] sm:$0xff] }
 0x262   :  { %v2039_v27 = vmax.f32 %v1802_v35, 0.0  ;;  %v6398_v34 = vadd.f32 %v1902_v47, %v1854_v7  ;;  %1950 = vmatmul.bf16.gmra.mxu2 %v5959_v19  ;;  %2768 = vmatmul.bf16.gmra.mxu0 %v7273_v17  ;;  %v4823_v19 = vor.u32 %v5378_v10, %v4820_v1 }
 0x263   :  { %2817 = vmatmul.bf16.gmra.mxu1 %v7274_v31  ;;  %2905 = vmatpush.bf16.msra.mxu3 %v4987_v52  ;;  %v7277_v52 = vld [vmem:[#allocation15_spill] sm:$0xff] }
 0x264   :  { %1999 = vmatmul.bf16.gmra.mxu3 %v5964_v32  ;;  %v6404_v5 = vpack.c.bf16 %v2039_v27, %v2036_v43  ;;  %3001 = vmatpush.bf16.msra.mxu1 %v4823_v19  ;;  %v4712_v19 = vld [vmem:[#allocation4 + $0x84] sm:$0xf0] }
 0x265   :  { %v1755_v50 = vpop.f32.mrf.mxu2 }
 0x266   :  { %7275 = vst [vmem:[#allocation10_spill] sm:$0xff] %v6404_v5  ;;  %v1756_v2 = vadd.f32 %v1755_v50, %v6281_v33  ;;  %v5351_v50 = vld [vmem:[#allocation4 + $0x7c] sm:$0xf] }
 0x267   :  { %v1804_v35 = vpop.f32.mrf.mxu3  ;;  %v1855_v32 = vpop.f32.mrf.mxu0 }
 0x268   :  { %v1805_v7 = vadd.f32 %v1804_v35, %v1756_v2  ;;  %v1856_v47 = vadd.f32 %v1855_v32, %v6380_v30  ;;  %v1904_v43 = vpop.f32.mrf.mxu1  ;;  %v4878_v2 = vld [vmem:[#allocation4 + $0x1c8] sm:$0xf]  ;;  %v5394_v35 = vld [vmem:[#allocation4 + $0x1d0] sm:$0xf0]  ;;  %v5375_v32 = vld [vmem:[#allocation4 + $0x13c] sm:$0xf] }
 0x26a   :  { %v6408_v27 = vadd.f32 %v1904_v43, %v1856_v47  ;;  %v2042_v1 = vmax.f32 %v1805_v7, 0.0  ;;  %v4879_v47 = vor.u32 %v5394_v35, %v4878_v2  ;;  %v4808_v43 = vld [vmem:[#allocation4 + $0x144] sm:$0xf0] }
 0x26b   :  { %v4974_v7 = vld [vmem:[#allocation4 + $0x288] sm:$0xf] }
 0x26c   :  { %2857 = vmatpush.bf16.msra.mxu2 %v4879_v47 }
 0x26d   :  { %v1757_v15 = vpop.f32.mrf.mxu2 }
 0x26e   :  { %v1758_v49 = vadd.f32 %v1757_v15, %v6291_v37  ;;  %v4715_v37 = vor.u32 %v5351_v50, %v4712_v19  ;;  %v5418_v15 = vld [vmem:[#allocation4 + $0x290] sm:$0xf0] }
 0x26f   :  { %v1806_v45 = vpop.f32.mrf.mxu3  ;;  %v1858_v4 = vpop.f32.mrf.mxu0 }
 0x270   :  { %v1807_v39 = vadd.f32 %v1806_v45, %v1758_v49  ;;  %v1859_v10 = vadd.f32 %v1858_v4, %v6380_v30  ;;  %v1907_v33 = vpop.f32.mrf.mxu1  ;;  %2953 = vmatpush.bf16.msra.mxu0 %v4715_v37  ;;  %v4975_v4 = vor.u32 %v5418_v15, %v4974_v7 }
 0x272   :  { %v2045_v29 = vmax.f32 %v1807_v39, 0.0  ;;  %v6412_v60 = vadd.f32 %v1907_v33, %v1859_v10  ;;  %1955 = vmatmul.bf16.gmra.mxu2 %v5993_v22  ;;  %2773 = vmatmul.bf16.gmra.mxu0 %v7276_v44  ;;  %v4811_v22 = vor.u32 %v5375_v32, %v4808_v43 }
 0x273   :  { %2822 = vmatmul.bf16.gmra.mxu1 %v7277_v52  ;;  %2906 = vmatpush.bf16.msra.mxu3 %v4975_v4  ;;  %v4700_v4 = vld [vmem:[#allocation4 + $0x6c] sm:$0xf0] }
 0x274   :  { %2004 = vmatmul.bf16.gmra.mxu3 %v5998_v62  ;;  %v6418_v49 = vpack.c.bf16 %v2045_v29, %v2042_v1  ;;  %3002 = vmatpush.bf16.msra.mxu1 %v4811_v22  ;;  %v5348_v22 = vld [vmem:[#allocation4 + $0x64] sm:$0xf] }
 0x275   :  { %v1760_v45 = vpop.f32.mrf.mxu2 }
 0x276   :  { %7278 = vst [vmem:[#allocation11_spill] sm:$0xff] %v6418_v49  ;;  %v1761_v39 = vadd.f32 %v1760_v45, %v6295_v53  ;;  %v7279_v45 = vld [vmem:[#allocation16_spill] sm:$0xff] }
 0x277   :  { %v1809_v10 = vpop.f32.mrf.mxu3  ;;  %v1860_v62 = vpop.f32.mrf.mxu0 }
 0x278   :  { %v1810_v33 = vadd.f32 %v1809_v10, %v1761_v39  ;;  %v1861_v50 = vadd.f32 %v1860_v62, %v6380_v30  ;;  %v1909_v19 = vpop.f32.mrf.mxu1  ;;  %v7280_v39 = vld [vmem:[#allocation17_spill] sm:$0xff]  ;;  %v4866_v10 = vld [vmem:[#allocation4 + $0x1b0] sm:$0xf]  ;;  %v5391_v62 = vld [vmem:[#allocation4 + $0x1b8] sm:$0xf0] }
 0x27a   :  { %v6422_v2 = vadd.f32 %v1909_v19, %v1861_v50  ;;  %v2048_v7 = vmax.f32 %v1810_v33, 0.0  ;;  %v5372_v50 = vld [vmem:[#allocation4 + $0x124] sm:$0xf]  ;;  %v4867_v19 = vor.u32 %v5391_v62, %v4866_v10  ;;  %v4962_v33 = vld [vmem:[#allocation4 + $0x270] sm:$0xf] }
 0x27c   :  { %2858 = vmatpush.bf16.msra.mxu2 %v4867_v19 }
 0x27d   :  { %v1762_v35 = vpop.f32.mrf.mxu2 }
 0x27e   :  { %v1763_v1 = vadd.f32 %v1762_v35, %v6305_v38  ;;  %v4703_v38 = vor.u32 %v5348_v22, %v4700_v4  ;;  %v4796_v35 = vld [vmem:[#allocation4 + $0x12c] sm:$0xf0] }
 0x27f   :  { %v1811_v29 = vpop.f32.mrf.mxu3  ;;  %v1863_v37 = vpop.f32.mrf.mxu0 }
 0x280   :  { %v1812_v32 = vadd.f32 %v1811_v29, %v1763_v1  ;;  %v1864_v43 = vadd.f32 %v1863_v37, %v6380_v30  ;;  %v1912_v53 = vpop.f32.mrf.mxu1  ;;  %v5415_v1 = vld [vmem:[#allocation4 + $0x278] sm:$0xf0]  ;;  %2954 = vmatpush.bf16.msra.mxu0 %v4703_v38 }
 0x282   :  { %v2051_v47 = vmax.f32 %v1812_v32, 0.0  ;;  %v6426_v15 = vadd.f32 %v1912_v53, %v1864_v43  ;;  %1960 = vmatmul.bf16.gmra.mxu2 %v6015_v13  ;;  %2778 = vmatmul.bf16.gmra.mxu0 %v7279_v45  ;;  %v4799_v13 = vor.u32 %v5372_v50, %v4796_v35  ;;  %v4963_v32 = vor.u32 %v5415_v1, %v4962_v33 }
 0x283   :  { %2827 = vmatmul.bf16.gmra.mxu1 %v7280_v39 }
 0x284   :  { %2009 = vmatmul.bf16.gmra.mxu3 %v6020_v57  ;;  %v6432_v29 = vpack.c.bf16 %v2051_v47, %v2048_v7  ;;  %3003 = vmatpush.bf16.msra.mxu1 %v4799_v13  ;;  %v5345_v13 = vld [vmem:[#allocation4 + $0x4c] sm:$0xf] }
 0x285   :  { %v1765_v37 = vpop.f32.mrf.mxu2  ;;  %2907 = vmatpush.bf16.msra.mxu3 %v4963_v32  ;;  %v4688_v32 = vld [vmem:[#allocation4 + $0x54] sm:$0xf0] }
 0x286   :  { %7281 = vst [vmem:[#allocation12_spill] sm:$0xff] %v6432_v29  ;;  %v1766_v43 = vadd.f32 %v1765_v37, %v6309_v55  ;;  %v7282_v37 = vld [vmem:[#allocation18_spill] sm:$0xff] }
 0x287   :  { %v1814_v53 = vpop.f32.mrf.mxu3  ;;  %v1865_v57 = vpop.f32.mrf.mxu0 }
 0x288   :  { %v1815_v22 = vadd.f32 %v1814_v53, %v1766_v43  ;;  %v1866_v4 = vadd.f32 %v1865_v57, %v6380_v30  ;;  %v1914_v10 = vpop.f32.mrf.mxu1  ;;  %v7283_v43 = vld [vmem:[#allocation19_spill] sm:$0xff]  ;;  %v5388_v53 = vld [vmem:[#allocation4 + $0x1a0] sm:$0xf0]  ;;  %v5369_v57 = vld [vmem:[#allocation4 + $0x10c] sm:$0xf] }
 0x28a   :  { %v6436_v62 = vadd.f32 %v1914_v10, %v1866_v4  ;;  %v2054_v33 = vmax.f32 %v1815_v22, 0.0  ;;  %v4784_v10 = vld [vmem:[#allocation4 + $0x114] sm:$0xf0] }
 0x28b   :  { %v4950_v22 = vld [vmem:[#allocation4 + $0x258] sm:$0xf] }
 0x28d   :  { %v1767_v9 = vpop.f32.mrf.mxu2 }
 0x28e   :  { %v1768_v7 = vadd.f32 %v1767_v9, %v6319_v0  ;;  %v4691_v0 = vor.u32 %v5345_v13, %v4688_v32  ;;  %v4854_v9 = vld [vmem:[#allocation4 + $0x198] sm:$0xf] }
 0x28f   :  { %v1816_v47 = vpop.f32.mrf.mxu3  ;;  %v1868_v38 = vpop.f32.mrf.mxu0  ;;  %v4855_v4 = vor.u32 %v5388_v53, %v4854_v9 }
 0x290   :  { %v1817_v50 = vadd.f32 %v1816_v47, %v1768_v7  ;;  %v1869_v35 = vadd.f32 %v1868_v38, %v6380_v30  ;;  %v1917_v55 = vpop.f32.mrf.mxu1  ;;  %v5412_v7 = vld [vmem:[#allocation4 + $0x260] sm:$0xf0]  ;;  %2955 = vmatpush.bf16.msra.mxu0 %v4691_v0 }
 0x291   :  { %2859 = vmatpush.bf16.msra.mxu2 %v4855_v4 }
 0x292   :  { %v2057_v19 = vmax.f32 %v1817_v50, 0.0  ;;  %v6440_v1 = vadd.f32 %v1917_v55, %v1869_v35  ;;  %1965 = vmatmul.bf16.gmra.mxu2 %v6037_v26  ;;  %2783 = vmatmul.bf16.gmra.mxu0 %v7282_v37  ;;  %v4787_v26 = vor.u32 %v5369_v57, %v4784_v10  ;;  %v4951_v50 = vor.u32 %v5412_v7, %v4950_v22 }
 0x293   :  { %2832 = vmatmul.bf16.gmra.mxu1 %v7283_v43 }
 0x294   :  { %2014 = vmatmul.bf16.gmra.mxu3 %v6042_v40  ;;  %v6446_v47 = vpack.c.bf16 %v2057_v19, %v2054_v33  ;;  %3004 = vmatpush.bf16.msra.mxu1 %v4787_v26  ;;  %v5342_v26 = vld [vmem:[#allocation4 + $0x34] sm:$0xf] }
 0x295   :  { %v1770_v38 = vpop.f32.mrf.mxu2  ;;  %2908 = vmatpush.bf16.msra.mxu3 %v4951_v50  ;;  %v4676_v50 = vld [vmem:[#allocation4 + $0x3c] sm:$0xf0] }
 0x296   :  { %7284 = vst [vmem:[#allocation13_spill] sm:$0xff] %v6446_v47  ;;  %v1771_v35 = vadd.f32 %v1770_v38, %v6323_v23  ;;  %v7285_v38 = vld [vmem:[#allocation20_spill] sm:$0xff] }
 0x297   :  { %v1819_v55 = vpop.f32.mrf.mxu3  ;;  %v1870_v40 = vpop.f32.mrf.mxu0 }
 0x298   :  { %v1820_v13 = vadd.f32 %v1819_v55, %v1771_v35  ;;  %v1871_v32 = vadd.f32 %v1870_v40, %v6380_v30  ;;  %v1919_v9 = vpop.f32.mrf.mxu1  ;;  %v7286_v35 = vld [vmem:[#allocation21_spill] sm:$0xff]  ;;  %v5366_v40 = vld [vmem:[#allocation4 + $0xf4] sm:$0xf] }
 0x299   :  { %v5385_v55 = vld [vmem:[#allocation4 + $0x188] sm:$0xf0] }
 0x29a   :  { %v6450_v53 = vadd.f32 %v1919_v9, %v1871_v32  ;;  %v2060_v22 = vmax.f32 %v1820_v13, 0.0  ;;  %v4772_v9 = vld [vmem:[#allocation4 + $0xfc] sm:$0xf0] }
 0x29b   :  { %v4938_v13 = vld [vmem:[#allocation4 + $0x240] sm:$0xf] }
 0x29d   :  { %v1772_v21 = vpop.f32.mrf.mxu2 }
 0x29e   :  { %v1773_v33 = vadd.f32 %v1772_v21, %v6333_v14  ;;  %v4679_v14 = vor.u32 %v5342_v26, %v4676_v50  ;;  %v4842_v21 = vld [vmem:[#allocation4 + $0x180] sm:$0xf] }
 0x29f   :  { %v1821_v19 = vpop.f32.mrf.mxu3  ;;  %v1873_v0 = vpop.f32.mrf.mxu0  ;;  %v4843_v32 = vor.u32 %v5385_v55, %v4842_v21  ;;  %v5339_v55 = vld [vmem:[#allocation4 + $0x1c] sm:$0xf] }
 0x2a0   :  { %v1822_v57 = vadd.f32 %v1821_v19, %v1773_v33  ;;  %v1874_v10 = vadd.f32 %v1873_v0, %v6380_v30  ;;  %v1922_v23 = vpop.f32.mrf.mxu1  ;;  %v5409_v33 = vld [vmem:[#allocation4 + $0x248] sm:$0xf0]  ;;  %2956 = vmatpush.bf16.msra.mxu0 %v4679_v14  ;;  %v4760_v14 = vld [vmem:[#allocation4 + $0xe4] sm:$0xf0] }
 0x2a1   :  { %2860 = vmatpush.bf16.msra.mxu2 %v4843_v32  ;;  %v4652_v32 = vld [vmem:[#allocation4 + $0xc] sm:$0xf0] }
 0x2a2   :  { %v2063_v4 = vmax.f32 %v1822_v57, 0.0  ;;  %v6454_v7 = vadd.f32 %v1922_v23, %v1874_v10  ;;  %1970 = vmatmul.bf16.gmra.mxu2 %v6061_v61  ;;  %2788 = vmatmul.bf16.gmra.mxu0 %v7285_v38  ;;  %v4775_v61 = vor.u32 %v5366_v40, %v4772_v9  ;;  %v4939_v57 = vor.u32 %v5409_v33, %v4938_v13  ;;  %v5360_v13 = vld [vmem:[#allocation4 + $0xc4] sm:$0xf] }
 0x2a3   :  { %2837 = vmatmul.bf16.gmra.mxu1 %v7286_v35  ;;  %v4763_v40 = vor.u32 %v5363_v36, %v4760_v14  ;;  %v5405_v14 = vld [vmem:[#allocation4 + $0x22c] sm:$0xf] }
 0x2a4   :  { %2019 = vmatmul.bf16.gmra.mxu3 %v6065_v3  ;;  %v6460_v19 = vpack.c.bf16 %v2063_v4, %v2060_v22  ;;  %3005 = vmatpush.bf16.msra.mxu1 %v4775_v61  ;;  %v4667_v4 = vor.u32 %v5339_v55, %v4664_v54 }
 0x2a5   :  { %v1775_v0 = vpop.f32.mrf.mxu2  ;;  %2909 = vmatpush.bf16.msra.mxu3 %v4939_v57  ;;  %v4748_v57 = vld [vmem:[#allocation4 + $0xcc] sm:$0xf0] }
 0x2a6   :  { %7287 = vst [vmem:[#allocation14_spill] sm:$0xff] %v6460_v19  ;;  %v1776_v10 = vadd.f32 %v1775_v0, %v6337_v42  ;;  %2957 = vmatpush.bf16.msra.mxu0 %v4667_v4  ;;  %v5336_v42 = vld [vmem:[#allocation4 + $0x4] sm:$0xf]  ;;  %v7288_v4 = vld [vmem:[#allocation22_spill] sm:$0xff] }
 0x2a7   :  { %v1824_v23 = vpop.f32.mrf.mxu3  ;;  %v1875_v3 = vpop.f32.mrf.mxu0  ;;  %v4655_v61 = vor.u32 %v5336_v42, %v4652_v32  ;;  %v5024_v32 = vld [vmem:[#allocation4 + $0x2f4] sm:$0xf0] }
 0x2a8   :  { %v1825_v26 = vadd.f32 %v1824_v23, %v1776_v10  ;;  %v1876_v50 = vadd.f32 %v1875_v3, %v6380_v30  ;;  %v1924_v21 = vpop.f32.mrf.mxu1  ;;  %3006 = vmatpush.bf16.msra.mxu1 %v4763_v40  ;;  %v4751_v23 = vor.u32 %v5360_v13, %v4748_v57  ;;  %v4928_v40 = vld [vmem:[#allocation4 + $0x234] sm:$0xf0] }
 0x2a9   :  { %v4931_v42 = vor.u32 %v5405_v14, %v4928_v40 }
 0x2aa   :  { %v6464_v22 = vadd.f32 %v1924_v21, %v1876_v50  ;;  %2958 = vmatpush.bf16.msra.mxu0 %v4655_v61  ;;  %v2066_v36 = vmax.f32 %v1825_v26, 0.0 }
 0x2ab   :  { %3049 = vmatpush.bf16.msrb.mxu2 %v4931_v42 }
 0x2ac   :  { %3007 = vmatpush.bf16.msra.mxu1 %v4751_v23 }
 0x2ad   :  { %v1777_v9 = vpop.f32.mrf.mxu2 }
 0x2ae   :  { %v1778_v33 = vadd.f32 %v1777_v9, %v6347_v20  ;;  %v7289_v20 = vld [vmem:[#allocation23_spill] sm:$0xff]  ;;  %v5429_v9 = vld [vmem:[#allocation4 + $0x2ec] sm:$0xf] }
 0x2af   :  { %v1826_v0 = vpop.f32.mrf.mxu3  ;;  %v1878_v10 = vpop.f32.mrf.mxu0  ;;  %v5027_v26 = vor.u32 %v5429_v9, %v5024_v32  ;;  %v7291_v32 = vld [vmem:[#allocation24_spill] sm:$0xff] }
 0x2b0   :  { %v1827_v3 = vadd.f32 %v1826_v0, %v1778_v33  ;;  %v1879_v50 = vadd.f32 %v1878_v10, %v6380_v30  ;;  %v1927_v21 = vpop.f32.mrf.mxu1 }
 0x2b1   :  { %3098 = vmatpush.bf16.msrb.mxu3 %v5027_v26  ;;  %v5402_v26 = vld [vmem:[#allocation4 + $0x214] sm:$0xf] }
 0x2b2   :  { %v2069_v54 = vmax.f32 %v1827_v3, 0.0  ;;  %v6468_v55 = vadd.f32 %v1927_v21, %v1879_v50  ;;  %1975 = vmatmul.bf16.gmra.mxu2 %v6084_v59  ;;  %2793 = vmatmul.bf16.gmra.mxu0 %v7288_v4 }
 0x2b3   :  { %2842 = vmatmul.bf16.gmra.mxu1 %v7289_v20 }
 0x2b4   :  { %2024 = vmatmul.bf16.gmra.mxu3 %v6088_v48  ;;  %v6474_v13 = vpack.c.bf16 %v2069_v54, %v2066_v36 }
 0x2b5   :  { %v1780_v33 = vpop.f32.mrf.mxu2 }
 0x2b6   :  { %7290 = vst [vmem:[#allocation15_spill] sm:$0xff] %v6474_v13  ;;  %v1781_v0 = vadd.f32 %v1780_v33, %v6351_v16  ;;  %v7292_v33 = vld [vmem:[#allocation25_spill] sm:$0xff] }
 0x2b7   :  { %v1829_v61 = vpop.f32.mrf.mxu3  ;;  %v1880_v59 = vpop.f32.mrf.mxu0 }
 0x2b8   :  { %v1830_v57 = vadd.f32 %v1829_v61, %v1781_v0  ;;  %v1881_v48 = vadd.f32 %v1880_v59, %v6380_v30  ;;  %v1929_v10 = vpop.f32.mrf.mxu1  ;;  %v5426_v0 = vld [vmem:[#allocation4 + $0x2d4] sm:$0xf] }
 0x2ba   :  { %v6478_v23 = vadd.f32 %v1929_v10, %v1881_v48  ;;  %v2072_v16 = vmax.f32 %v1830_v57, 0.0  ;;  %v5012_v10 = vld [vmem:[#allocation4 + $0x2dc] sm:$0xf0] }
 0x2bd   :  { %v1782_v3 = vpop.f32.mrf.mxu2 }
 0x2be   :  { %v1783_v50 = vadd.f32 %v1782_v3, %v6361_v46  ;;  %v4916_v46 = vld [vmem:[#allocation4 + $0x21c] sm:$0xf0] }
 0x2bf   :  { %v1831_v21 = vpop.f32.mrf.mxu3  ;;  %v1883_v36 = vpop.f32.mrf.mxu0  ;;  %v4919_v48 = vor.u32 %v5402_v26, %v4916_v46 }
 0x2c0   :  { %v1832_v54 = vadd.f32 %v1831_v21, %v1783_v50  ;;  %v1884_v14 = vadd.f32 %v1883_v36, %v6380_v30  ;;  %v1932_v40 = vpop.f32.mrf.mxu1  ;;  %v5015_v50 = vor.u32 %v5426_v0, %v5012_v10 }
 0x2c1   :  { %3050 = vmatpush.bf16.msrb.mxu2 %v4919_v48 }
 0x2c2   :  { %v2075_v9 = vmax.f32 %v1832_v54, 0.0  ;;  %v6482_v42 = vadd.f32 %v1932_v40, %v1884_v14  ;;  %1980 = vmatmul.bf16.gmra.mxu2 %v6115_v12  ;;  %2798 = vmatmul.bf16.gmra.mxu0 %v7291_v32  ;;  %v6495_v54 = vld [vmem:[%s7184_s6] sm:$0x7] }
 0x2c3   :  { %2847 = vmatmul.bf16.gmra.mxu1 %v7292_v33  ;;  %3099 = vmatpush.bf16.msrb.mxu3 %v5015_v50  ;;  %v6500_v40 = vperm.slane %v6495_v54, 0  ;;  %v5359_v50 = vld [vmem:[#allocation4 + $0xb8] sm:$0xf0] }
 0x2c4   :  { %2029 = vmatmul.bf16.gmra.mxu3 %v6119_v58  ;;  %v6488_v61 = vpack.c.bf16 %v2075_v9, %v2072_v16 }
 0x2c5   :  { %v1785_v59 = vpop.f32.mrf.mxu2 }
 0x2c6   :  { %7293 = vst [vmem:[#allocation16_spill] sm:$0xff] %v6488_v61  ;;  %v1786_v57 = vadd.f32 %v1785_v59, %v6365_v6 }
 0x2c7   :  { %v1834_v3 = vpop.f32.mrf.mxu3  ;;  %v1885_v21 = vpop.f32.mrf.mxu0 }
 0x2c8   :  { %v1835_v12 = vadd.f32 %v1834_v3, %v1786_v57  ;;  %v1886_v36 = vadd.f32 %v1885_v21, %v6380_v30  ;;  %v1934_v58 = vpop.f32.mrf.mxu1  ;;  %v7294_v57 = vld [vmem:[#allocation26_spill] sm:$0xff]  ;;  %v7295_v21 = vld [vmem:[#allocation27_spill] sm:$0xff] }
 0x2c9   :  { %v4742_v3 = vld [vmem:[#allocation4 + $0xb0] sm:$0xf] }
 0x2ca   :  { %v6497_v14 = vadd.f32 %v1934_v58, %v1886_v36  ;;  %v2078_v59 = vmax.f32 %v1835_v12, 0.0  ;;  %v5399_v36 = vld [vmem:[#allocation4 + $0x1fc] sm:$0xf]  ;;  %v4904_v58 = vld [vmem:[#allocation4 + $0x204] sm:$0xf0] }
 0x2cb   :  { %v5423_v12 = vld [vmem:[#allocation4 + $0x2bc] sm:$0xf] }
 0x2cd   :  { %v1787_v6 = vpop.f32.mrf.mxu2 }
 0x2ce   :  { %v1788_v16 = vadd.f32 %v1787_v6, %v6375_v41  ;;  %v4743_v41 = vor.u32 %v5359_v50, %v4742_v3  ;;  %v4838_v6 = vld [vmem:[#allocation4 + $0x170] sm:$0xf] }
 0x2cf   :  { %v1836_v9 = vpop.f32.mrf.mxu3  ;;  %v2764_v26 = vpop.f32.mrf.mxu0 }
 0x2d0   :  { %v1837_v46 = vadd.f32 %v1836_v9, %v1788_v16  ;;  %v2765_v30 = vadd.f32 %v2764_v26, %v6500_v40  ;;  %v2813_v0 = vpop.f32.mrf.mxu1  ;;  %v4907_v16 = vor.u32 %v5399_v36, %v4904_v58  ;;  %v5383_v9 = vld [vmem:[#allocation4 + $0x178] sm:$0xf0]  ;;  %v5000_v26 = vld [vmem:[#allocation4 + $0x2c4] sm:$0xf0]  ;;  %3147 = vmatpush.bf16.msrb.mxu0 %v4743_v41 }
 0x2d1   :  { %v5003_v61 = vor.u32 %v5423_v12, %v5000_v26 }
 0x2d2   :  { %v2081_v48 = vmax.f32 %v1837_v46, 0.0  ;;  %v6504_v10 = vadd.f32 %v2813_v0, %v2765_v30  ;;  %2861 = vmatmul.bf16.vlgmr.msra.gmra.mxu2 %v7294_v57  ;;  %2959 = vmatmul.bf16.vlgmr.msra.gmra.mxu0 %v7270_v25  ;;  %v4839_v0 = vor.u32 %v5383_v9, %v4838_v6 }
 0x2d3   :  { %3008 = vmatmul.bf16.vlgmr.msra.gmra.mxu1 %v7271_v28  ;;  %3051 = vmatpush.bf16.msrb.mxu2 %v4907_v16 }
 0x2d4   :  { %2910 = vmatmul.bf16.vlgmr.msra.gmra.mxu3 %v7295_v21  ;;  %v6510_v46 = vpack.c.bf16 %v2081_v48, %v2078_v59  ;;  %3196 = vmatpush.bf16.msrb.mxu1 %v4839_v0  ;;  %v4826_v0 = vld [vmem:[#allocation4 + $0x158] sm:$0xf] }
 0x2d5   :  { %v1946_v30 = vpop.f32.mrf.mxu2  ;;  %3100 = vmatpush.bf16.msrb.mxu3 %v5003_v61  ;;  %v7297_v61 = vld [vmem:[#allocation28_spill] sm:$0xff] }
 0x2d6   :  { %7296 = vst [vmem:[#allocation17_spill] sm:$0xff] %v6510_v46  ;;  %v1947_v13 = vadd.f32 %v1946_v30, %v6384_v8  ;;  %v4892_v30 = vld [vmem:[#allocation4 + $0x1ec] sm:$0xf0] }
 0x2d7   :  { %v1995_v19 = vpop.f32.mrf.mxu3  ;;  %v2766_v51 = vpop.f32.mrf.mxu0 }
 0x2d8   :  { %v1996_v3 = vadd.f32 %v1995_v19, %v1947_v13  ;;  %v2767_v50 = vadd.f32 %v2766_v51, %v6500_v40  ;;  %v2815_v36 = vpop.f32.mrf.mxu1  ;;  %v4730_v51 = vld [vmem:[#allocation4 + $0x98] sm:$0xf]  ;;  %v5356_v19 = vld [vmem:[#allocation4 + $0xa0] sm:$0xf0]  ;;  %v7298_v13 = vld [vmem:[#allocation29_spill] sm:$0xff] }
 0x2da   :  { %v6514_v58 = vadd.f32 %v2815_v36, %v2767_v50  ;;  %v2037_v12 = vmax.f32 %v1996_v3, 0.0  ;;  %v5380_v36 = vld [vmem:[#allocation4 + $0x160] sm:$0xf0] }
 0x2dd   :  { %v1948_v47 = vpop.f32.mrf.mxu2 }
 0x2de   :  { %v1949_v59 = vadd.f32 %v1948_v47, %v6394_v18  ;;  %v4731_v18 = vor.u32 %v5356_v19, %v4730_v51  ;;  %v5396_v47 = vld [vmem:[#allocation4 + $0x1e4] sm:$0xf] }
 0x2df   :  { %v1997_v48 = vpop.f32.mrf.mxu3  ;;  %v2769_v41 = vpop.f32.mrf.mxu0  ;;  %v4895_v3 = vor.u32 %v5396_v47, %v4892_v30 }
 0x2e0   :  { %v1998_v6 = vadd.f32 %v1997_v48, %v1949_v59  ;;  %v2770_v9 = vadd.f32 %v2769_v41, %v6500_v40  ;;  %v2818_v8 = vpop.f32.mrf.mxu1  ;;  %v5420_v59 = vld [vmem:[#allocation4 + $0x2a4] sm:$0xf]  ;;  %v4988_v48 = vld [vmem:[#allocation4 + $0x2ac] sm:$0xf0]  ;;  %3148 = vmatpush.bf16.msrb.mxu0 %v4731_v18 }
 0x2e1   :  { %3052 = vmatpush.bf16.msrb.mxu2 %v4895_v3 }
 0x2e2   :  { %v2040_v16 = vmax.f32 %v1998_v6, 0.0  ;;  %v6518_v26 = vadd.f32 %v2818_v8, %v2770_v9  ;;  %2866 = vmatmul.bf16.gmra.mxu2 %v7297_v61  ;;  %2964 = vmatmul.bf16.gmra.mxu0 %v7273_v17  ;;  %v4827_v6 = vor.u32 %v5380_v36, %v4826_v0  ;;  %v4991_v9 = vor.u32 %v5420_v59, %v4988_v48 }
 0x2e3   :  { %3013 = vmatmul.bf16.gmra.mxu1 %v7274_v31 }
 0x2e4   :  { %2915 = vmatmul.bf16.gmra.mxu3 %v7298_v13  ;;  %v6524_v50 = vpack.c.bf16 %v2040_v16, %v2037_v12  ;;  %3197 = vmatpush.bf16.msrb.mxu1 %v4827_v6  ;;  %v7301_v6 = vld [vmem:[#allocation31_spill] sm:$0xff] }
 0x2e5   :  { %v1951_v41 = vpop.f32.mrf.mxu2  ;;  %3101 = vmatpush.bf16.msrb.mxu3 %v4991_v9  ;;  %v5393_v9 = vld [vmem:[#allocation4 + $0x1cc] sm:$0xf] }
 0x2e6   :  { %7299 = vst [vmem:[#allocation18_spill] sm:$0xff] %v6524_v50  ;;  %v1952_v8 = vadd.f32 %v1951_v41, %v6398_v34  ;;  %v7300_v41 = vld [vmem:[#allocation30_spill] sm:$0xff] }
 0x2e7   :  { %v2000_v46 = vpop.f32.mrf.mxu3  ;;  %v2771_v56 = vpop.f32.mrf.mxu0 }
 0x2e8   :  { %v2001_v51 = vadd.f32 %v2000_v46, %v1952_v8  ;;  %v2772_v19 = vadd.f32 %v2771_v56, %v6500_v40  ;;  %v2820_v12 = vpop.f32.mrf.mxu1  ;;  %v4718_v56 = vld [vmem:[#allocation4 + $0x80] sm:$0xf]  ;;  %v5353_v46 = vld [vmem:[#allocation4 + $0x88] sm:$0xf0] }
 0x2e9   :  { %v4814_v8 = vld [vmem:[#allocation4 + $0x140] sm:$0xf] }
 0x2ea   :  { %v6528_v16 = vadd.f32 %v2820_v12, %v2772_v19  ;;  %v2043_v59 = vmax.f32 %v2001_v51, 0.0  ;;  %v5377_v12 = vld [vmem:[#allocation4 + $0x148] sm:$0xf0] }
 0x2eb   :  { %v5417_v51 = vld [vmem:[#allocation4 + $0x28c] sm:$0xf] }
 0x2ed   :  { %v1953_v47 = vpop.f32.mrf.mxu2 }
 0x2ee   :  { %v1954_v30 = vadd.f32 %v1953_v47, %v6408_v27  ;;  %v4719_v27 = vor.u32 %v5353_v46, %v4718_v56  ;;  %v4976_v47 = vld [vmem:[#allocation4 + $0x294] sm:$0xf0] }
 0x2ef   :  { %v2002_v29 = vpop.f32.mrf.mxu3  ;;  %v2774_v18 = vpop.f32.mrf.mxu0 }
 0x2f0   :  { %v2003_v0 = vadd.f32 %v2002_v29, %v1954_v30  ;;  %v2775_v36 = vadd.f32 %v2774_v18, %v6500_v40  ;;  %v2823_v34 = vpop.f32.mrf.mxu1  ;;  %v4880_v29 = vld [vmem:[#allocation4 + $0x1d4] sm:$0xf0]  ;;  %3149 = vmatpush.bf16.msrb.mxu0 %v4719_v27 }
 0x2f1   :  { %v4883_v19 = vor.u32 %v5393_v9, %v4880_v29 }
 0x2f2   :  { %v2046_v3 = vmax.f32 %v2003_v0, 0.0  ;;  %v6532_v48 = vadd.f32 %v2823_v34, %v2775_v36  ;;  %2871 = vmatmul.bf16.gmra.mxu2 %v7300_v41  ;;  %2969 = vmatmul.bf16.gmra.mxu0 %v7276_v44  ;;  %v4815_v0 = vor.u32 %v5377_v12, %v4814_v8  ;;  %v4979_v36 = vor.u32 %v5417_v51, %v4976_v47 }
 0x2f3   :  { %3018 = vmatmul.bf16.gmra.mxu1 %v7277_v52  ;;  %3053 = vmatpush.bf16.msrb.mxu2 %v4883_v19 }
 0x2f4   :  { %2920 = vmatmul.bf16.gmra.mxu3 %v7301_v6  ;;  %v6538_v30 = vpack.c.bf16 %v2046_v3, %v2043_v59  ;;  %3198 = vmatpush.bf16.msrb.mxu1 %v4815_v0  ;;  %v7304_v0 = vld [vmem:[#allocation33_spill] sm:$0xff] }
 0x2f5   :  { %v1956_v18 = vpop.f32.mrf.mxu2  ;;  %3102 = vmatpush.bf16.msrb.mxu3 %v4979_v36  ;;  %v4868_v36 = vld [vmem:[#allocation4 + $0x1bc] sm:$0xf0] }
 0x2f6   :  { %7302 = vst [vmem:[#allocation20_spill] sm:$0xff] %v6538_v30  ;;  %v1957_v34 = vadd.f32 %v1956_v18, %v6412_v60  ;;  %v7303_v18 = vld [vmem:[#allocation32_spill] sm:$0xff] }
 0x2f7   :  { %v2005_v50 = vpop.f32.mrf.mxu3  ;;  %v2776_v24 = vpop.f32.mrf.mxu0 }
 0x2f8   :  { %v2006_v56 = vadd.f32 %v2005_v50, %v1957_v34  ;;  %v2777_v46 = vadd.f32 %v2776_v24, %v6500_v40  ;;  %v2825_v9 = vpop.f32.mrf.mxu1  ;;  %v4706_v24 = vld [vmem:[#allocation4 + $0x68] sm:$0xf]  ;;  %v5350_v50 = vld [vmem:[#allocation4 + $0x70] sm:$0xf0] }
 0x2f9   :  { %v4802_v34 = vld [vmem:[#allocation4 + $0x128] sm:$0xf] }
 0x2fa   :  { %v6542_v29 = vadd.f32 %v2825_v9, %v2777_v46  ;;  %v2049_v51 = vmax.f32 %v2006_v56, 0.0  ;;  %v5374_v9 = vld [vmem:[#allocation4 + $0x130] sm:$0xf0] }
 0x2fb   :  { %v5414_v56 = vld [vmem:[#allocation4 + $0x274] sm:$0xf] }
 0x2fd   :  { %v1958_v49 = vpop.f32.mrf.mxu2 }
 0x2fe   :  { %v1959_v59 = vadd.f32 %v1958_v49, %v6422_v2  ;;  %v4707_v49 = vor.u32 %v5350_v50, %v4706_v24  ;;  %v5390_v2 = vld [vmem:[#allocation4 + $0x1b4] sm:$0xf] }
 0x2ff   :  { %v2007_v3 = vpop.f32.mrf.mxu3  ;;  %v2779_v27 = vpop.f32.mrf.mxu0  ;;  %v4871_v46 = vor.u32 %v5390_v2, %v4868_v36 }
 0x300   :  { %v2008_v8 = vadd.f32 %v2007_v3, %v1959_v59  ;;  %v2780_v12 = vadd.f32 %v2779_v27, %v6500_v40  ;;  %v2828_v60 = vpop.f32.mrf.mxu1  ;;  %v4964_v59 = vld [vmem:[#allocation4 + $0x27c] sm:$0xf0]  ;;  %3150 = vmatpush.bf16.msrb.mxu0 %v4707_v49 }
 0x301   :  { %3054 = vmatpush.bf16.msrb.mxu2 %v4871_v46 }
 0x302   :  { %v2052_v19 = vmax.f32 %v2008_v8, 0.0  ;;  %v6546_v47 = vadd.f32 %v2828_v60, %v2780_v12  ;;  %2876 = vmatmul.bf16.gmra.mxu2 %v7303_v18  ;;  %2974 = vmatmul.bf16.gmra.mxu0 %v7279_v45  ;;  %v4803_v8 = vor.u32 %v5374_v9, %v4802_v34  ;;  %v4967_v12 = vor.u32 %v5414_v56, %v4964_v59 }
 0x303   :  { %3023 = vmatmul.bf16.gmra.mxu1 %v7280_v39 }
 0x304   :  { %2925 = vmatmul.bf16.gmra.mxu3 %v7304_v0  ;;  %v6552_v3 = vpack.c.bf16 %v2052_v19, %v2049_v51  ;;  %3199 = vmatpush.bf16.msrb.mxu1 %v4803_v8  ;;  %v7308_v8 = vld [vmem:[#allocation36_spill] sm:$0xff] }
 0x305   :  { %v1961_v27 = vpop.f32.mrf.mxu2  ;;  %3103 = vmatpush.bf16.msrb.mxu3 %v4967_v12  ;;  %v4856_v12 = vld [vmem:[#allocation4 + $0x1a4] sm:$0xf0] }
 0x306   :  { %7305 = vst [vmem:[#allocation22_spill] sm:$0xff] %v6552_v3  ;;  %v1962_v60 = vadd.f32 %v1961_v27, %v6426_v15  ;;  %v7307_v27 = vld [vmem:[#allocation35_spill] sm:$0xff] }
 0x307   :  { %v2010_v30 = vpop.f32.mrf.mxu3  ;;  %v2781_v63 = vpop.f32.mrf.mxu0 }
 0x308   :  { %v2011_v24 = vadd.f32 %v2010_v30, %v1962_v60  ;;  %v2782_v50 = vadd.f32 %v2781_v63, %v6500_v40  ;;  %v2830_v2 = vpop.f32.mrf.mxu1  ;;  %v4694_v63 = vld [vmem:[#allocation4 + $0x50] sm:$0xf]  ;;  %v5347_v30 = vld [vmem:[#allocation4 + $0x58] sm:$0xf0] }
 0x309   :  { %v4790_v60 = vld [vmem:[#allocation4 + $0x110] sm:$0xf] }
 0x30a   :  { %v6556_v36 = vadd.f32 %v2830_v2, %v2782_v50  ;;  %v2055_v56 = vmax.f32 %v2011_v24, 0.0  ;;  %v5371_v2 = vld [vmem:[#allocation4 + $0x118] sm:$0xf0] }
 0x30b   :  { %v5411_v24 = vld [vmem:[#allocation4 + $0x25c] sm:$0xf] }
 0x30d   :  { %v1963_v5 = vpop.f32.mrf.mxu2 }
 0x30e   :  { %v1964_v51 = vadd.f32 %v1963_v5, %v6436_v62  ;;  %v4695_v5 = vor.u32 %v5347_v30, %v4694_v63  ;;  %v5387_v62 = vld [vmem:[#allocation4 + $0x19c] sm:$0xf] }
 0x30f   :  { %v2012_v19 = vpop.f32.mrf.mxu3  ;;  %v2784_v49 = vpop.f32.mrf.mxu0  ;;  %v4859_v50 = vor.u32 %v5387_v62, %v4856_v12 }
 0x310   :  { %v2013_v34 = vadd.f32 %v2012_v19, %v1964_v51  ;;  %v2785_v9 = vadd.f32 %v2784_v49, %v6500_v40  ;;  %v2833_v15 = vpop.f32.mrf.mxu1  ;;  %v4952_v51 = vld [vmem:[#allocation4 + $0x264] sm:$0xf0]  ;;  %3151 = vmatpush.bf16.msrb.mxu0 %v4695_v5 }
 0x311   :  { %3055 = vmatpush.bf16.msrb.mxu2 %v4859_v50 }
 0x312   :  { %v2058_v46 = vmax.f32 %v2013_v34, 0.0  ;;  %v6560_v59 = vadd.f32 %v2833_v15, %v2785_v9  ;;  %2881 = vmatmul.bf16.gmra.mxu2 %v7307_v27  ;;  %2979 = vmatmul.bf16.gmra.mxu0 %v7282_v37  ;;  %v4791_v34 = vor.u32 %v5371_v2, %v4790_v60  ;;  %v4955_v9 = vor.u32 %v5411_v24, %v4952_v51 }
 0x313   :  { %3028 = vmatmul.bf16.gmra.mxu1 %v7283_v43 }
 0x314   :  { %7306 = vst [vmem:[#allocation23_spill] sm:$0xff] %v6560_v59  ;;  %2930 = vmatmul.bf16.gmra.mxu3 %v7308_v8  ;;  %v6566_v19 = vpack.c.bf16 %v2058_v46, %v2055_v56  ;;  %3200 = vmatpush.bf16.msrb.mxu1 %v4791_v34  ;;  %v7312_v34 = vld [vmem:[#allocation39_spill] sm:$0xff] }
 0x315   :  { %v1966_v49 = vpop.f32.mrf.mxu2  ;;  %3104 = vmatpush.bf16.msrb.mxu3 %v4955_v9  ;;  %v4844_v9 = vld [vmem:[#allocation4 + $0x18c] sm:$0xf0] }
 0x316   :  { %7309 = vst [vmem:[#allocation24_spill] sm:$0xff] %v6566_v19  ;;  %v1967_v15 = vadd.f32 %v1966_v49, %v6440_v1  ;;  %v7311_v49 = vld [vmem:[#allocation38_spill] sm:$0xff] }
 0x317   :  { %v2015_v3 = vpop.f32.mrf.mxu3  ;;  %v2786_v59 = vpop.f32.mrf.mxu0 }
 0x318   :  { %v2016_v63 = vadd.f32 %v2015_v3, %v1967_v15  ;;  %v2787_v30 = vadd.f32 %v2786_v59, %v6500_v40  ;;  %v2835_v62 = vpop.f32.mrf.mxu1  ;;  %v4682_v3 = vld [vmem:[#allocation4 + $0x38] sm:$0xf]  ;;  %v5344_v59 = vld [vmem:[#allocation4 + $0x40] sm:$0xf0] }
 0x319   :  { %v4778_v15 = vld [vmem:[#allocation4 + $0xf8] sm:$0xf] }
 0x31a   :  { %v6570_v12 = vadd.f32 %v2835_v62, %v2787_v30  ;;  %v2061_v24 = vmax.f32 %v2016_v63, 0.0  ;;  %v5368_v62 = vld [vmem:[#allocation4 + $0x100] sm:$0xf0] }
 0x31b   :  { %v5408_v63 = vld [vmem:[#allocation4 + $0x244] sm:$0xf] }
 0x31d   :  { %v1968_v43 = vpop.f32.mrf.mxu2 }
 0x31e   :  { %v1969_v56 = vadd.f32 %v1968_v43, %v6450_v53  ;;  %v4683_v43 = vor.u32 %v5344_v59, %v4682_v3  ;;  %v5384_v53 = vld [vmem:[#allocation4 + $0x184] sm:$0xf] }
 0x31f   :  { %v2017_v46 = vpop.f32.mrf.mxu3  ;;  %v2789_v5 = vpop.f32.mrf.mxu0  ;;  %v4847_v30 = vor.u32 %v5384_v53, %v4844_v9  ;;  %v4670_v9 = vld [vmem:[#allocation4 + $0x20] sm:$0xf] }
 0x320   :  { %v2018_v60 = vadd.f32 %v2017_v46, %v1969_v56  ;;  %v2790_v2 = vadd.f32 %v2789_v5, %v6500_v40  ;;  %v2838_v1 = vpop.f32.mrf.mxu1  ;;  %v4940_v56 = vld [vmem:[#allocation4 + $0x24c] sm:$0xf0]  ;;  %3152 = vmatpush.bf16.msrb.mxu0 %v4683_v43  ;;  %v5365_v43 = vld [vmem:[#allocation4 + $0xe8] sm:$0xf0] }
 0x321   :  { %3056 = vmatpush.bf16.msrb.mxu2 %v4847_v30  ;;  %v5338_v30 = vld [vmem:[#allocation4 + $0x10] sm:$0xf0] }
 0x322   :  { %v2064_v50 = vmax.f32 %v2018_v60, 0.0  ;;  %v6574_v51 = vadd.f32 %v2838_v1, %v2790_v2  ;;  %2886 = vmatmul.bf16.gmra.mxu2 %v7311_v49  ;;  %2984 = vmatmul.bf16.gmra.mxu0 %v7285_v38  ;;  %v4779_v60 = vor.u32 %v5368_v62, %v4778_v15  ;;  %v4943_v2 = vor.u32 %v5408_v63, %v4940_v56  ;;  %v4754_v63 = vld [vmem:[#allocation4 + $0xc8] sm:$0xf] }
 0x323   :  { %3033 = vmatmul.bf16.gmra.mxu1 %v7286_v35  ;;  %v5341_v35 = vld [vmem:[#allocation4 + $0x28] sm:$0xf0] }
 0x324   :  { %7310 = vst [vmem:[#allocation25_spill] sm:$0xff] %v6574_v51  ;;  %2935 = vmatmul.bf16.gmra.mxu3 %v7312_v34  ;;  %v6580_v46 = vpack.c.bf16 %v2064_v50, %v2061_v24  ;;  %3201 = vmatpush.bf16.msrb.mxu1 %v4779_v60  ;;  %v4766_v34 = vld [vmem:[#allocation4 + $0xe0] sm:$0xf]  ;;  %v4671_v50 = vor.u32 %v5341_v35, %v4670_v9 }
 0x325   :  { %v1971_v5 = vpop.f32.mrf.mxu2  ;;  %3105 = vmatpush.bf16.msrb.mxu3 %v4943_v2  ;;  %v4767_v15 = vor.u32 %v5365_v43, %v4766_v34  ;;  %v4934_v43 = vld [vmem:[#allocation4 + $0x230] sm:$0xf] }
 0x326   :  { %7313 = vst [vmem:[#allocation26_spill] sm:$0xff] %v6580_v46  ;;  %v1972_v1 = vadd.f32 %v1971_v5, %v6454_v7  ;;  %3153 = vmatpush.bf16.msrb.mxu0 %v4671_v50  ;;  %v4658_v7 = vld [vmem:[#allocation4 + $0x8] sm:$0xf]  ;;  %v7314_v50 = vld [vmem:[#allocation40_spill] sm:$0xff]  ;;  %v6615_v46 = vperm.slane %v6495_v54, 1  ;;  %v5463_v54 = vld [vmem:[%s7186_s8 + $0x38] sm:$0xff] }
 0x327   :  { %v2020_v19 = vpop.f32.mrf.mxu3  ;;  %v2791_v51 = vpop.f32.mrf.mxu0  ;;  %v4659_v5 = vor.u32 %v5338_v30, %v4658_v7  ;;  %v5431_v30 = vld [vmem:[#allocation4 + $0x2f8] sm:$0xf0] }
 0x328   :  { %v2021_v3 = vadd.f32 %v2020_v19, %v1972_v1  ;;  %v2792_v59 = vadd.f32 %v2791_v51, %v6500_v40  ;;  %v2840_v53 = vpop.f32.mrf.mxu1  ;;  %3202 = vmatpush.bf16.msrb.mxu1 %v4767_v15  ;;  %v5362_v51 = vld [vmem:[#allocation4 + $0xd0] sm:$0xf0]  ;;  %v5407_v15 = vld [vmem:[#allocation4 + $0x238] sm:$0xf0] }
 0x329   :  { %v4755_v2 = vor.u32 %v5362_v51, %v4754_v63  ;;  %v4935_v7 = vor.u32 %v5407_v15, %v4934_v43 }
 0x32a   :  { %v6584_v24 = vadd.f32 %v2840_v53, %v2792_v59  ;;  %3154 = vmatpush.bf16.msrb.mxu0 %v4659_v5  ;;  %v2067_v35 = vmax.f32 %v2021_v3, 0.0 }
 0x32b   :  { %3245 = vmatpush.bf16.msra.mxu2 %v4935_v7 }
 0x32c   :  { %3203 = vmatpush.bf16.msrb.mxu1 %v4755_v2 }
 0x32d   :  { %v1973_v62 = vpop.f32.mrf.mxu2 }
 0x32e   :  { %v1974_v56 = vadd.f32 %v1973_v62, %v6464_v22  ;;  %v7315_v22 = vld [vmem:[#allocation41_spill] sm:$0xff]  ;;  %v5030_v62 = vld [vmem:[#allocation4 + $0x2f0] sm:$0xf]  ;;  %3655 = vmatpush.bf16.msra.mxu0 %v5463_v54 }
 0x32f   :  { %v2022_v19 = vpop.f32.mrf.mxu3  ;;  %v2794_v60 = vpop.f32.mrf.mxu0  ;;  %v5031_v3 = vor.u32 %v5431_v30, %v5030_v62 }
 0x330   :  { %v2023_v1 = vadd.f32 %v2022_v19, %v1974_v56  ;;  %v2795_v59 = vadd.f32 %v2794_v60, %v6500_v40  ;;  %v2843_v53 = vpop.f32.mrf.mxu1 }
 0x331   :  { %3294 = vmatpush.bf16.msra.mxu3 %v5031_v3  ;;  %v7317_v3 = vld [vmem:[#allocation42_spill] sm:$0xff] }
 0x332   :  { %v2070_v34 = vmax.f32 %v2023_v1, 0.0  ;;  %v6588_v9 = vadd.f32 %v2843_v53, %v2795_v59  ;;  %2891 = vmatmul.bf16.gmra.mxu2 %v7314_v50  ;;  %2989 = vmatmul.bf16.gmra.mxu0 %v7288_v4 }
 0x333   :  { %3038 = vmatmul.bf16.gmra.mxu1 %v7289_v20 }
 0x334   :  { %2940 = vmatmul.bf16.gmra.mxu3 %v7315_v22  ;;  %v6594_v63 = vpack.c.bf16 %v2070_v34, %v2067_v35 }
 0x335   :  { %v1976_v56 = vpop.f32.mrf.mxu2 }
 0x336   :  { %7316 = vst [vmem:[#allocation27_spill] sm:$0xff] %v6594_v63  ;;  %v1977_v19 = vadd.f32 %v1976_v56, %v6468_v55 }
 0x337   :  { %v2025_v5 = vpop.f32.mrf.mxu3  ;;  %v2796_v51 = vpop.f32.mrf.mxu0 }
 0x338   :  { %v2026_v60 = vadd.f32 %v2025_v5, %v1977_v19  ;;  %v2797_v2 = vadd.f32 %v2796_v51, %v6500_v40  ;;  %v2845_v1 = vpop.f32.mrf.mxu1  ;;  %v4922_v19 = vld [vmem:[#allocation4 + $0x218] sm:$0xf] }
 0x339   :  { %v5018_v5 = vld [vmem:[#allocation4 + $0x2d8] sm:$0xf] }
 0x33a   :  { %v6598_v59 = vadd.f32 %v2845_v1, %v2797_v2  ;;  %v2073_v55 = vmax.f32 %v2026_v60, 0.0 }
 0x33d   :  { %v1978_v53 = vpop.f32.mrf.mxu2 }
 0x33e   :  { %v1979_v43 = vadd.f32 %v1978_v53, %v6478_v23  ;;  %v5404_v23 = vld [vmem:[#allocation4 + $0x220] sm:$0xf0] }
 0x33f   :  { %v2027_v15 = vpop.f32.mrf.mxu3  ;;  %v2799_v35 = vpop.f32.mrf.mxu0  ;;  %v4923_v1 = vor.u32 %v5404_v23, %v4922_v19  ;;  %v5428_v53 = vld [vmem:[#allocation4 + $0x2e0] sm:$0xf0] }
 0x340   :  { %v2028_v34 = vadd.f32 %v2027_v15, %v1979_v43  ;;  %v2800_v62 = vadd.f32 %v2799_v35, %v6500_v40  ;;  %v2848_v30 = vpop.f32.mrf.mxu1  ;;  %v5019_v15 = vor.u32 %v5428_v53, %v5018_v5 }
 0x341   :  { %3246 = vmatpush.bf16.msra.mxu2 %v4923_v1 }
 0x342   :  { %v2076_v56 = vmax.f32 %v2028_v34, 0.0  ;;  %v6602_v7 = vadd.f32 %v2848_v30, %v2800_v62  ;;  %2896 = vmatmul.bf16.gmra.mxu2 %v7317_v3  ;;  %2994 = vmatmul.bf16.gmra.mxu0 %v7291_v32 }
 0x343   :  { %3043 = vmatmul.bf16.gmra.mxu1 %v7292_v33  ;;  %3295 = vmatpush.bf16.msra.mxu3 %v5019_v15 }
 0x344   :  { %2945 = vmatmul.bf16.gmra.mxu3 %v6273_v11  ;;  %v6608_v51 = vpack.c.bf16 %v2076_v56, %v2073_v55 }
 0x345   :  { %v1981_v2 = vpop.f32.mrf.mxu2 }
 0x346   :  { %v1982_v60 = vadd.f32 %v1981_v2, %v6482_v42 }
 0x347   :  { %v2030_v43 = vpop.f32.mrf.mxu3  ;;  %v2801_v35 = vpop.f32.mrf.mxu0 }
 0x348   :  { %v2031_v34 = vadd.f32 %v2030_v43, %v1982_v60  ;;  %v2802_v62 = vadd.f32 %v2801_v35, %v6500_v40  ;;  %v2850_v30 = vpop.f32.mrf.mxu1  ;;  %v5401_v40 = vld [vmem:[#allocation4 + $0x208] sm:$0xf0]  ;;  %v5471_v43 = vld [vmem:[%s7186_s8 + $0x78] sm:$0xff]  ;;  %v5006_v35 = vld [vmem:[#allocation4 + $0x2c0] sm:$0xf] }
 0x349   :  { %3704 = vmatpush.bf16.msra.mxu1 %v5471_v43 }
 0x34a   :  { %v6612_v63 = vadd.f32 %v2850_v30, %v2802_v62  ;;  %v2079_v1 = vmax.f32 %v2031_v34, 0.0  ;;  %v5425_v34 = vld [vmem:[#allocation4 + $0x2c8] sm:$0xf0] }
 0x34b   :  { %v5007_v30 = vor.u32 %v5425_v34, %v5006_v35  ;;  %v5462_v34 = vld [vmem:[%s7186_s8 + $0x30] sm:$0xff] }
 0x34c   :  { %3656 = vmatpush.bf16.msra.mxu0 %v5462_v34 }
 0x34d   :  { %v1983_v55 = vpop.f32.mrf.mxu2  ;;  %3296 = vmatpush.bf16.msra.mxu3 %v5007_v30  ;;  %v5470_v30 = vld [vmem:[%s7186_s8 + $0x70] sm:$0xff] }
 0x34e   :  { %v1984_v56 = vadd.f32 %v1983_v55, %v6497_v14  ;;  %v4910_v14 = vld [vmem:[#allocation4 + $0x200] sm:$0xf]  ;;  %3705 = vmatpush.bf16.msra.mxu1 %v5470_v30 }
 0x34f   :  { %v2032_v19 = vpop.f32.mrf.mxu3  ;;  %v2960_v23 = vpop.f32.mrf.mxu0  ;;  %v4911_v15 = vor.u32 %v5401_v40, %v4910_v14 }
 0x350   :  { %v2033_v42 = vadd.f32 %v2032_v19, %v1984_v56  ;;  %v2961_v5 = vadd.f32 %v2960_v23, %v6615_v46  ;;  %v3009_v2 = vpop.f32.mrf.mxu1 }
 0x351   :  { %3247 = vmatpush.bf16.msra.mxu2 %v4911_v15 }
 0x352   :  { %v2082_v53 = vmax.f32 %v2033_v42, 0.0  ;;  %v6619_v60 = vadd.f32 %v3009_v2, %v2961_v5  ;;  %3057 = vmatmul.bf16.vlgmr.msrb.gmra.mxu2 %v7294_v57  ;;  %3155 = vmatmul.bf16.vlgmr.msrb.gmra.mxu0 %v7270_v25 }
 0x353   :  { %3204 = vmatmul.bf16.vlgmr.msrb.gmra.mxu1 %v7271_v28 }
 0x354   :  { %3106 = vmatmul.bf16.vlgmr.msrb.gmra.mxu3 %v7295_v21  ;;  %v6631_v62 = vpack.c.bf16 %v2082_v53, %v2079_v1 }
 0x355   :  { %v2862_v25 = vpop.f32.mrf.mxu2 }
 0x356   :  { %v2863_v55 = vadd.f32 %v2862_v25, %v6504_v10  ;;  %v5398_v25 = vld [vmem:[#allocation4 + $0x1f0] sm:$0xf0] }
 0x357   :  { %v2911_v56 = vpop.f32.mrf.mxu3  ;;  %v2962_v28 = vpop.f32.mrf.mxu0 }
 0x358   :  { %v2912_v19 = vadd.f32 %v2911_v56, %v2863_v55  ;;  %v2963_v23 = vadd.f32 %v2962_v28, %v6615_v46  ;;  %v3011_v42 = vpop.f32.mrf.mxu1  ;;  %v4994_v28 = vld [vmem:[#allocation4 + $0x2a8] sm:$0xf] }
 0x35a   :  { %v6635_v5 = vadd.f32 %v3011_v42, %v2963_v23  ;;  %v3343_v10 = vmax.f32 %v2912_v19, 0.0 }
 0x35d   :  { %v2864_v2 = vpop.f32.mrf.mxu2 }
 0x35e   :  { %v2865_v54 = vadd.f32 %v2864_v2, %v6514_v58  ;;  %v4898_v58 = vld [vmem:[#allocation4 + $0x1e8] sm:$0xf] }
 0x35f   :  { %v2913_v1 = vpop.f32.mrf.mxu3  ;;  %v2965_v53 = vpop.f32.mrf.mxu0  ;;  %v4899_v56 = vor.u32 %v5398_v25, %v4898_v58 }
 0x360   :  { %v2914_v14 = vadd.f32 %v2913_v1, %v2865_v54  ;;  %v2966_v40 = vadd.f32 %v2965_v53, %v6615_v46  ;;  %v3014_v43 = vpop.f32.mrf.mxu1 }
 0x361   :  { %3248 = vmatpush.bf16.msra.mxu2 %v4899_v56 }
 0x362   :  { %v3346_v35 = vmax.f32 %v2914_v14, 0.0  ;;  %v6639_v15 = vadd.f32 %v3014_v43, %v2966_v40  ;;  %3062 = vmatmul.bf16.gmra.mxu2 %v7297_v61  ;;  %3160 = vmatmul.bf16.gmra.mxu0 %v7273_v17  ;;  %v5422_v17 = vld [vmem:[#allocation4 + $0x2b0] sm:$0xf0] }
 0x363   :  { %3209 = vmatmul.bf16.gmra.mxu1 %v7274_v31  ;;  %v4995_v23 = vor.u32 %v5422_v17, %v4994_v28  ;;  %v5461_v28 = vld [vmem:[%s7186_s8 + $0x28] sm:$0xff]  ;;  %v5395_v17 = vld [vmem:[#allocation4 + $0x1d8] sm:$0xf0] }
 0x364   :  { %3111 = vmatmul.bf16.gmra.mxu3 %v7298_v13  ;;  %v6651_v55 = vpack.c.bf16 %v3346_v35, %v3343_v10  ;;  %3657 = vmatpush.bf16.msra.mxu0 %v5461_v28 }
 0x365   :  { %v2867_v19 = vpop.f32.mrf.mxu2  ;;  %3297 = vmatpush.bf16.msra.mxu3 %v4995_v23 }
 0x366   :  { %v2868_v42 = vadd.f32 %v2867_v19, %v6518_v26  ;;  %v5469_v19 = vld [vmem:[%s7186_s8 + $0x68] sm:$0xff] }
 0x367   :  { %v2916_v2 = vpop.f32.mrf.mxu3  ;;  %v2967_v31 = vpop.f32.mrf.mxu0  ;;  %3706 = vmatpush.bf16.msra.mxu1 %v5469_v19 }
 0x368   :  { %v2917_v54 = vadd.f32 %v2916_v2, %v2868_v42  ;;  %v2968_v1 = vadd.f32 %v2967_v31, %v6615_v46  ;;  %v3016_v53 = vpop.f32.mrf.mxu1  ;;  %v4982_v42 = vld [vmem:[#allocation4 + $0x290] sm:$0xf]  ;;  %v5419_v2 = vld [vmem:[#allocation4 + $0x298] sm:$0xf0] }
 0x36a   :  { %v6655_v14 = vadd.f32 %v3016_v53, %v2968_v1  ;;  %v3349_v26 = vmax.f32 %v2917_v54, 0.0  ;;  %v4983_v54 = vor.u32 %v5419_v2, %v4982_v42  ;;  %v5392_v42 = vld [vmem:[#allocation4 + $0x1c0] sm:$0xf0] }
 0x36b   :  { %v5468_v2 = vld [vmem:[%s7186_s8 + $0x60] sm:$0xff] }
 0x36c   :  { %3298 = vmatpush.bf16.msra.mxu3 %v4983_v54  ;;  %v4970_v54 = vld [vmem:[#allocation4 + $0x278] sm:$0xf]  ;;  %3707 = vmatpush.bf16.msra.mxu1 %v5468_v2 }
 0x36d   :  { %v2869_v40 = vpop.f32.mrf.mxu2  ;;  %v5459_v2 = vld [vmem:[%s7186_s8 + $0x18] sm:$0xff] }
 0x36e   :  { %v2870_v43 = vadd.f32 %v2869_v40, %v6528_v16  ;;  %v4886_v16 = vld [vmem:[#allocation4 + $0x1d0] sm:$0xf] }
 0x36f   :  { %v2918_v10 = vpop.f32.mrf.mxu3  ;;  %v2970_v35 = vpop.f32.mrf.mxu0  ;;  %v4887_v23 = vor.u32 %v5395_v17, %v4886_v16 }
 0x370   :  { %v2919_v34 = vadd.f32 %v2918_v10, %v2870_v43  ;;  %v2971_v58 = vadd.f32 %v2970_v35, %v6615_v46  ;;  %v3019_v25 = vpop.f32.mrf.mxu1 }
 0x371   :  { %3249 = vmatpush.bf16.msra.mxu2 %v4887_v23  ;;  %v5460_v23 = vld [vmem:[%s7186_s8 + $0x20] sm:$0xff] }
 0x372   :  { %v3352_v30 = vmax.f32 %v2919_v34, 0.0  ;;  %v6659_v56 = vadd.f32 %v3019_v25, %v2971_v58  ;;  %3067 = vmatmul.bf16.gmra.mxu2 %v7300_v41  ;;  %3165 = vmatmul.bf16.gmra.mxu0 %v7276_v44 }
 0x373   :  { %3214 = vmatmul.bf16.gmra.mxu1 %v7277_v52  ;;  %3658 = vmatpush.bf16.msra.mxu0 %v5460_v23 }
 0x374   :  { %3116 = vmatmul.bf16.gmra.mxu3 %v7301_v6  ;;  %v6671_v31 = vpack.c.bf16 %v3352_v30, %v3349_v26 }
 0x375   :  { %v2872_v44 = vpop.f32.mrf.mxu2 }
 0x376   :  { %v2873_v1 = vadd.f32 %v2872_v44, %v6532_v48 }
 0x377   :  { %v2921_v53 = vpop.f32.mrf.mxu3  ;;  %v2972_v52 = vpop.f32.mrf.mxu0  ;;  %3659 = vmatpush.bf16.msra.mxu0 %v5459_v2 }
 0x378   :  { %v2922_v40 = vadd.f32 %v2921_v53, %v2873_v1  ;;  %v2973_v43 = vadd.f32 %v2972_v52, %v6615_v46  ;;  %v3021_v10 = vpop.f32.mrf.mxu1  ;;  %v5416_v1 = vld [vmem:[#allocation4 + $0x280] sm:$0xf0] }
 0x379   :  { %v4971_v52 = vor.u32 %v5416_v1, %v4970_v54  ;;  %v5389_v54 = vld [vmem:[#allocation4 + $0x1a8] sm:$0xf0]  ;;  %v5467_v1 = vld [vmem:[%s7186_s8 + $0x58] sm:$0xff] }
 0x37a   :  { %v6675_v35 = vadd.f32 %v3021_v10, %v2973_v43  ;;  %v3355_v48 = vmax.f32 %v2922_v40, 0.0  ;;  %3708 = vmatpush.bf16.msra.mxu1 %v5467_v1  ;;  %v5458_v1 = vld [vmem:[%s7186_s8 + $0x10] sm:$0xff] }
 0x37b   :  { %3299 = vmatpush.bf16.msra.mxu3 %v4971_v52  ;;  %v4958_v52 = vld [vmem:[#allocation4 + $0x260] sm:$0xf]  ;;  %3660 = vmatpush.bf16.msra.mxu0 %v5458_v1 }
 0x37d   :  { %v2874_v34 = vpop.f32.mrf.mxu2 }
 0x37e   :  { %v2875_v58 = vadd.f32 %v2874_v34, %v6542_v29  ;;  %v4874_v29 = vld [vmem:[#allocation4 + $0x1b8] sm:$0xf] }
 0x37f   :  { %v2923_v25 = vpop.f32.mrf.mxu3  ;;  %v2975_v26 = vpop.f32.mrf.mxu0  ;;  %v4875_v44 = vor.u32 %v5392_v42, %v4874_v29 }
 0x380   :  { %v2924_v30 = vadd.f32 %v2923_v25, %v2875_v58  ;;  %v2976_v28 = vadd.f32 %v2975_v26, %v6615_v46  ;;  %v3024_v16 = vpop.f32.mrf.mxu1 }
 0x381   :  { %3250 = vmatpush.bf16.msra.mxu2 %v4875_v44  ;;  %v4862_v44 = vld [vmem:[#allocation4 + $0x1a0] sm:$0xf] }
 0x382   :  { %v3358_v17 = vmax.f32 %v2924_v30, 0.0  ;;  %v6679_v19 = vadd.f32 %v3024_v16, %v2976_v28  ;;  %3072 = vmatmul.bf16.gmra.mxu2 %v7303_v18  ;;  %3170 = vmatmul.bf16.gmra.mxu0 %v7279_v45 }
 0x383   :  { %3219 = vmatmul.bf16.gmra.mxu1 %v7280_v39 }
 0x384   :  { %3121 = vmatmul.bf16.gmra.mxu3 %v7304_v0  ;;  %v6691_v53 = vpack.c.bf16 %v3358_v17, %v3355_v48 }
 0x385   :  { %v2877_v45 = vpop.f32.mrf.mxu2 }
 0x386   :  { %v2878_v40 = vadd.f32 %v2877_v45, %v6546_v47  ;;  %v4863_v45 = vor.u32 %v5389_v54, %v4862_v44 }
 0x387   :  { %v2926_v43 = vpop.f32.mrf.mxu3  ;;  %v2977_v39 = vpop.f32.mrf.mxu0 }
 0x388   :  { %v2927_v10 = vadd.f32 %v2926_v43, %v2878_v40  ;;  %v2978_v34 = vadd.f32 %v2977_v39, %v6615_v46  ;;  %v3026_v58 = vpop.f32.mrf.mxu1  ;;  %v5413_v40 = vld [vmem:[#allocation4 + $0x268] sm:$0xf0]  ;;  %3251 = vmatpush.bf16.msra.mxu2 %v4863_v45  ;;  %v7320_v45 = vld [vmem:[#allocation39_spill] sm:$0xff] }
 0x389   :  { %v4959_v39 = vor.u32 %v5413_v40, %v4958_v52  ;;  %v4850_v52 = vld [vmem:[#allocation4 + $0x188] sm:$0xf]  ;;  %v5386_v40 = vld [vmem:[#allocation4 + $0x190] sm:$0xf0] }
 0x38a   :  { %v6695_v25 = vadd.f32 %v3026_v58, %v2978_v34  ;;  %v3361_v47 = vmax.f32 %v2927_v10, 0.0  ;;  %v7319_v10 = vld [vmem:[#allocation23_spill] sm:$0xff] }
 0x38b   :  { %3300 = vmatpush.bf16.msra.mxu3 %v4959_v39  ;;  %v4851_v39 = vor.u32 %v5386_v40, %v4850_v52 }
 0x38d   :  { %v2879_v26 = vpop.f32.mrf.mxu2  ;;  %3252 = vmatpush.bf16.msra.mxu2 %v4851_v39 }
 0x38e   :  { %v2880_v30 = vadd.f32 %v2879_v26, %v6556_v36  ;;  %v7318_v36 = vld [vmem:[#allocation19_spill] sm:$0xff] }
 0x38f   :  { %v2928_v28 = vpop.f32.mrf.mxu3  ;;  %v2980_v16 = vpop.f32.mrf.mxu0 }
 0x390   :  { %v2929_v48 = vadd.f32 %v2928_v28, %v2880_v30  ;;  %v2981_v17 = vadd.f32 %v2980_v16, %v6615_v46  ;;  %v3029_v23 = vpop.f32.mrf.mxu1 }
 0x392   :  { %v3364_v29 = vmax.f32 %v2929_v48, 0.0  ;;  %v6699_v42 = vadd.f32 %v3029_v23, %v2981_v17  ;;  %3077 = vmatmul.bf16.gmra.mxu2 %v7307_v27  ;;  %3175 = vmatmul.bf16.gmra.mxu0 %v7282_v37 }
 0x393   :  { %3224 = vmatmul.bf16.gmra.mxu1 %v7318_v36 }
 0x394   :  { %3126 = vmatmul.bf16.gmra.mxu3 %v7308_v8  ;;  %v6711_v43 = vpack.c.bf16 %v3364_v29, %v3361_v47 }
 0x395   :  { %v2882_v37 = vpop.f32.mrf.mxu2 }
 0x396   :  { %v2883_v34 = vadd.f32 %v2882_v37, %v7319_v10  ;;  %v5466_v37 = vld [vmem:[%s7186_s8 + $0x50] sm:$0xff]  ;;  %v4946_v10 = vld [vmem:[#allocation4 + $0x248] sm:$0xf] }
 0x397   :  { %v2931_v58 = vpop.f32.mrf.mxu3  ;;  %v6714_v26 = vpop.f32.mrf.mxu0  ;;  %3709 = vmatpush.bf16.msra.mxu1 %v5466_v37 }
 0x398   :  { %v2932_v30 = vadd.f32 %v2931_v58, %v2883_v34  ;;  %v6716_v28 = vpop.f32.mrf.mxu1  ;;  %v5410_v34 = vld [vmem:[#allocation4 + $0x250] sm:$0xf0] }
 0x39a   :  { %v3367_v36 = vmax.f32 %v2932_v30, 0.0  ;;  %v4947_v30 = vor.u32 %v5410_v34, %v4946_v10 }
 0x39c   :  { %3301 = vmatpush.bf16.msra.mxu3 %v4947_v30 }
 0x39d   :  { %v2884_v16 = vpop.f32.mrf.mxu2 }
 0x39e   :  { %v2885_v48 = vadd.f32 %v2884_v16, %v6570_v12  ;;  %v7321_v12 = vld [vmem:[#allocation21_spill] sm:$0xff] }
 0x39f   :  { %v2933_v17 = vpop.f32.mrf.mxu3  ;;  %v2985_v23 = vpop.f32.mrf.mxu0  ;;  %v7322_v16 = vld [vmem:[#allocation25_spill] sm:$0xff] }
 0x3a0   :  { %v2934_v47 = vadd.f32 %v2933_v17, %v2885_v48  ;;  %v2986_v29 = vadd.f32 %v2985_v23, %v6615_v46  ;;  %v3034_v2 = vpop.f32.mrf.mxu1 }
 0x3a2   :  { %v3370_v44 = vmax.f32 %v2934_v47, 0.0  ;;  %v6720_v54 = vadd.f32 %v3034_v2, %v2986_v29  ;;  %3082 = vmatmul.bf16.gmra.mxu2 %v7311_v49  ;;  %3180 = vmatmul.bf16.gmra.mxu0 %v7285_v38  ;;  %v5457_v2 = vld [vmem:[%s7186_s8 + $0x8] sm:$0xff] }
 0x3a3   :  { %3229 = vmatmul.bf16.gmra.mxu1 %v7321_v12  ;;  %3661 = vmatpush.bf16.msra.mxu0 %v5457_v2  ;;  %v5456_v12 = vld [vmem:[%s7186_s8] sm:$0xff] }
 0x3a4   :  { %3131 = vmatmul.bf16.gmra.mxu3 %v7320_v45  ;;  %v6732_v58 = vpack.c.bf16 %v3370_v44, %v3367_v36 }
 0x3a5   :  { %v2887_v38 = vpop.f32.mrf.mxu2 }
 0x3a6   :  { %v2888_v48 = vadd.f32 %v2887_v38, %v7322_v16 }
 0x3a7   :  { %v2936_v17 = vpop.f32.mrf.mxu3  ;;  %v6735_v23 = vpop.f32.mrf.mxu0  ;;  %3662 = vmatpush.bf16.msra.mxu0 %v5456_v12 }
 0x3a8   :  { %v2937_v47 = vadd.f32 %v2936_v17, %v2888_v48  ;;  %v6737_v29 = vpop.f32.mrf.mxu1 }
 0x3aa   :  { %v3373_v10 = vmax.f32 %v2937_v47, 0.0 }
 0x3ad   :  { %v2889_v36 = vpop.f32.mrf.mxu2 }
 0x3ae   :  { %v2890_v44 = vadd.f32 %v2889_v36, %v6584_v24  ;;  %v5465_v24 = vld [vmem:[%s7186_s8 + $0x48] sm:$0xff] }
 0x3af   :  { %v2938_v1 = vpop.f32.mrf.mxu3  ;;  %v2990_v52 = vpop.f32.mrf.mxu0  ;;  %3710 = vmatpush.bf16.msra.mxu1 %v5465_v24 }
 0x3b0   :  { %v2939_v40 = vadd.f32 %v2938_v1, %v2890_v44  ;;  %v2991_v37 = vadd.f32 %v2990_v52, %v6615_v46  ;;  %v3039_v39 = vpop.f32.mrf.mxu1 }
 0x3b2   :  { %v3376_v34 = vmax.f32 %v2939_v40, 0.0  ;;  %v6747_v38 = vadd.f32 %v3039_v39, %v2991_v37  ;;  %3087 = vmatmul.bf16.gmra.mxu2 %v7314_v50  ;;  %3185 = vmatmul.bf16.gmra.mxu0 %v7288_v4 }
 0x3b3   :  { %3234 = vmatmul.bf16.gmra.mxu1 %v7289_v20 }
 0x3b4   :  { %3136 = vmatmul.bf16.gmra.mxu3 %v7315_v22  ;;  %v6756_v30 = vpack.c.bf16 %v3376_v34, %v3373_v10 }
 0x3b5   :  { %v2892_v16 = vpop.f32.mrf.mxu2 }
 0x3b6   :  { %v2893_v48 = vadd.f32 %v2892_v16, %v6588_v9  ;;  %v5464_v9 = vld [vmem:[%s7186_s8 + $0x40] sm:$0xff] }
 0x3b7   :  { %v2941_v17 = vpop.f32.mrf.mxu3  ;;  %v6759_v47 = vpop.f32.mrf.mxu0  ;;  %3711 = vmatpush.bf16.msra.mxu1 %v5464_v9 }
 0x3b8   :  { %v2942_v2 = vadd.f32 %v2941_v17, %v2893_v48  ;;  %v6761_v36 = vpop.f32.mrf.mxu1 }
 0x3ba   :  { %v3379_v37 = vmax.f32 %v2942_v2, 0.0 }
 0x3bd   :  { %v2894_v4 = vpop.f32.mrf.mxu2 }
 0x3be   :  { %v2895_v44 = vadd.f32 %v2894_v4, %v6598_v59  ;;  %v5491_v4 = vld [vmem:[%s7184_s6] sm:$0x7] }
 0x3bf   :  { %v2943_v20 = vpop.f32.mrf.mxu3  ;;  %v2995_v1 = vpop.f32.mrf.mxu0 }
 0x3c0   :  { %v2944_v12 = vadd.f32 %v2943_v20, %v2895_v44  ;;  %v2996_v52 = vadd.f32 %v2995_v1, %v6615_v46  ;;  %v3044_v40 = vpop.f32.mrf.mxu1  ;;  %v6790_v44 = vperm.slane %v5491_v4, 2  ;;  %v5438_v4 = vld [vmem:[%s7185_s7 + $0x30] sm:$0xff] }
 0x3c2   :  { %v3382_v39 = vmax.f32 %v2944_v12, 0.0  ;;  %v6765_v10 = vadd.f32 %v3044_v40, %v2996_v52  ;;  %3092 = vmatmul.bf16.gmra.mxu2 %v7317_v3  ;;  %3190 = vmatmul.bf16.gmra.mxu0 %v7291_v32  ;;  %v5479_v32 = vld [vmem:[%s7186_s8 + $0xb8] sm:$0xff] }
 0x3c3   :  { %3239 = vmatmul.bf16.gmra.mxu1 %v7292_v33  ;;  %v5439_v33 = vld [vmem:[%s7185_s7 + $0x38] sm:$0xff]  ;;  %3753 = vmatpush.bf16.msrb.mxu2 %v5479_v32 }
 0x3c4   :  { %3141 = vmatmul.bf16.gmra.mxu3 %v6273_v11  ;;  %v6774_v59 = vpack.c.bf16 %v3382_v39, %v3379_v37 }
 0x3c5   :  { %v2897_v34 = vpop.f32.mrf.mxu2  ;;  %3946 = vmatpush.bf16.msrb.mxu3 %v5439_v33 }
 0x3c6   :  { %v2898_v24 = vadd.f32 %v2897_v34, %v6602_v7 }
 0x3c7   :  { %v2946_v16 = vpop.f32.mrf.mxu3  ;;  %v6777_v48 = vpop.f32.mrf.mxu0 }
 0x3c8   :  { %v2947_v17 = vadd.f32 %v2946_v16, %v2898_v24  ;;  %v6779_v2 = vpop.f32.mrf.mxu1  ;;  %v5447_v24 = vld [vmem:[%s7185_s7 + $0x78] sm:$0xff] }
 0x3c9   :  { %3995 = vmatpush.bf16.msrb.mxu0 %v5447_v24  ;;  %3947 = vmatpush.bf16.msrb.mxu3 %v5438_v4  ;;  %v5437_v4 = vld [vmem:[%s7185_s7 + $0x28] sm:$0xff] }
 0x3ca   :  { %v3385_v39 = vmax.f32 %v2947_v17, 0.0 }
 0x3cd   :  { %v2899_v7 = vpop.f32.mrf.mxu2  ;;  %3948 = vmatpush.bf16.msrb.mxu3 %v5437_v4 }
 0x3ce   :  { %v2900_v20 = vadd.f32 %v2899_v7, %v6612_v63  ;;  %v5455_v63 = vld [vmem:[%s7185_s7 + $0xb8] sm:$0xff] }
 0x3cf   :  { %v2948_v1 = vpop.f32.mrf.mxu3  ;;  %v3156_v12 = vpop.f32.mrf.mxu0  ;;  %4044 = vmatpush.bf16.msrb.mxu1 %v5455_v63  ;;  %v5446_v63 = vld [vmem:[%s7185_s7 + $0x70] sm:$0xff] }
 0x3d0   :  { %v2949_v52 = vadd.f32 %v2948_v1, %v2900_v20  ;;  %v3157_v40 = vadd.f32 %v3156_v12, %v6790_v44  ;;  %v3205_v37 = vpop.f32.mrf.mxu1  ;;  %3996 = vmatpush.bf16.msrb.mxu0 %v5446_v63  ;;  %v5445_v63 = vld [vmem:[%s7185_s7 + $0x68] sm:$0xff] }
 0x3d2   :  { %v3388_v9 = vmax.f32 %v2949_v52, 0.0  ;;  %v6794_v34 = vadd.f32 %v3205_v37, %v3157_v40  ;;  %3253 = vmatmul.bf16.vlgmr.msra.gmra.mxu2 %v7294_v57  ;;  %3663 = vmatmul.bf16.vlgmr.msra.gmra.mxu0 %v6651_v55 }
 0x3d4   :  { %3302 = vmatmul.bf16.vlgmr.msra.gmra.mxu3 %v7295_v21  ;;  %v6805_v16 = vpack.c.bf16 %v3388_v9, %v3385_v39  ;;  %v5478_v21 = vld [vmem:[%s7186_s8 + $0xb0] sm:$0xff]  ;;  %3997 = vmatpush.bf16.msrb.mxu0 %v5445_v63 }
 0x3d5   :  { %v3058_v17 = vpop.f32.mrf.mxu2  ;;  %3754 = vmatpush.bf16.msrb.mxu2 %v5478_v21 }
 0x3d6   :  { %v3059_v55 = vadd.f32 %v3058_v17, %v6619_v60 }
 0x3d7   :  { %v3107_v32 = vpop.f32.mrf.mxu3  ;;  %v6807_v33 = vpop.f32.mrf.mxu0 }
 0x3d8   :  { %v6809_v57 = vpop.f32.mrf.mxu1  ;;  %v3108_v20 = vadd.f32 %v3107_v32, %v3059_v55 }
 0x3da   :  { %v3344_v39 = vmax.f32 %v3108_v20, 0.0 }
 0x3dd   :  { %v3060_v7 = vpop.f32.mrf.mxu2 }
 0x3de   :  { %v3061_v1 = vadd.f32 %v3060_v7, %v6635_v5  ;;  %v5454_v5 = vld [vmem:[%s7185_s7 + $0xb0] sm:$0xff] }
 0x3df   :  { %v3109_v12 = vpop.f32.mrf.mxu3  ;;  %v3161_v52 = vpop.f32.mrf.mxu0  ;;  %4045 = vmatpush.bf16.msrb.mxu1 %v5454_v5 }
 0x3e0   :  { %v3110_v40 = vadd.f32 %v3109_v12, %v3061_v1  ;;  %v3162_v37 = vadd.f32 %v3161_v52, %v6790_v44  ;;  %v3210_v60 = vpop.f32.mrf.mxu1 }
 0x3e2   :  { %v3347_v9 = vmax.f32 %v3110_v40, 0.0  ;;  %v6820_v24 = vadd.f32 %v3210_v60, %v3162_v37  ;;  %3258 = vmatmul.bf16.gmra.mxu2 %v7297_v61  ;;  %3668 = vmatmul.bf16.gmra.mxu0 %v6671_v31 }
 0x3e4   :  { %3307 = vmatmul.bf16.gmra.mxu3 %v7298_v13  ;;  %v3392_v17 = vpack.c.bf16 %v3347_v9, %v3344_v39  ;;  %v5477_v13 = vld [vmem:[%s7186_s8 + $0xa8] sm:$0xff] }
 0x3e5   :  { %v3063_v32 = vpop.f32.mrf.mxu2  ;;  %3755 = vmatpush.bf16.msrb.mxu2 %v5477_v13 }
 0x3e6   :  { %3712 = vmatmul.bf16.vlgmr.msra.gmra.mxu1 %v3392_v17  ;;  %v3064_v31 = vadd.f32 %v3063_v32, %v6639_v15 }
 0x3e7   :  { %v3112_v55 = vpop.f32.mrf.mxu3  ;;  %v6831_v21 = vpop.f32.mrf.mxu0 }
 0x3e8   :  { %v6833_v61 = vpop.f32.mrf.mxu1  ;;  %v3113_v20 = vadd.f32 %v3112_v55, %v3064_v31  ;;  %v5436_v31 = vld [vmem:[%s7185_s7 + $0x20] sm:$0xff] }
 0x3e9   :  { %3949 = vmatpush.bf16.msrb.mxu3 %v5436_v31 }
 0x3ea   :  { %v3350_v60 = vmax.f32 %v3113_v20, 0.0 }
 0x3ed   :  { %v3065_v7 = vpop.f32.mrf.mxu2 }
 0x3ee   :  { %v3066_v1 = vadd.f32 %v3065_v7, %v6655_v14  ;;  %v5453_v14 = vld [vmem:[%s7185_s7 + $0xa8] sm:$0xff] }
 0x3ef   :  { %v3114_v12 = vpop.f32.mrf.mxu3  ;;  %v3166_v52 = vpop.f32.mrf.mxu0  ;;  %4046 = vmatpush.bf16.msrb.mxu1 %v5453_v14 }
 0x3f0   :  { %v3115_v40 = vadd.f32 %v3114_v12, %v3066_v1  ;;  %v3167_v37 = vadd.f32 %v3166_v52, %v6790_v44  ;;  %v3215_v15 = vpop.f32.mrf.mxu1 }
 0x3f2   :  { %v3353_v39 = vmax.f32 %v3115_v40, 0.0  ;;  %v6844_v9 = vadd.f32 %v3215_v15, %v3167_v37  ;;  %3263 = vmatmul.bf16.gmra.mxu2 %v7300_v41  ;;  %3673 = vmatmul.bf16.gmra.mxu0 %v6691_v53 }
 0x3f4   :  { %3312 = vmatmul.bf16.gmra.mxu3 %v7301_v6  ;;  %v3395_v5 = vpack.c.bf16 %v3353_v39, %v3350_v60  ;;  %v5476_v6 = vld [vmem:[%s7186_s8 + $0xa0] sm:$0xff] }
 0x3f5   :  { %v3068_v17 = vpop.f32.mrf.mxu2  ;;  %3756 = vmatpush.bf16.msrb.mxu2 %v5476_v6  ;;  %v5444_v60 = vld [vmem:[%s7185_s7 + $0x60] sm:$0xff] }
 0x3f6   :  { %3717 = vmatmul.bf16.gmra.mxu1 %v3395_v5  ;;  %v3069_v53 = vadd.f32 %v3068_v17, %v6659_v56  ;;  %3998 = vmatpush.bf16.msrb.mxu0 %v5444_v60  ;;  %v5435_v17 = vld [vmem:[%s7185_s7 + $0x18] sm:$0xff] }
 0x3f7   :  { %v3117_v32 = vpop.f32.mrf.mxu3  ;;  %v6855_v55 = vpop.f32.mrf.mxu0  ;;  %3950 = vmatpush.bf16.msrb.mxu3 %v5435_v17 }
 0x3f8   :  { %v6857_v41 = vpop.f32.mrf.mxu1  ;;  %v3118_v4 = vadd.f32 %v3117_v32, %v3069_v53 }
 0x3fa   :  { %v3356_v40 = vmax.f32 %v3118_v4, 0.0 }
 0x3fd   :  { %v3070_v13 = vpop.f32.mrf.mxu2 }
 0x3fe   :  { %v3071_v7 = vadd.f32 %v3070_v13, %v6675_v35  ;;  %v5452_v35 = vld [vmem:[%s7185_s7 + $0xa0] sm:$0xff] }
 0x3ff   :  { %v3119_v20 = vpop.f32.mrf.mxu3  ;;  %v3171_v1 = vpop.f32.mrf.mxu0  ;;  %4047 = vmatpush.bf16.msrb.mxu1 %v5452_v35 }
 0x400   :  { %v3120_v12 = vadd.f32 %v3119_v20, %v3071_v7  ;;  %v3172_v52 = vadd.f32 %v3171_v1, %v6790_v44  ;;  %v3220_v56 = vpop.f32.mrf.mxu1 }
 0x402   :  { %v3359_v37 = vmax.f32 %v3120_v12, 0.0  ;;  %v6868_v15 = vadd.f32 %v3220_v56, %v3172_v52  ;;  %3268 = vmatmul.bf16.gmra.mxu2 %v7303_v18  ;;  %3678 = vmatmul.bf16.gmra.mxu0 %v6711_v43  ;;  %v5443_v52 = vld [vmem:[%s7185_s7 + $0x58] sm:$0xff] }
 0x403   :  { %3999 = vmatpush.bf16.msrb.mxu0 %v5443_v52 }
 0x404   :  { %3317 = vmatmul.bf16.gmra.mxu3 %v7304_v0  ;;  %v3398_v39 = vpack.c.bf16 %v3359_v37, %v3356_v40  ;;  %v5475_v0 = vld [vmem:[%s7186_s8 + $0x98] sm:$0xff] }
 0x405   :  { %v3073_v63 = vpop.f32.mrf.mxu2  ;;  %3757 = vmatpush.bf16.msrb.mxu2 %v5475_v0 }
 0x406   :  { %3722 = vmatmul.bf16.gmra.mxu1 %v3398_v39  ;;  %v3074_v43 = vadd.f32 %v3073_v63, %v6679_v19  ;;  %v5434_v39 = vld [vmem:[%s7185_s7 + $0x10] sm:$0xff] }
 0x407   :  { %v3122_v14 = vpop.f32.mrf.mxu3  ;;  %v6879_v5 = vpop.f32.mrf.mxu0  ;;  %3951 = vmatpush.bf16.msrb.mxu3 %v5434_v39 }
 0x408   :  { %v6881_v18 = vpop.f32.mrf.mxu1  ;;  %v3123_v53 = vadd.f32 %v3122_v14, %v3074_v43 }
 0x40a   :  { %v3362_v20 = vmax.f32 %v3123_v53, 0.0 }
 0x40d   :  { %v3075_v32 = vpop.f32.mrf.mxu2 }
 0x40e   :  { %v3076_v6 = vadd.f32 %v3075_v32, %v6695_v25  ;;  %v5451_v25 = vld [vmem:[%s7185_s7 + $0x98] sm:$0xff] }
 0x40f   :  { %v3124_v31 = vpop.f32.mrf.mxu3  ;;  %v3176_v13 = vpop.f32.mrf.mxu0  ;;  %4048 = vmatpush.bf16.msrb.mxu1 %v5451_v25  ;;  %v5433_v25 = vld [vmem:[%s7185_s7 + $0x8] sm:$0xff] }
 0x410   :  { %v3125_v4 = vadd.f32 %v3124_v31, %v3076_v6  ;;  %v3177_v7 = vadd.f32 %v3176_v13, %v6790_v44  ;;  %v3225_v19 = vpop.f32.mrf.mxu1  ;;  %3952 = vmatpush.bf16.msrb.mxu3 %v5433_v25 }
 0x412   :  { %v3365_v1 = vmax.f32 %v3125_v4, 0.0  ;;  %v6892_v12 = vadd.f32 %v3225_v19, %v3177_v7  ;;  %3273 = vmatmul.bf16.gmra.mxu2 %v7307_v27  ;;  %3683 = vmatmul.bf16.gmra.mxu0 %v6732_v58  ;;  %v2983_v27 = vadd.f32 %v6714_v26, %v6615_v46  ;;  %v5450_v4 = vld [vmem:[%s7185_s7 + $0x90] sm:$0xff] }
 0x413   :  { %4049 = vmatpush.bf16.msrb.mxu1 %v5450_v4 }
 0x414   :  { %3322 = vmatmul.bf16.gmra.mxu3 %v7308_v8  ;;  %v3401_v56 = vpack.c.bf16 %v3365_v1, %v3362_v20  ;;  %v5474_v8 = vld [vmem:[%s7186_s8 + $0x90] sm:$0xff]  ;;  %v3032_v63 = vadd.f32 %v6716_v28, %v2983_v27 }
 0x415   :  { %v3078_v40 = vpop.f32.mrf.mxu2  ;;  %3758 = vmatpush.bf16.msrb.mxu2 %v5474_v8  ;;  %v5442_v28 = vld [vmem:[%s7185_s7 + $0x50] sm:$0xff]  ;;  %v5440_v8 = vld [vmem:[%s7185_s7 + $0x40] sm:$0xff] }
 0x416   :  { %3727 = vmatmul.bf16.gmra.mxu1 %v3401_v56  ;;  %v3079_v35 = vadd.f32 %v3078_v40, %v6699_v42  ;;  %4000 = vmatpush.bf16.msrb.mxu0 %v5442_v28  ;;  %v5441_v56 = vld [vmem:[%s7185_s7 + $0x48] sm:$0xff] }
 0x417   :  { %v3127_v37 = vpop.f32.mrf.mxu3  ;;  %v6903_v60 = vpop.f32.mrf.mxu0 }
 0x418   :  { %v6907_v58 = vpop.f32.mrf.mxu1  ;;  %v3128_v43 = vadd.f32 %v3127_v37, %v3079_v35  ;;  %v5432_v35 = vld [vmem:[%s7185_s7] sm:$0xff] }
 0x419   :  { %3953 = vmatpush.bf16.msrb.mxu3 %v5432_v35 }
 0x41a   :  { %v3368_v6 = vmax.f32 %v3128_v43, 0.0  ;;  %4001 = vmatpush.bf16.msrb.mxu0 %v5441_v56 }
 0x41d   :  { %v3080_v14 = vpop.f32.mrf.mxu2 }
 0x41e   :  { %v3081_v0 = vadd.f32 %v3080_v14, %v3032_v63  ;;  %4002 = vmatpush.bf16.msrb.mxu0 %v5440_v8 }
 0x41f   :  { %v3129_v26 = vpop.f32.mrf.mxu3  ;;  %v3181_v17 = vpop.f32.mrf.mxu0 }
 0x420   :  { %v3130_v32 = vadd.f32 %v3129_v26, %v3081_v0  ;;  %v3182_v42 = vadd.f32 %v3181_v17, %v6790_v44  ;;  %v3230_v53 = vpop.f32.mrf.mxu1  ;;  %v5449_v17 = vld [vmem:[%s7185_s7 + $0x88] sm:$0xff] }
 0x421   :  { %4050 = vmatpush.bf16.msrb.mxu1 %v5449_v17  ;;  %v7324_v17 = vld [vmem:[#allocation43_spill] sm:$0xff] }
 0x422   :  { %v3371_v31 = vmax.f32 %v3130_v32, 0.0  ;;  %v6918_v13 = vadd.f32 %v3230_v53, %v3182_v42  ;;  %3278 = vmatmul.bf16.gmra.mxu2 %v7311_v49  ;;  %3688 = vmatmul.bf16.gmra.mxu0 %v6756_v30  ;;  %v2988_v49 = vadd.f32 %v6735_v23, %v6615_v46 }
 0x424   :  { %3327 = vmatmul.bf16.gmra.mxu3 %v7320_v45  ;;  %v3404_v7 = vpack.c.bf16 %v3371_v31, %v3368_v6  ;;  %v5473_v45 = vld [vmem:[%s7186_s8 + $0x88] sm:$0xff]  ;;  %v3037_v40 = vadd.f32 %v6737_v29, %v2988_v49  ;;  %v2993_v31 = vadd.f32 %v6759_v47, %v6615_v46 }
 0x425   :  { %v3083_v19 = vpop.f32.mrf.mxu2  ;;  %3759 = vmatpush.bf16.msrb.mxu2 %v5473_v45 }
 0x426   :  { %3732 = vmatmul.bf16.gmra.mxu1 %v3404_v7  ;;  %v3084_v52 = vadd.f32 %v3083_v19, %v6720_v54 }
 0x427   :  { %v3132_v20 = vpop.f32.mrf.mxu3  ;;  %v6929_v1 = vpop.f32.mrf.mxu0 }
 0x428   :  { %v6933_v30 = vpop.f32.mrf.mxu1  ;;  %v3133_v37 = vadd.f32 %v3132_v20, %v3084_v52 }
 0x42a   :  { %v3374_v43 = vmax.f32 %v3133_v37, 0.0 }
 0x42d   :  { %v3085_v23 = vpop.f32.mrf.mxu2 }
 0x42e   :  { %v3086_v54 = vadd.f32 %v3085_v23, %v3037_v40 }
 0x42f   :  { %v3134_v27 = vpop.f32.mrf.mxu3  ;;  %v3186_v39 = vpop.f32.mrf.mxu0 }
 0x430   :  { %v3135_v63 = vadd.f32 %v3134_v27, %v3086_v54  ;;  %v3187_v14 = vadd.f32 %v3186_v39, %v6790_v44  ;;  %v3235_v29 = vpop.f32.mrf.mxu1  ;;  %v2998_v27 = vadd.f32 %v6777_v48, %v6615_v46 }
 0x432   :  { %v3377_v0 = vmax.f32 %v3135_v63, 0.0  ;;  %v6953_v26 = vadd.f32 %v3235_v29, %v3187_v14  ;;  %3283 = vmatmul.bf16.gmra.mxu2 %v7314_v50  ;;  %3693 = vmatmul.bf16.gmra.mxu0 %v6774_v59  ;;  %v3042_v59 = vadd.f32 %v6761_v36, %v2993_v31 }
 0x434   :  { %3332 = vmatmul.bf16.gmra.mxu3 %v7315_v22  ;;  %v3407_v32 = vpack.c.bf16 %v3377_v0, %v3374_v43  ;;  %v5472_v22 = vld [vmem:[%s7186_s8 + $0x80] sm:$0xff]  ;;  %v7323_v0 = vld [vmem:[#allocation10_spill] sm:$0xff] }
 0x435   :  { %v3088_v42 = vpop.f32.mrf.mxu2  ;;  %3760 = vmatpush.bf16.msrb.mxu2 %v5472_v22 }
 0x436   :  { %3737 = vmatmul.bf16.gmra.mxu1 %v3407_v32  ;;  %v3089_v50 = vadd.f32 %v3088_v42, %v6747_v38  ;;  %v5448_v38 = vld [vmem:[%s7185_s7 + $0x80] sm:$0xff] }
 0x437   :  { %v3137_v53 = vpop.f32.mrf.mxu3  ;;  %v6961_v6 = vpop.f32.mrf.mxu0  ;;  %4051 = vmatpush.bf16.msrb.mxu1 %v5448_v38 }
 0x438   :  { %v6965_v28 = vpop.f32.mrf.mxu1  ;;  %v3138_v7 = vadd.f32 %v3137_v53, %v3089_v50 }
 0x43a   :  { %v3380_v25 = vmax.f32 %v3138_v7, 0.0 }
 0x43d   :  { %v3090_v4 = vpop.f32.mrf.mxu2 }
 0x43e   :  { %v3091_v19 = vadd.f32 %v3090_v4, %v3042_v59 }
 0x43f   :  { %v3139_v20 = vpop.f32.mrf.mxu3  ;;  %v3191_v49 = vpop.f32.mrf.mxu0 }
 0x440   :  { %v3140_v52 = vadd.f32 %v3139_v20, %v3091_v19  ;;  %v3192_v45 = vadd.f32 %v3191_v49, %v6790_v44  ;;  %v3240_v47 = vpop.f32.mrf.mxu1 }
 0x442   :  { %v3383_v56 = vmax.f32 %v3140_v52, 0.0  ;;  %v6973_v40 = vadd.f32 %v3240_v47, %v3192_v45  ;;  %3288 = vmatmul.bf16.gmra.mxu2 %v7317_v3  ;;  %3698 = vmatmul.bf16.gmra.mxu0 %v6805_v16  ;;  %v3047_v16 = vadd.f32 %v6779_v2, %v2998_v27  ;;  %v7325_v52 = vld [vmem:[#allocation11_spill] sm:$0xff]  ;;  %v7326_v45 = vld [vmem:[#allocation44_spill] sm:$0xff] }
 0x444   :  { %3337 = vmatmul.bf16.gmra.mxu3 %v6273_v11  ;;  %v3410_v36 = vpack.c.bf16 %v3383_v56, %v3380_v25 }
 0x445   :  { %v3093_v23 = vpop.f32.mrf.mxu2 }
 0x446   :  { %3742 = vmatmul.bf16.gmra.mxu1 %v3410_v36  ;;  %v3094_v3 = vadd.f32 %v3093_v23, %v6765_v10  ;;  %v3159_v10 = vadd.f32 %v6807_v33, %v6790_v44  ;;  %v3164_v36 = vadd.f32 %v6831_v21, %v6790_v44 }
 0x447   :  { %v3142_v37 = vpop.f32.mrf.mxu3  ;;  %v6981_v54 = vpop.f32.mrf.mxu0 }
 0x448   :  { %v3143_v8 = vadd.f32 %v3142_v37, %v3094_v3  ;;  %v6992_v2 = vpop.f32.mrf.mxu1  ;;  %v3208_v31 = vadd.f32 %v6809_v57, %v3159_v10  ;;  %v7327_v57 = vld [vmem:[#allocation18_spill] sm:$0xff]  ;;  %v3213_v27 = vadd.f32 %v6833_v61, %v3164_v36 }
 0x44a   :  { %v3386_v29 = vmax.f32 %v3143_v8, 0.0 }
 0x44d   :  { %v3095_v35 = vpop.f32.mrf.mxu2 }
 0x44e   :  { %v3096_v39 = vadd.f32 %v3095_v35, %v3047_v16 }
 0x44f   :  { %v3144_v63 = vpop.f32.mrf.mxu3  ;;  %v3664_v14 = vpop.f32.mrf.mxu0 }
 0x450   :  { %v3145_v11 = vadd.f32 %v3144_v63, %v3096_v39 }
 0x452   :  { %v3389_v43 = vmax.f32 %v3145_v11, 0.0  ;;  %4003 = vmatmul.bf16.vlgmr.msrb.gmra.mxu0 %v7323_v0  ;;  %v7329_v0 = vld [vmem:[#allocation45_spill] sm:$0xff] }
 0x454   :  { %3954 = vmatmul.bf16.vlgmr.msrb.gmra.mxu3 %v7324_v17  ;;  %v3413_v32 = vpack.c.bf16 %v3389_v43, %v3386_v29  ;;  %v7328_v43 = vld [vmem:[#allocation12_spill] sm:$0xff] }
 0x455   :  { %v3254_v42 = vpop.f32.mrf.mxu2 }
 0x456   :  { %3747 = vmatmul.bf16.gmra.mxu1 %v3413_v32  ;;  %v3255_v48 = vadd.f32 %v3254_v42, %v6794_v34  ;;  %v7330_v42 = vld [vmem:[#allocation20_spill] sm:$0xff] }
 0x457   :  { %v3303_v53 = vpop.f32.mrf.mxu3  ;;  %v3666_v46 = vpop.f32.mrf.mxu0 }
 0x458   :  { %v3304_v22 = vadd.f32 %v3303_v53, %v3255_v48 }
 0x45a   :  { %v3345_v20 = vmax.f32 %v3304_v22, 0.0 }
 0x45d   :  { %v3256_v50 = vpop.f32.mrf.mxu2 }
 0x45e   :  { %v3257_v59 = vadd.f32 %v3256_v50, %v3208_v31 }
 0x45f   :  { %v3305_v4 = vpop.f32.mrf.mxu3  ;;  %v3669_v7 = vpop.f32.mrf.mxu0 }
 0x460   :  { %v3306_v19 = vadd.f32 %v3305_v4, %v3257_v59 }
 0x462   :  { %v3348_v49 = vmax.f32 %v3306_v19, 0.0  ;;  %4008 = vmatmul.bf16.gmra.mxu0 %v7325_v52 }
 0x463   :  { %v3713_v47 = vpop.f32.mrf.mxu1 }
 0x464   :  { %3959 = vmatmul.bf16.gmra.mxu3 %v7326_v45  ;;  %v3393_v33 = vpack.c.bf16 %v3348_v49, %v3345_v20  ;;  %v6997_v25 = vadd.f32 %v3713_v47, %v3664_v14  ;;  %v7331_v45 = vld [vmem:[#allocation13_spill] sm:$0xff]  ;;  %v7332_v47 = vld [vmem:[#allocation46_spill] sm:$0xff] }
 0x465   :  { %v3259_v34 = vpop.f32.mrf.mxu2 }
 0x466   :  { %3761 = vmatmul.bf16.vlgmr.msrb.gmra.mxu2 %v3393_v33  ;;  %4052 = vmatmul.bf16.vlgmr.msrb.gmra.mxu1 %v7327_v57  ;;  %v3260_v23 = vadd.f32 %v3259_v34, %v6820_v24 }
 0x467   :  { %v3308_v56 = vpop.f32.mrf.mxu3  ;;  %v3671_v38 = vpop.f32.mrf.mxu0 }
 0x468   :  { %v3309_v35 = vadd.f32 %v3308_v56, %v3260_v23  ;;  %v7333_v56 = vld [vmem:[#allocation22_spill] sm:$0xff] }
 0x46a   :  { %v3351_v11 = vmax.f32 %v3309_v35, 0.0 }
 0x46b   :  { %v3715_v37 = vpop.f32.mrf.mxu1 }
 0x46c   :  { %v7004_v3 = vadd.f32 %v3715_v37, %v3666_v46  ;;  %v3169_v46 = vadd.f32 %v6855_v55, %v6790_v44 }
 0x46d   :  { %v3261_v16 = vpop.f32.mrf.mxu2 }
 0x46e   :  { %v3262_v8 = vadd.f32 %v3261_v16, %v3213_v27  ;;  %v3218_v31 = vadd.f32 %v6857_v41, %v3169_v46 }
 0x46f   :  { %v3310_v39 = vpop.f32.mrf.mxu3  ;;  %v3674_v63 = vpop.f32.mrf.mxu0 }
 0x470   :  { %v3311_v14 = vadd.f32 %v3310_v39, %v3262_v8 }
 0x472   :  { %v3354_v29 = vmax.f32 %v3311_v14, 0.0  ;;  %4013 = vmatmul.bf16.gmra.mxu0 %v7328_v43  ;;  %v7334_v43 = vld [vmem:[#allocation14_spill] sm:$0xff] }
 0x473   :  { %v3718_v21 = vpop.f32.mrf.mxu1 }
 0x474   :  { %3964 = vmatmul.bf16.gmra.mxu3 %v7329_v0  ;;  %v7008_v17 = vadd.f32 %v3718_v21, %v3669_v7  ;;  %v3396_v24 = vpack.c.bf16 %v3354_v29, %v3351_v11  ;;  %v7335_v0 = vld [vmem:[#allocation8_spill] sm:$0xff] }
 0x475   :  { %v3264_v32 = vpop.f32.mrf.mxu2 }
 0x476   :  { %3766 = vmatmul.bf16.gmra.mxu2 %v3396_v24  ;;  %4057 = vmatmul.bf16.gmra.mxu1 %v7330_v42  ;;  %v3265_v10 = vadd.f32 %v3264_v32, %v6844_v9  ;;  %v7336_v32 = vld [vmem:[#allocation24_spill] sm:$0xff]  ;;  %v3179_v42 = vadd.f32 %v6903_v60, %v6790_v44 }
 0x477   :  { %v3313_v61 = vpop.f32.mrf.mxu3  ;;  %v3676_v53 = vpop.f32.mrf.mxu0 }
 0x478   :  { %v3314_v59 = vadd.f32 %v3313_v61, %v3265_v10  ;;  %v3228_v10 = vadd.f32 %v6907_v58, %v3179_v42 }
 0x47a   :  { %v3357_v49 = vmax.f32 %v3314_v59, 0.0 }
 0x47b   :  { %v3720_v48 = vpop.f32.mrf.mxu1 }
 0x47c   :  { %v7015_v50 = vadd.f32 %v3720_v48, %v3671_v38  ;;  %v3174_v38 = vadd.f32 %v6879_v5, %v6790_v44 }
 0x47d   :  { %v3266_v22 = vpop.f32.mrf.mxu2 }
 0x47e   :  { %v3267_v4 = vadd.f32 %v3266_v22, %v3218_v31  ;;  %v3223_v37 = vadd.f32 %v6881_v18, %v3174_v38 }
 0x47f   :  { %v3315_v7 = vpop.f32.mrf.mxu3  ;;  %v3679_v19 = vpop.f32.mrf.mxu0 }
 0x480   :  { %v3316_v20 = vadd.f32 %v3315_v7, %v3267_v4 }
 0x482   :  { %v3360_v52 = vmax.f32 %v3316_v20, 0.0  ;;  %4018 = vmatmul.bf16.gmra.mxu0 %v7331_v45  ;;  %v7338_v45 = vld [vmem:[#allocation9_spill] sm:$0xff] }
 0x483   :  { %v3723_v55 = vpop.f32.mrf.mxu1 }
 0x484   :  { %3969 = vmatmul.bf16.gmra.mxu3 %v7332_v47  ;;  %v7019_v33 = vadd.f32 %v3723_v55, %v3674_v63  ;;  %v3399_v9 = vpack.c.bf16 %v3360_v52, %v3357_v49  ;;  %v7337_v52 = vld [vmem:[#allocation15_spill] sm:$0xff] }
 0x485   :  { %v3269_v34 = vpop.f32.mrf.mxu2 }
 0x486   :  { %3771 = vmatmul.bf16.gmra.mxu2 %v3399_v9  ;;  %4062 = vmatmul.bf16.gmra.mxu1 %v7333_v56  ;;  %v3270_v36 = vadd.f32 %v3269_v34, %v6868_v15  ;;  %v7339_v9 = vld [vmem:[#allocation26_spill] sm:$0xff] }
 0x487   :  { %v3318_v41 = vpop.f32.mrf.mxu3  ;;  %v3681_v57 = vpop.f32.mrf.mxu0 }
 0x488   :  { %v3319_v35 = vadd.f32 %v3318_v41, %v3270_v36  ;;  %v3184_v41 = vadd.f32 %v6929_v1, %v6790_v44 }
 0x48a   :  { %v3363_v11 = vmax.f32 %v3319_v35, 0.0  ;;  %v3233_v38 = vadd.f32 %v6933_v30, %v3184_v41 }
 0x48b   :  { %v3725_v23 = vpop.f32.mrf.mxu1 }
 0x48c   :  { %v7026_v27 = vadd.f32 %v3725_v23, %v3676_v53 }
 0x48d   :  { %v3271_v16 = vpop.f32.mrf.mxu2 }
 0x48e   :  { %v3272_v8 = vadd.f32 %v3271_v16, %v3223_v37 }
 0x48f   :  { %v3320_v39 = vpop.f32.mrf.mxu3  ;;  %v3684_v63 = vpop.f32.mrf.mxu0 }
 0x490   :  { %v3321_v14 = vadd.f32 %v3320_v39, %v3272_v8 }
 0x492   :  { %v3366_v29 = vmax.f32 %v3321_v14, 0.0  ;;  %4023 = vmatmul.bf16.gmra.mxu0 %v7334_v43 }
 0x493   :  { %v3728_v5 = vpop.f32.mrf.mxu1 }
 0x494   :  { %3974 = vmatmul.bf16.gmra.mxu3 %v7335_v0  ;;  %v7030_v21 = vadd.f32 %v3728_v5, %v3679_v19  ;;  %v3402_v15 = vpack.c.bf16 %v3366_v29, %v3363_v11  ;;  %v7340_v11 = vld [vmem:[#allocation16_spill] sm:$0xff]  ;;  %v7341_v29 = vld [vmem:[#allocation34_spill] sm:$0xff]  ;;  %v7342_v5 = vld [vmem:[#allocation27_spill] sm:$0xff] }
 0x495   :  { %v3274_v24 = vpop.f32.mrf.mxu2 }
 0x496   :  { %3776 = vmatmul.bf16.gmra.mxu2 %v3402_v15  ;;  %4067 = vmatmul.bf16.gmra.mxu1 %v7336_v32  ;;  %v3275_v53 = vadd.f32 %v3274_v24, %v6892_v12  ;;  %v3189_v24 = vadd.f32 %v6961_v6, %v6790_v44 }
 0x497   :  { %v3323_v18 = vpop.f32.mrf.mxu3  ;;  %v3686_v61 = vpop.f32.mrf.mxu0 }
 0x498   :  { %v3324_v22 = vadd.f32 %v3323_v18, %v3275_v53 }
 0x49a   :  { %v3369_v20 = vmax.f32 %v3324_v22, 0.0 }
 0x49b   :  { %v3730_v46 = vpop.f32.mrf.mxu1 }
 0x49c   :  { %v7037_v48 = vadd.f32 %v3730_v46, %v3681_v57 }
 0x49d   :  { %v3276_v31 = vpop.f32.mrf.mxu2 }
 0x49e   :  { %v3277_v59 = vadd.f32 %v3276_v31, %v3228_v10 }
 0x49f   :  { %v3325_v4 = vpop.f32.mrf.mxu3  ;;  %v3689_v7 = vpop.f32.mrf.mxu0 }
 0x4a0   :  { %v3326_v19 = vadd.f32 %v3325_v4, %v3277_v59 }
 0x4a2   :  { %v3372_v49 = vmax.f32 %v3326_v19, 0.0  ;;  %4028 = vmatmul.bf16.gmra.mxu0 %v7337_v52  ;;  %v7343_v19 = vld [vmem:[#allocation17_spill] sm:$0xff] }
 0x4a3   :  { %v3733_v60 = vpop.f32.mrf.mxu1 }
 0x4a4   :  { %3979 = vmatmul.bf16.gmra.mxu3 %v7338_v45  ;;  %v3405_v47 = vpack.c.bf16 %v3372_v49, %v3369_v20  ;;  %v7041_v12 = vadd.f32 %v3733_v60, %v3684_v63  ;;  %v7344_v20 = vld [vmem:[#allocation37_spill] sm:$0xff]  ;;  %v3194_v60 = vadd.f32 %v6981_v54, %v6790_v44 }
 0x4a5   :  { %v3279_v55 = vpop.f32.mrf.mxu2 }
 0x4a6   :  { %3781 = vmatmul.bf16.gmra.mxu2 %v3405_v47  ;;  %4072 = vmatmul.bf16.gmra.mxu1 %v7339_v9  ;;  %v3280_v56 = vadd.f32 %v3279_v55, %v6918_v13 }
 0x4a7   :  { %v3328_v58 = vpop.f32.mrf.mxu3  ;;  %v3691_v34 = vpop.f32.mrf.mxu0 }
 0x4a8   :  { %v3329_v37 = vadd.f32 %v3328_v58, %v3280_v56  ;;  %v3243_v58 = vadd.f32 %v6992_v2, %v3194_v60 }
 0x4aa   :  { %v3375_v63 = vmax.f32 %v3329_v37, 0.0 }
 0x4ab   :  { %v3735_v57 = vpop.f32.mrf.mxu1 }
 0x4ac   :  { %v7048_v36 = vadd.f32 %v3735_v57, %v3686_v61  ;;  %v3238_v61 = vadd.f32 %v6965_v28, %v3189_v24 }
 0x4ad   :  { %v3281_v23 = vpop.f32.mrf.mxu2 }
 0x4ae   :  { %v3282_v16 = vadd.f32 %v3281_v23, %v3233_v38 }
 0x4af   :  { %v3330_v35 = vpop.f32.mrf.mxu3  ;;  %v3694_v8 = vpop.f32.mrf.mxu0 }
 0x4b0   :  { %v3331_v39 = vadd.f32 %v3330_v35, %v3282_v16 }
 0x4b2   :  { %v3378_v14 = vmax.f32 %v3331_v39, 0.0  ;;  %4033 = vmatmul.bf16.gmra.mxu0 %v7340_v11 }
 0x4b3   :  { %v3738_v1 = vpop.f32.mrf.mxu1 }
 0x4b4   :  { %3984 = vmatmul.bf16.gmra.mxu3 %v7341_v29  ;;  %v3408_v43 = vpack.c.bf16 %v3378_v14, %v3375_v63  ;;  %v7052_v13 = vadd.f32 %v3738_v1, %v3689_v7 }
 0x4b5   :  { %v3284_v0 = vpop.f32.mrf.mxu2 }
 0x4b6   :  { %3786 = vmatmul.bf16.gmra.mxu2 %v3408_v43  ;;  %4077 = vmatmul.bf16.gmra.mxu1 %v7342_v5  ;;  %v3285_v18 = vadd.f32 %v3284_v0, %v6953_v26 }
 0x4b7   :  { %v3333_v30 = vpop.f32.mrf.mxu3  ;;  %v3696_v15 = vpop.f32.mrf.mxu0 }
 0x4b8   :  { %v3334_v46 = vadd.f32 %v3333_v30, %v3285_v18 }
 0x4ba   :  { %v3381_v4 = vmax.f32 %v3334_v46, 0.0 }
 0x4bb   :  { %v3740_v32 = vpop.f32.mrf.mxu1 }
 0x4bc   :  { %v7059_v42 = vadd.f32 %v3740_v32, %v3691_v34 }
 0x4bd   :  { %v3286_v53 = vpop.f32.mrf.mxu2 }
 0x4be   :  { %v3287_v10 = vadd.f32 %v3286_v53, %v3238_v61 }
 0x4bf   :  { %v3335_v31 = vpop.f32.mrf.mxu3  ;;  %v3699_v22 = vpop.f32.mrf.mxu0 }
 0x4c0   :  { %v3336_v59 = vadd.f32 %v3335_v31, %v3287_v10 }
 0x4c2   :  { %v3384_v7 = vmax.f32 %v3336_v59, 0.0  ;;  %4038 = vmatmul.bf16.gmra.mxu0 %v7343_v19 }
 0x4c3   :  { %v3743_v6 = vpop.f32.mrf.mxu1 }
 0x4c4   :  { %3989 = vmatmul.bf16.gmra.mxu3 %v7344_v20  ;;  %v3411_v49 = vpack.c.bf16 %v3384_v7, %v3381_v4  ;;  %v7063_v26 = vadd.f32 %v3743_v6, %v3694_v8 }
 0x4c5   :  { %v3289_v52 = vpop.f32.mrf.mxu2 }
 0x4c6   :  { %3791 = vmatmul.bf16.gmra.mxu2 %v3411_v49  ;;  %4082 = vmatmul.bf16.gmra.mxu1 %v6608_v51  ;;  %v3290_v47 = vadd.f32 %v3289_v52, %v6973_v40 }
 0x4c7   :  { %v3338_v28 = vpop.f32.mrf.mxu3  ;;  %v3701_v45 = vpop.f32.mrf.mxu0 }
 0x4c8   :  { %v3339_v41 = vadd.f32 %v3338_v28, %v3290_v47 }
 0x4ca   :  { %v3387_v37 = vmax.f32 %v3339_v41, 0.0 }
 0x4cb   :  { %v3745_v55 = vpop.f32.mrf.mxu1 }
 0x4cc   :  { %v7070_v9 = vadd.f32 %v3745_v55, %v3696_v15  ;;  %v7081_v15 = vld [vmem:[%s7187_s9] ss:$0 sm:$0xff] }
 0x4cd   :  { %v3291_v34 = vpop.f32.mrf.mxu2 }
 0x4ce   :  { %v3292_v56 = vadd.f32 %v3291_v34, %v3243_v58 }
 0x4cf   :  { %v3340_v57 = vpop.f32.mrf.mxu3  ;;  %v4004_v38 = vpop.f32.mrf.mxu0 }
 0x4d0   :  { %v3341_v23 = vadd.f32 %v3340_v57, %v3292_v56 }
 0x4d2   :  { %v3390_v16 = vmax.f32 %v3341_v23, 0.0 }
 0x4d3   :  { %v3748_v51 = vpop.f32.mrf.mxu1 }
 0x4d4   :  { %v3414_v35 = vpack.c.bf16 %v3390_v16, %v3387_v37  ;;  %v7072_v8 = vadd.f32 %v3748_v51, %v3699_v22 }
 0x4d6   :  { %3796 = vmatmul.bf16.gmra.mxu2 %v3414_v35  ;;  %4087 = vmatmul.bf16.gmra.mxu1 %v6631_v62 }
 0x4d7   :  { %v3955_v44 = vpop.f32.mrf.mxu3  ;;  %v4006_v40 = vpop.f32.mrf.mxu0 }
 0x4db   :  { %v3750_v54 = vpop.f32.mrf.mxu1 }
 0x4dc   :  { %v7075_v2 = vadd.f32 %v3750_v54, %v3701_v45 }
 0x4df   :  { %v3957_v39 = vpop.f32.mrf.mxu3  ;;  %v4009_v63 = vpop.f32.mrf.mxu0 }
 0x4e3   :  { %v4053_v14 = vpop.f32.mrf.mxu1 }
 0x4e7   :  { %v3960_v11 = vpop.f32.mrf.mxu3  ;;  %v4011_v30 = vpop.f32.mrf.mxu0 }
 0x4e9   :  { %v3762_v29 = vpop.f32.mrf.mxu2 }
 0x4ea   :  { %v3763_v1 = vadd.f32 %v3762_v29, %v6997_v25 }
 0x4eb   :  { %v4055_v43 = vpop.f32.mrf.mxu1 }
 0x4ec   :  { %v3956_v0 = vadd.f32 %v3955_v44, %v3763_v1 }
 0x4ee   :  { %v4005_v5 = vadd.f32 %v4004_v38, %v3956_v0 }
 0x4ef   :  { %v3962_v62 = vpop.f32.mrf.mxu3  ;;  %v4014_v31 = vpop.f32.mrf.mxu0 }
 0x4f0   :  { %v4054_v24 = vadd.f32 %v4053_v14, %v4005_v5 }
 0x4f1   :  { %v3764_v18 = vpop.f32.mrf.mxu2 }
 0x4f2   :  { %v4097_v32 = vadd.f32 %v7081_v15, %v4054_v24  ;;  %v3765_v61 = vadd.f32 %v3764_v18, %v7004_v3 }
 0x4f3   :  { %v4058_v53 = vpop.f32.mrf.mxu1 }
 0x4f4   :  { %4114 = vst.msk [vmem:[%s7188_s10] sm:$0xff] %vm4113_vm1, %v4097_v32  ;;  %v3958_v25 = vadd.f32 %v3957_v39, %v3765_v61 }
 0x4f6   :  { %v4007_v46 = vadd.f32 %v4006_v40, %v3958_v25 }
 0x4f7   :  { %v3965_v10 = vpop.f32.mrf.mxu3  ;;  %v4016_v52 = vpop.f32.mrf.mxu0 }
 0x4f8   :  { %v4056_v22 = vadd.f32 %v4055_v43, %v4007_v46 }
 0x4f9   :  { %v3767_v59 = vpop.f32.mrf.mxu2 }
 0x4fa   :  { %v4098_v4 = vadd.f32 %v7081_v15, %v4056_v22  ;;  %v3768_v7 = vadd.f32 %v3767_v59, %v7008_v17 }
 0x4fb   :  { %v4060_v19 = vpop.f32.mrf.mxu1 }
 0x4fc   :  { %4115 = vst.msk [vmem:[%s7188_s10 + $0x8] sm:$0xff] %vm4113_vm1, %v4098_v4  ;;  %v3961_v3 = vadd.f32 %v3960_v11, %v3768_v7 }
 0x4fe   :  { %v4010_v20 = vadd.f32 %v4009_v63, %v3961_v3 }
 0x4ff   :  { %v3967_v6 = vpop.f32.mrf.mxu3  ;;  %v4019_v38 = vpop.f32.mrf.mxu0 }
 0x500   :  { %v4059_v49 = vadd.f32 %v4058_v53, %v4010_v20 }
 0x501   :  { %v3769_v28 = vpop.f32.mrf.mxu2 }
 0x502   :  { %v4099_v45 = vadd.f32 %v7081_v15, %v4059_v49  ;;  %v3770_v60 = vadd.f32 %v3769_v28, %v7015_v50 }
 0x503   :  { %v4063_v47 = vpop.f32.mrf.mxu1 }
 0x504   :  { %4116 = vst.msk [vmem:[%s7188_s10 + $0x10] sm:$0xff] %vm4113_vm1, %v4099_v45  ;;  %v3963_v17 = vadd.f32 %v3962_v62, %v3770_v60 }
 0x506   :  { %v4012_v55 = vadd.f32 %v4011_v30, %v3963_v17 }
 0x507   :  { %v3970_v34 = vpop.f32.mrf.mxu3  ;;  %v4021_v39 = vpop.f32.mrf.mxu0 }
 0x508   :  { %v4061_v58 = vadd.f32 %v4060_v19, %v4012_v55 }
 0x509   :  { %v3772_v41 = vpop.f32.mrf.mxu2 }
 0x50a   :  { %v4100_v56 = vadd.f32 %v7081_v15, %v4061_v58  ;;  %v3773_v57 = vadd.f32 %v3772_v41, %v7019_v33 }
 0x50b   :  { %v4065_v23 = vpop.f32.mrf.mxu1 }
 0x50c   :  { %4117 = vst.msk [vmem:[%s7188_s10 + $0x18] sm:$0xff] %vm4113_vm1, %v4100_v56  ;;  %v3966_v50 = vadd.f32 %v3965_v10, %v3773_v57 }
 0x50e   :  { %v4015_v37 = vadd.f32 %v4014_v31, %v3966_v50 }
 0x50f   :  { %v3972_v40 = vpop.f32.mrf.mxu3  ;;  %v4024_v5 = vpop.f32.mrf.mxu0 }
 0x510   :  { %v4064_v16 = vadd.f32 %v4063_v47, %v4015_v37 }
 0x511   :  { %v3774_v51 = vpop.f32.mrf.mxu2 }
 0x512   :  { %v4101_v35 = vadd.f32 %v7081_v15, %v4064_v16  ;;  %v3775_v44 = vadd.f32 %v3774_v51, %v7026_v27 }
 0x513   :  { %v4068_v54 = vpop.f32.mrf.mxu1 }
 0x514   :  { %4118 = vst.msk [vmem:[%s7188_s10 + $0x20] sm:$0xff] %vm4113_vm1, %v4101_v35  ;;  %v3968_v33 = vadd.f32 %v3967_v6, %v3775_v44 }
 0x516   :  { %v4017_v63 = vadd.f32 %v4016_v52, %v3968_v33 }
 0x517   :  { %v3975_v0 = vpop.f32.mrf.mxu3  ;;  %v4026_v10 = vpop.f32.mrf.mxu0 }
 0x518   :  { %v4066_v14 = vadd.f32 %v4065_v23, %v4017_v63 }
 0x519   :  { %v3777_v11 = vpop.f32.mrf.mxu2 }
 0x51a   :  { %v4102_v29 = vadd.f32 %v7081_v15, %v4066_v14  ;;  %v3778_v1 = vadd.f32 %v3777_v11, %v7030_v21 }
 0x51b   :  { %v4070_v43 = vpop.f32.mrf.mxu1 }
 0x51c   :  { %4119 = vst.msk [vmem:[%s7188_s10 + $0x28] sm:$0xff] %vm4113_vm1, %v4102_v29  ;;  %v3971_v27 = vadd.f32 %v3970_v34, %v3778_v1 }
 0x51e   :  { %v4020_v30 = vadd.f32 %v4019_v38, %v3971_v27 }
 0x51f   :  { %v3977_v25 = vpop.f32.mrf.mxu3  ;;  %v4029_v52 = vpop.f32.mrf.mxu0 }
 0x520   :  { %v4069_v62 = vadd.f32 %v4068_v54, %v4020_v30 }
 0x521   :  { %v3779_v24 = vpop.f32.mrf.mxu2 }
 0x522   :  { %v4103_v18 = vadd.f32 %v7081_v15, %v4069_v62  ;;  %v3780_v32 = vadd.f32 %v3779_v24, %v7037_v48 }
 0x523   :  { %v4073_v61 = vpop.f32.mrf.mxu1 }
 0x524   :  { %4120 = vst.msk [vmem:[%s7188_s10 + $0x30] sm:$0xff] %vm4113_vm1, %v4103_v18  ;;  %v3973_v21 = vadd.f32 %v3972_v40, %v3780_v32 }
 0x526   :  { %v4022_v53 = vadd.f32 %v4021_v39, %v3973_v21 }
 0x527   :  { %v3980_v3 = vpop.f32.mrf.mxu3  ;;  %v4031_v34 = vpop.f32.mrf.mxu0 }
 0x528   :  { %v4071_v46 = vadd.f32 %v4070_v43, %v4022_v53 }
 0x529   :  { %v3782_v31 = vpop.f32.mrf.mxu2 }
 0x52a   :  { %v4104_v22 = vadd.f32 %v7081_v15, %v4071_v46  ;;  %v3783_v59 = vadd.f32 %v3782_v31, %v7041_v12 }
 0x52b   :  { %v4075_v4 = vpop.f32.mrf.mxu1 }
 0x52c   :  { %4121 = vst.msk [vmem:[%s7188_s10 + $0x38] sm:$0xff] %vm4113_vm1, %v4104_v22  ;;  %v3976_v48 = vadd.f32 %v3975_v0, %v3783_v59 }
 0x52e   :  { %v4025_v7 = vadd.f32 %v4024_v5, %v3976_v48 }
 0x52f   :  { %v3982_v58 = vpop.f32.mrf.mxu3  ;;  %v4034_v51 = vpop.f32.mrf.mxu0 }
 0x530   :  { %v4074_v19 = vadd.f32 %v4073_v61, %v4025_v7 }
 0x531   :  { %v3784_v20 = vpop.f32.mrf.mxu2 }
 0x532   :  { %v4105_v6 = vadd.f32 %v7081_v15, %v4074_v19  ;;  %v3785_v49 = vadd.f32 %v3784_v20, %v7048_v36 }
 0x533   :  { %v4078_v28 = vpop.f32.mrf.mxu1 }
 0x534   :  { %4122 = vst.msk [vmem:[%s7188_s10 + $0x40] sm:$0xff] %vm4113_vm1, %v4105_v6  ;;  %v3978_v12 = vadd.f32 %v3977_v25, %v3785_v49 }
 0x536   :  { %v4027_v45 = vadd.f32 %v4026_v10, %v3978_v12 }
 0x537   :  { %v3985_v37 = vpop.f32.mrf.mxu3  ;;  %v4036_v11 = vpop.f32.mrf.mxu0 }
 0x538   :  { %v4076_v60 = vadd.f32 %v4075_v4, %v4027_v45 }
 0x539   :  { %v3787_v47 = vpop.f32.mrf.mxu2 }
 0x53a   :  { %v4106_v17 = vadd.f32 %v7081_v15, %v4076_v60  ;;  %v3788_v55 = vadd.f32 %v3787_v47, %v7052_v13 }
 0x53b   :  { %v4080_v56 = vpop.f32.mrf.mxu1 }
 0x53c   :  { %4123 = vst.msk [vmem:[%s7188_s10 + $0x48] sm:$0xff] %vm4113_vm1, %v4106_v17  ;;  %v3981_v36 = vadd.f32 %v3980_v3, %v3788_v55 }
 0x53e   :  { %v4030_v41 = vadd.f32 %v4029_v52, %v3981_v36 }
 0x53f   :  { %v3987_v63 = vpop.f32.mrf.mxu3  ;;  %v4039_v32 = vpop.f32.mrf.mxu0 }
 0x540   :  { %v4079_v57 = vadd.f32 %v4078_v28, %v4030_v41 }
 0x541   :  { %v3789_v38 = vpop.f32.mrf.mxu2 }
 0x542   :  { %v4107_v23 = vadd.f32 %v7081_v15, %v4079_v57  ;;  %v3790_v50 = vadd.f32 %v3789_v38, %v7059_v42 }
 0x543   :  { %v4083_v44 = vpop.f32.mrf.mxu1 }
 0x544   :  { %4124 = vst.msk [vmem:[%s7188_s10 + $0x50] sm:$0xff] %vm4113_vm1, %v4107_v23  ;;  %v3983_v13 = vadd.f32 %v3982_v58, %v3790_v50 }
 0x546   :  { %v4032_v16 = vadd.f32 %v4031_v34, %v3983_v13 }
 0x547   :  { %v3990_v5 = vpop.f32.mrf.mxu3  ;;  %v4041_v22 = vpop.f32.mrf.mxu0 }
 0x548   :  { %v4081_v35 = vadd.f32 %v4080_v56, %v4032_v16 }
 0x549   :  { %v3792_v40 = vpop.f32.mrf.mxu2 }
 0x54a   :  { %v4108_v54 = vadd.f32 %v7081_v15, %v4081_v35  ;;  %v3793_v33 = vadd.f32 %v3792_v40, %v7063_v26 }
 0x54b   :  { %v4085_v27 = vpop.f32.mrf.mxu1 }
 0x54c   :  { %4125 = vst.msk [vmem:[%s7188_s10 + $0x58] sm:$0xff] %vm4113_vm1, %v4108_v54  ;;  %v3986_v42 = vadd.f32 %v3985_v37, %v3793_v33 }
 0x54e   :  { %v4035_v39 = vadd.f32 %v4034_v51, %v3986_v42 }
 0x54f   :  { %v3992_v31 = vpop.f32.mrf.mxu3 }
 0x550   :  { %v4084_v14 = vadd.f32 %v4083_v44, %v4035_v39 }
 0x551   :  { %v3794_v29 = vpop.f32.mrf.mxu2 }
 0x552   :  { %v4109_v1 = vadd.f32 %v7081_v15, %v4084_v14  ;;  %v3795_v43 = vadd.f32 %v3794_v29, %v7070_v9 }
 0x553   :  { %v4088_v61 = vpop.f32.mrf.mxu1 }
 0x554   :  { %4126 = vst.msk [vmem:[%s7188_s10 + $0x60] sm:$0xff] %vm4113_vm1, %v4109_v1  ;;  %v3988_v26 = vadd.f32 %v3987_v63, %v3795_v43 }
 0x556   :  { %v4037_v0 = vadd.f32 %v4036_v11, %v3988_v26 }
 0x558   :  { %v4086_v30 = vadd.f32 %v4085_v27, %v4037_v0 }
 0x559   :  { %v3797_v62 = vpop.f32.mrf.mxu2 }
 0x55a   :  { %v4110_v24 = vadd.f32 %v7081_v15, %v4086_v30  ;;  %v3798_v18 = vadd.f32 %v3797_v62, %v7072_v8 }
 0x55b   :  { %v4090_v4 = vpop.f32.mrf.mxu1 }
 0x55c   :  { %4127 = vst.msk [vmem:[%s7188_s10 + $0x68] sm:$0xff] %vm4113_vm1, %v4110_v24  ;;  %v3991_v9 = vadd.f32 %v3990_v5, %v3798_v18 }
 0x55e   :  { %v4040_v21 = vadd.f32 %v4039_v32, %v3991_v9 }
 0x560   :  { %v4089_v53 = vadd.f32 %v4088_v61, %v4040_v21 }
 0x561   :  { %v3799_v25 = vpop.f32.mrf.mxu2 }
 0x562   :  { %v4111_v46 = vadd.f32 %v7081_v15, %v4089_v53  ;;  %v3800_v10 = vadd.f32 %v3799_v25, %v7075_v2 }
 0x564   :  { %4128 = vst.msk [vmem:[%s7188_s10 + $0x70] sm:$0xff] %vm4113_vm1, %v4111_v46  ;;  %v3993_v8 = vadd.f32 %v3992_v31, %v3800_v10 }
 0x566   :  { %v4042_v59 = vadd.f32 %v4041_v22, %v3993_v8 }
 0x568   :  { %v4091_v48 = vadd.f32 %v4090_v4, %v4042_v59 }
 0x56a   :  { %v4112_v7 = vadd.f32 %v7081_v15, %v4091_v48 }
 0x56c   :  { %4129 = vst.msk [vmem:[%s7188_s10 + $0x78] sm:$0xff] %vm4113_vm1, %v4112_v7 }
 0x56d   :  { %4134 = vsyncpa [#allocation3], 1 }
 0x56e   :  { %4135 = vsyncpa [#allocation5], 1 }

</bundles_post_ra>
